<compile_context>
chip_gen: v7x
topology: tpu7x:2x2x1
jax: 0.10.0
libtpu: 0.0.40
codegen_flags: <defaults>
</compile_context>

<pallas_src>
import functools

import jax
import jax.numpy as jnp
from jax.experimental import pallas as pl
from jax.experimental.pallas import tpu as pltpu


_COMPUTE_DTYPE = jnp.bfloat16        # MXU operand dtype (accumulate in f32)


# ------------------------------ small helpers -------------------------------

def _round_up(x, m):
    return (x + m - 1) // m * m


def _choose_tile(n, pref, min_t):
    """Largest power-of-two tile <= pref (>= min_t) that divides n."""
    t = pref
    while t > min_t and n % t != 0:
        t //= 2
    assert n % t == 0, (n, t)
    return t


_VMEM_LIMIT_CACHE = None


def _vmem_limit():
    """Per-kernel scoped-VMEM budget: 3/4 of physical, capped, floor 32MiB."""
    global _VMEM_LIMIT_CACHE
    if _VMEM_LIMIT_CACHE is None:
        try:
            cap = int(pltpu.get_tpu_info().vmem_capacity_bytes)
        except Exception:  # pragma: no cover - conservative fallback
            cap = 64 * 1024 * 1024
        _VMEM_LIMIT_CACHE = max(32 * 1024 * 1024,
                                min(cap * 3 // 4, 96 * 1024 * 1024))
    return _VMEM_LIMIT_CACHE


# --------------------------- fused linear kernel ----------------------------

def _fused_linear_kernel(*refs, n_k, tk, inv_k_real, has_ln, has_res,
                         needs_stage, activation, eps, compute_dtype):
    it = iter(refs)
    x_ref = next(it)                          # (tm, Kp), resident per i stripe
    g_ref = next(it) if has_ln else None      # (1, Kp)
    be_ref = next(it) if has_ln else None     # (1, Kp)
    w_ref = next(it)                          # (tk, tn) bf16
    b_ref = next(it)                          # (1, tn)  f32
    r_ref = next(it) if has_res else None     # (tm, tn)
    o_ref = next(it)                          # (tm, tn)
    acc_ref = next(it)                        # (tm, tn) f32 scratch
    xc_ref = next(it) if needs_stage else None  # (tm, Kp) bf16 scratch

    j = pl.program_id(1)
    k = pl.program_id(2)

    @pl.when(k == 0)
    def _():
        acc_ref[...] = jnp.zeros_like(acc_ref)

    if needs_stage:
        # LN + cast + staging only when the M-tile changes (first j, first k);
        # the staged activations persist in scratch across the whole j stripe.
        @pl.when((j == 0) & (k == 0))
        def _():
            x = x_ref[...].astype(jnp.float32)
            if has_ln:
                # One-pass E[x^2]-E[x]^2 so zero-padded K columns (and padded
                # gamma/beta) leave the stats unchanged; f32 keeps it stable
                # for these activation magnitudes.
                mu = jnp.sum(x, axis=-1, keepdims=True) * inv_k_real
                ex2 = jnp.sum(x * x, axis=-1, keepdims=True) * inv_k_real
                inv = jax.lax.rsqrt(ex2 - mu * mu + eps)
                x = (x - mu) * inv * g_ref[...] + be_ref[...]
            xc_ref[...] = x.astype(compute_dtype)

    k_off = pl.multiple_of(k * tk, 128)
    if needs_stage:
        xk = xc_ref[:, pl.ds(k_off, tk)]
    else:
        xk = x_ref[:, pl.ds(k_off, tk)]       # input already bf16, no LN
    acc_ref[...] += jnp.dot(xk, w_ref[...], preferred_element_type=jnp.float32)

    @pl.when(k == n_k - 1)
    def _():
        y = acc_ref[...] + b_ref[...]
        if activation == "gelu":
            y = jax.nn.gelu(y, approximate=True)
        if has_res:
            y = y + r_ref[...].astype(jnp.float32)
        o_ref[...] = y.astype(o_ref.dtype)


def fused_linear(x, w, b, *, ln_gamma=None, ln_beta=None, residual=None,
                 activation="none", eps=1e-6, out_dtype=jnp.float32,
                 compute_dtype=_COMPUTE_DTYPE,
                 tm_pref=512, tn_pref=256, tk_pref=512):
    """y = [res +] act( LN?(x) @ w + b ).

    Assumes pre-prepared operands (no per-call HBM copies):
      x: (M, Kp) with M % 8 == 0 and Kp % 128 == 0 (f32 or bf16),
      w: (Kp, Np) bf16, Np % 128 == 0,  b: (1, Np) f32.
    """
    M, Kp = x.shape
    kw, Np = w.shape
    assert Kp == kw and b.shape == (1, Np)
    assert M % 8 == 0 and Kp % 128 == 0 and Np % 128 == 0, (M, Kp, Np)
    assert w.dtype == compute_dtype
    has_ln = ln_gamma is not None
    has_res = residual is not None
    needs_stage = has_ln or (x.dtype != compute_dtype)

    tm = _choose_tile(M, tm_pref, 8)
    tn = _choose_tile(Np, tn_pref, 128)
    tk = _choose_tile(Kp, tk_pref, 128)
    n_k = Kp // tk

    operands = [x]
    in_specs = [pl.BlockSpec((tm, Kp), lambda i, j, k: (i, 0))]
    if has_ln:
        operands += [ln_gamma, ln_beta]
        in_specs += [pl.BlockSpec((1, Kp), lambda i, j, k: (0, 0)),
                     pl.BlockSpec((1, Kp), lambda i, j, k: (0, 0))]
    operands += [w, b]
    in_specs += [pl.BlockSpec((tk, tn), lambda i, j, k: (k, j)),
                 pl.BlockSpec((1, tn), lambda i, j, k: (0, j))]
    if has_res:
        assert residual.shape == (M, Np)
        operands += [residual]
        in_specs += [pl.BlockSpec((tm, tn), lambda i, j, k: (i, j))]

    scratch = [pltpu.VMEM((tm, tn), jnp.float32)]
    if needs_stage:
        scratch.append(pltpu.VMEM((tm, Kp), compute_dtype))

    kernel = functools.partial(
        _fused_linear_kernel, n_k=n_k, tk=tk, inv_k_real=1.0 / Kp,
        has_ln=has_ln, has_res=has_res, needs_stage=needs_stage,
        activation=activation, eps=eps, compute_dtype=compute_dtype)

    # j must be "arbitrary": the staging step runs only at j==0, so j may not
    # be sharded across TensorCores.  i stays "parallel" for megacore.
    return pl.pallas_call(
        kernel,
        grid=(M // tm, Np // tn, n_k),
        out_shape=jax.ShapeDtypeStruct((M, Np), out_dtype),
        in_specs=in_specs,
        out_specs=pl.BlockSpec((tm, tn), lambda i, j, k: (i, j)),
        scratch_shapes=scratch,
        compiler_params=pltpu.CompilerParams(
            dimension_semantics=("parallel", "arbitrary", "arbitrary"),
            vmem_limit_bytes=_vmem_limit()),
    )(*operands)


# --------------------------- flash attention kernel -------------------------

def _flash_attn_kernel(q_ref, k_ref, v_ref, o_ref, m_sc, l_sc, acc_sc, *,
                       scale, heads_per_group, head_dim, kv_len, tkv,
                       needs_mask, compute_dtype):
    ki = pl.program_id(3)

    @pl.when(ki == 0)
    def _():
        m_sc[...] = jnp.full(m_sc.shape, -1e30, m_sc.dtype)
        l_sc[...] = jnp.zeros_like(l_sc)
        acc_sc[...] = jnp.zeros_like(acc_sc)

    q = q_ref[0]                               # (tq, slot)
    k = k_ref[0]                               # (tkv, slot)
    v = v_ref[0]                               # (tkv, slot)
    if q.dtype != compute_dtype:
        q = q.astype(compute_dtype)
    if k.dtype != compute_dtype:
        k = k.astype(compute_dtype)
    if v.dtype != compute_dtype:
        v = v.astype(compute_dtype)

    if needs_mask:
        # Sequence padding sits at the end, so only the last KV tile is ever
        # partially masked; a fully-masked tile can never precede a real one.
        kv_pos = ki * tkv + jax.lax.broadcasted_iota(
            jnp.int32, (q.shape[0], tkv), 1)
        valid = kv_pos < kv_len

    # Per-head online softmax over the G heads packed in this 128-wide slot.
    for hh in range(heads_per_group):
        lo = hh * head_dim
        qh = q[:, lo:lo + head_dim]
        kh = k[:, lo:lo + head_dim]
        vh = v[:, lo:lo + head_dim]
        # q @ k^T by contracting last dims -> no XLU transpose of the K tile.
        s = jax.lax.dot_general(qh, kh, (((1,), (1,)), ((), ())),
                                preferred_element_type=jnp.float32) * scale
        if needs_mask:
            s = jnp.where(valid, s, -1e30)
        m_prev = m_sc[hh]
        m_new = jnp.maximum(m_prev, jnp.max(s, axis=-1, keepdims=True))
        alpha = jnp.exp(m_prev - m_new)
        p = jnp.exp(s - m_new)
        l_sc[hh] = alpha * l_sc[hh] + jnp.sum(p, axis=-1, keepdims=True)
        acc_sc[hh] = alpha * acc_sc[hh] + jnp.dot(
            p.astype(compute_dtype), vh, preferred_element_type=jnp.float32)
        m_sc[hh] = m_new

    @pl.when(ki == pl.num_programs(3) - 1)
    def _():
        parts = []
        for hh in range(heads_per_group):
            inv = pl.reciprocal(l_sc[hh], approx=True)
            parts.append(acc_sc[hh] * inv)
        o_ref[0] = jnp.concatenate(parts, axis=-1).astype(o_ref.dtype)


def flash_attention(qkv, *, num_heads, head_dim, scale, seq_real,
                    out_dtype=jnp.bfloat16, compute_dtype=_COMPUTE_DTYPE,
                    tq_pref=256):
    """qkv: (B, Sp, 3*D) in natural layout (Q|K|V, heads contiguous inside).

    Heads are NOT padded: G = 128 // head_dim real heads share each
    lane-dense 128-wide slot; head split / output merge happen purely via
    BlockSpec index maps + in-kernel static slices.
    Returns (B, Sp, D) in `out_dtype`.
    """
    B, Sp, three_d = qkv.shape
    D = num_heads * head_dim
    assert three_d == 3 * D
    if head_dim < 128:
        assert 128 % head_dim == 0, head_dim
        slot = 128
    else:
        assert head_dim % 128 == 0, head_dim
        slot = head_dim
    hg = slot // head_dim                      # heads per lane slot
    assert D % slot == 0
    ngroups = D // slot
    assert Sp % 8 == 0
    tq = _choose_tile(Sp, tq_pref, 8)
    tkv = tq
    needs_mask = seq_real < Sp

    kernel = functools.partial(
        _flash_attn_kernel, scale=scale, heads_per_group=hg,
        head_dim=head_dim, kv_len=seq_real, tkv=tkv, needs_mask=needs_mask,
        compute_dtype=compute_dtype)

    return pl.pallas_call(
        kernel,
        grid=(B, ngroups, Sp // tq, Sp // tkv),
        out_shape=jax.ShapeDtypeStruct((B, Sp, D), out_dtype),
        in_specs=[
            pl.BlockSpec((1, tq, slot),
                         lambda b, g, qi, ki: (b, qi, g)),
            pl.BlockSpec((1, tkv, slot),
                         lambda b, g, qi, ki: (b, ki, ngroups + g)),
            pl.BlockSpec((1, tkv, slot),
                         lambda b, g, qi, ki: (b, ki, 2 * ngroups + g)),
        ],
        out_specs=pl.BlockSpec((1, tq, slot),
                               lambda b, g, qi, ki: (b, qi, g)),
        scratch_shapes=[
            pltpu.VMEM((hg, tq, 1), jnp.float32),         # running max
            pltpu.VMEM((hg, tq, 1), jnp.float32),         # running denom
            pltpu.VMEM((hg, tq, head_dim), jnp.float32),  # running numerator
        ],
        compiler_params=pltpu.CompilerParams(
            dimension_semantics=("parallel", "parallel", "parallel",
                                 "arbitrary"),
            vmem_limit_bytes=_vmem_limit()),
    )(qkv, qkv, qkv)


# ------------------------------ layernorm kernel ----------------------------

def _layernorm_kernel(x_ref, g_ref, b_ref, o_ref, *, eps, inv_d_real):
    x = x_ref[...]
    mu = jnp.sum(x, axis=-1, keepdims=True) * inv_d_real
    ex2 = jnp.sum(x * x, axis=-1, keepdims=True) * inv_d_real
    inv = jax.lax.rsqrt(ex2 - mu * mu + eps)
    o_ref[...] = (x - mu) * inv * g_ref[...] + b_ref[...]


def layernorm(x, gamma, beta, eps=1e-6, tm_pref=1024):
    """Standalone (final) LayerNorm; purely memory-bound -> big M tiles."""
    M, D = x.shape
    assert M % 8 == 0 and D % 128 == 0, (M, D)
    tm = _choose_tile(M, tm_pref, 8)
    kernel = functools.partial(_layernorm_kernel, eps=eps, inv_d_real=1.0 / D)
    return pl.pallas_call(
        kernel,
        grid=(M // tm,),
        out_shape=jax.ShapeDtypeStruct((M, D), jnp.float32),
        in_specs=[pl.BlockSpec((tm, D), lambda i: (i, 0)),
                  pl.BlockSpec((1, D), lambda i: (0, 0)),
                  pl.BlockSpec((1, D), lambda i: (0, 0))],
        out_specs=pl.BlockSpec((tm, D), lambda i: (i, 0)),
        compiler_params=pltpu.CompilerParams(
            dimension_semantics=("parallel",),
            vmem_limit_bytes=_vmem_limit()),
    )(x, gamma, beta)


# ------------------------- one-time parameter prep --------------------------

def prepare_params(params):
    """Host-side, one-time weight prep (run OUTSIDE the jit'd forward):
    cast matmul weights to bf16 and zero-pad K/N up to multiples of 128.
    Biases / LN params / embeddings stay f32 and unpadded (all their dims are
    already lane-aligned for this model)."""
    def pw(w):
        K, N = w.shape
        kp, np_ = _round_up(K, 128), _round_up(N, 128)
        if (kp, np_) != (K, N):
            w = jnp.pad(w, ((0, kp - K), (0, np_ - N)))
        return w.astype(_COMPUTE_DTYPE)

    prep = {
        "patch_w": pw(params["patch_w"]),
        "patch_b": params["patch_b"],
        "pos_embed": params["pos_embed"],
        "query_embed": params["query_embed"],
        "lnf_g": params["lnf_g"],
        "lnf_b": params["lnf_b"],
        "layers": [],
    }
    for lyr in params["layers"]:
        prep["layers"].append({
            "ln1_g": lyr["ln1_g"], "ln1_b": lyr["ln1_b"],
            "qkv_w": pw(lyr["qkv_w"]), "qkv_b": lyr["qkv_b"],
            "proj_w": pw(lyr["proj_w"]), "proj_b": lyr["proj_b"],
            "ln2_g": lyr["ln2_g"], "ln2_b": lyr["ln2_b"],
            "fc1_w": pw(lyr["fc1_w"]), "fc1_b": lyr["fc1_b"],
            "fc2_w": pw(lyr["fc2_w"]), "fc2_b": lyr["fc2_b"],
        })
    return prep


# --------------------------- model (glue in JAX) ----------------------------

def init_params(key, *, in_chans, patch, hidden, mlp_dim, num_layers,
                num_patches, num_queries):
    keys = jax.random.split(key, 4 + num_layers)

    def nrm(k, shape):
        return 0.02 * jax.random.normal(k, shape, dtype=jnp.float32)

    params = {
        "patch_w": nrm(keys[0], (in_chans * patch * patch, hidden)),
        "patch_b": jnp.zeros((1, hidden), jnp.float32),
        "pos_embed": nrm(keys[1], (num_patches, hidden)),
        "query_embed": nrm(keys[2], (num_queries, hidden)),
        "lnf_g": jnp.ones((1, hidden), jnp.float32),
        "lnf_b": jnp.zeros((1, hidden), jnp.float32),
        "layers": [],
    }
    for li in range(num_layers):
        lk = jax.random.split(keys[4 + li], 4)
        params["layers"].append({
            "ln1_g": jnp.ones((1, hidden), jnp.float32),
            "ln1_b": jnp.zeros((1, hidden), jnp.float32),
            "qkv_w": nrm(lk[0], (hidden, 3 * hidden)),
            "qkv_b": jnp.zeros((1, 3 * hidden), jnp.float32),
            "proj_w": nrm(lk[1], (hidden, hidden)),
            "proj_b": jnp.zeros((1, hidden), jnp.float32),
            "ln2_g": jnp.ones((1, hidden), jnp.float32),
            "ln2_b": jnp.zeros((1, hidden), jnp.float32),
            "fc1_w": nrm(lk[2], (hidden, mlp_dim)),
            "fc1_b": jnp.zeros((1, mlp_dim), jnp.float32),
            "fc2_w": nrm(lk[3], (hidden, mlp_dim and hidden)),
            "fc2_b": jnp.zeros((1, hidden), jnp.float32),
        })
        # fc2 weight must map mlp_dim -> hidden:
        params["layers"][-1]["fc2_w"] = nrm(lk[3], (mlp_dim, hidden))
    return params


def eomt_forward(prep, pixel_values, *, patch, num_heads):
    """Returns last_hidden_state: (B, num_queries + num_patches, hidden)."""
    B, C, H, W = pixel_values.shape
    p = patch
    hn, wn = H // p, W // p
    n_patch = hn * wn
    D = prep["pos_embed"].shape[1]
    Q = prep["query_embed"].shape[0]
    assert D % 128 == 0 and D % num_heads == 0
    dh = D // num_heads
    scale = 1.0 / float(dh) ** 0.5

    # Patch embedding == Conv2d(k=p, stride=p): unfold (C-major) then matmul.
    kp_patch = prep["patch_w"].shape[0]
    x = pixel_values.reshape(B, C, hn, p, wn, p)
    x = x.transpose(0, 2, 4, 1, 3, 5).reshape(B * n_patch, C * p * p)
    assert (B * n_patch) % 8 == 0
    if kp_patch != C * p * p:
        x = jnp.pad(x, ((0, 0), (0, kp_patch - C * p * p)))
    tok = fused_linear(x, prep["patch_w"], prep["patch_b"])
    tok = tok.reshape(B, n_patch, D) + prep["pos_embed"][None]

    # Prepend learnable query tokens (EoMT style) and pad the sequence ONCE
    # to the tile size; the padded shape is carried through all layers.
    queries = jnp.broadcast_to(prep["query_embed"][None], (B, Q, D))
    xs = jnp.concatenate([queries, tok], axis=1)      # (B, S, D)
    S = Q + n_patch
    seq_tile = 256 if S >= 256 else _round_up(S, 8)
    Sp = _round_up(S, seq_tile)
    if Sp != S:
        xs = jnp.pad(xs, ((0, 0), (0, Sp - S), (0, 0)))
    x2 = xs.reshape(B * Sp, D)                        # f32 residual stream

    for lyr in prep["layers"]:
        # --- self-attention block: LN1 fused into QKV, residual into proj ---
        qkv = fused_linear(x2, lyr["qkv_w"], lyr["qkv_b"],
                           ln_gamma=lyr["ln1_g"], ln_beta=lyr["ln1_b"],
                           out_dtype=jnp.bfloat16)
        attn = flash_attention(qkv.reshape(B, Sp, 3 * D), num_heads=num_heads,
                               head_dim=dh, scale=scale, seq_real=S)
        x2 = fused_linear(attn.reshape(B * Sp, D), lyr["proj_w"],
                          lyr["proj_b"], residual=x2)

        # --- MLP block: LN2 + GELU fused into fc1, residual into fc2 ---
        h = fused_linear(x2, lyr["fc1_w"], lyr["fc1_b"],
                         ln_gamma=lyr["ln2_g"], ln_beta=lyr["ln2_b"],
                         activation="gelu", out_dtype=jnp.bfloat16)
        x2 = fused_linear(h, lyr["fc2_w"], lyr["fc2_b"], residual=x2)

    out = layernorm(x2, prep["lnf_g"], prep["lnf_b"])
    out = out.reshape(B, Sp, D)
    if Sp != S:
        out = out[:, :S, :]                           # single slice at the end
    return out

# TODO(synk): the full EomtForUniversalSegmentation also has class/mask heads
# and mask-annealed attention; the wrapper's duck-typed output selection
# collapses here to returning last_hidden_state of the encoder.


# ----------------------------- pure-JAX reference ---------------------------

def _ref_forward(params, pixel_values, *, patch, num_heads):
    """Reference mirroring the kernels' mixed-precision policy (bf16 MXU
    operands, f32 accumulation, bf16 QKV / attention / MLP-hidden tensors,
    f32 residual stream)."""
    B, C, H, W = pixel_values.shape
    p = patch
    hn, wn = H // p, W // p
    n_patch = hn * wn
    D = params["patch_w"].shape[1]
    Q = params["query_embed"].shape[0]
    dh = D // num_heads
    scale = 1.0 / float(dh) ** 0.5
    bf16 = jnp.bfloat16

    def mm(a, w):
        return jnp.dot(a.astype(bf16), w.astype(bf16),
                       preferred_element_type=jnp.float32)

    def ln(t, g, b, eps=1e-6):
        mu = jnp.mean(t, -1, keepdims=True)
        var = jnp.mean((t - mu) ** 2, -1, keepdims=True)
        return (t - mu) * jax.lax.rsqrt(var + eps) * g + b

    x = pixel_values.reshape(B, C, hn, p, wn, p)
    x = x.transpose(0, 2, 4, 1, 3, 5).reshape(B * n_patch, C * p * p)
    tok = (mm(x, params["patch_w"]) + params["patch_b"]).reshape(B, n_patch, D)
    tok = tok + params["pos_embed"][None]
    x = jnp.concatenate(
        [jnp.broadcast_to(params["query_embed"][None], (B, Q, D)), tok], 1)
    S = Q + n_patch

    for lyr in params["layers"]:
        h = ln(x, lyr["ln1_g"], lyr["ln1_b"])
        qkv = (mm(h.reshape(B * S, D), lyr["qkv_w"]) + lyr["qkv_b"]
               ).astype(bf16)
        qkv = qkv.reshape(B, S, 3, num_heads, dh).transpose(2, 0, 3, 1, 4)
        qh, kh, vh = qkv[0], qkv[1], qkv[2]
        s = jnp.einsum("bhqd,bhkd->bhqk", qh, kh,
                       preferred_element_type=jnp.float32) * scale
        patt = jax.nn.softmax(s, axis=-1)
        o = jnp.einsum("bhqk,bhkd->bhqd", patt.astype(bf16), vh,
                       preferred_element_type=jnp.float32)
        o = o.transpose(0, 2, 1, 3).reshape(B * S, D).astype(bf16)
        x = x + (mm(o, lyr["proj_w"]) + lyr["proj_b"]).reshape(B, S, D)
        h = ln(x, lyr["ln2_g"], lyr["ln2_b"])
        h = jax.nn.gelu(mm(h.reshape(B * S, D), lyr["fc1_w"]) + lyr["fc1_b"],
                        approximate=True).astype(bf16)
        x = x + (mm(h, lyr["fc2_w"]) + lyr["fc2_b"]).reshape(B, S, D)
    return ln(x, params["lnf_g"], params["lnf_b"])


# ----------------------------------- main -----------------------------------

if __name__ == "__main__":
    B, C, H, W = 2, 3, 32, 32        # small "pixel_values"
    PATCH = 8                        # 4x4 = 16 patch tokens
    HIDDEN = 128                     # lane-dense feature dim
    NUM_HEADS = 4                    # head dim 32 (4 heads per 128-lane slot)
    MLP_DIM = 256
    NUM_LAYERS = 2
    NUM_QUERIES = 16

    key = jax.random.PRNGKey(0)
    k_img, k_par = jax.random.split(key)
    pixel_values = jax.random.normal(k_img, (B, C, H, W), dtype=jnp.float32)

    params = init_params(
        k_par, in_chans=C, patch=PATCH, hidden=HIDDEN, mlp_dim=MLP_DIM,
        num_layers=NUM_LAYERS, num_patches=(H // PATCH) * (W // PATCH),
        num_queries=NUM_QUERIES)
    prep = prepare_params(params)    # one-time weight cast/pad, outside jit

    fwd = jax.jit(functools.partial(eomt_forward, patch=PATCH,
                                    num_heads=NUM_HEADS))
    out = jax.block_until_ready(fwd(prep, pixel_values))

    ref = _ref_forward(params, pixel_values, patch=PATCH, num_heads=NUM_HEADS)
    S_total = NUM_QUERIES + (H // PATCH) * (W // PATCH)
    assert out.shape == (B, S_total, HIDDEN), out.shape
    max_err = float(jnp.max(jnp.abs(out - ref)))
    assert jnp.allclose(out, ref, atol=3e-2, rtol=3e-2), max_err

    print("KERNEL_OK")
</pallas_src>

<mosaic_0001>
module attributes {stable_mosaic.version = 11 : i64} {
  func.func @_fused_linear_kernel(%arg0: i32, %arg1: i32, %arg2: i32, %arg3: memref<64x128xf32, #tpu.memory_space<vmem>>, %arg4: memref<1x128xf32, #tpu.memory_space<vmem>>, %arg5: memref<1x128xf32, #tpu.memory_space<vmem>>, %arg6: memref<128x128xbf16, #tpu.memory_space<vmem>>, %arg7: memref<1x128xf32, #tpu.memory_space<vmem>>, %arg8: memref<64x128xbf16, #tpu.memory_space<vmem>>, %arg9: memref<64x128xf32, #tpu.memory_space<vmem>>, %arg10: memref<64x128xbf16, #tpu.memory_space<vmem>>) attributes {dimension_semantics = [#tpu.dimension_semantics<parallel>, #tpu.dimension_semantics<arbitrary>, #tpu.dimension_semantics<arbitrary>], iteration_bounds = array<i64: 1, 3, 1>, scalar_prefetch = 0 : i64, scratch_operands = 2 : i64, tpu.core_type = #tpu.core_type<tc>, window_params = [{transform_indices = @transform_0, window_bounds = array<i64: 64, 128>}, {pipeline_mode = #tpu.pipeline_mode<synchronous>, transform_indices = @transform_1, window_bounds = array<i64: 1, 128>}, {pipeline_mode = #tpu.pipeline_mode<synchronous>, transform_indices = @transform_2, window_bounds = array<i64: 1, 128>}, {transform_indices = @transform_3, window_bounds = array<i64: 128, 128>}, {transform_indices = @transform_4, window_bounds = array<i64: 1, 128>}, {transform_indices = @transform_5, window_bounds = array<i64: 64, 128>}]} {
    %c0_i32 = arith.constant 0 : i32
    %0 = arith.cmpi eq, %arg2, %c0_i32 : i32
    %1 = arith.extui %0 : i1 to i32
    %c0_i32_0 = arith.constant 0 : i32
    %2 = arith.cmpi ne, %1, %c0_i32_0 : i32
    scf.if %2 {
      %cst_12 = arith.constant 0.000000e+00 : f32
      %20 = vector.broadcast %cst_12 : f32 to vector<64x128xf32>
      %c0_13 = arith.constant 0 : index
      %c0_14 = arith.constant 0 : index
      %21 = vector.load %arg9[%c0_13, %c0_14] : memref<64x128xf32, #tpu.memory_space<vmem>>, vector<64x128xf32>
      tpu.vector_store %arg9[%c0_13, %c0_14], %20 {strides = array<i32>} : memref<64x128xf32, #tpu.memory_space<vmem>>, vector<64x128xf32>,
    } else {
    }
    %c0_i32_1 = arith.constant 0 : i32
    %3 = arith.cmpi eq, %arg1, %c0_i32_1 : i32
    %c0_i32_2 = arith.constant 0 : i32
    %4 = arith.cmpi eq, %arg2, %c0_i32_2 : i32
    %5 = arith.andi %3, %4 : i1
    %6 = arith.extui %5 : i1 to i32
    %c0_i32_3 = arith.constant 0 : i32
    %7 = arith.cmpi ne, %6, %c0_i32_3 : i32
    scf.if %7 {
      %c0_12 = arith.constant 0 : index
      %c0_13 = arith.constant 0 : index
      %20 = vector.load %arg3[%c0_12, %c0_13] : memref<64x128xf32, #tpu.memory_space<vmem>>, vector<64x128xf32>
      %cst_14 = arith.constant dense<0.000000e+00> : vector<64xf32>
      %21 = vector.multi_reduction <add>, %20, %cst_14 [1] : vector<64x128xf32> to vector<64xf32>
      %22 = vector.shape_cast %21 : vector<64xf32> to vector<64x1xf32>
      %cst_15 = arith.constant 7.812500e-03 : f32
      %23 = vector.broadcast %cst_15 : f32 to vector<64x1xf32>
      %24 = arith.mulf %22, %23 : vector<64x1xf32>
      %25 = arith.mulf %20, %20 : vector<64x128xf32>
      %cst_16 = arith.constant dense<0.000000e+00> : vector<64xf32>
      %26 = vector.multi_reduction <add>, %25, %cst_16 [1] : vector<64x128xf32> to vector<64xf32>
      %27 = vector.shape_cast %26 : vector<64xf32> to vector<64x1xf32>
      %cst_17 = arith.constant 7.812500e-03 : f32
      %28 = vector.broadcast %cst_17 : f32 to vector<64x1xf32>
      %29 = arith.mulf %27, %28 : vector<64x1xf32>
      %30 = arith.mulf %24, %24 : vector<64x1xf32>
      %31 = arith.subf %29, %30 : vector<64x1xf32>
      %cst_18 = arith.constant 9.99999997E-7 : f32
      %32 = vector.broadcast %cst_18 : f32 to vector<64x1xf32>
      %33 = arith.addf %31, %32 : vector<64x1xf32>
      %34 = math.rsqrt %33 : vector<64x1xf32>
      %35 = vector.broadcast %24 : vector<64x1xf32> to vector<64x128xf32>
      %36 = arith.subf %20, %35 : vector<64x128xf32>
      %37 = vector.broadcast %34 : vector<64x1xf32> to vector<64x128xf32>
      %38 = arith.mulf %36, %37 : vector<64x128xf32>
      %c0_19 = arith.constant 0 : index
      %c0_20 = arith.constant 0 : index
      %39 = vector.load %arg4[%c0_19, %c0_20] : memref<1x128xf32, #tpu.memory_space<vmem>>, vector<1x128xf32>
      %40 = vector.broadcast %39 : vector<1x128xf32> to vector<64x128xf32>
      %41 = arith.mulf %38, %40 : vector<64x128xf32>
      %c0_21 = arith.constant 0 : index
      %c0_22 = arith.constant 0 : index
      %42 = vector.load %arg5[%c0_21, %c0_22] : memref<1x128xf32, #tpu.memory_space<vmem>>, vector<1x128xf32>
      %43 = vector.broadcast %42 : vector<1x128xf32> to vector<64x128xf32>
      %44 = arith.addf %41, %43 : vector<64x128xf32>
      %45 = arith.truncf %44 : vector<64x128xf32> to vector<64x128xbf16>
      %c0_23 = arith.constant 0 : index
      %c0_24 = arith.constant 0 : index
      %46 = vector.load %arg10[%c0_23, %c0_24] : memref<64x128xbf16, #tpu.memory_space<vmem>>, vector<64x128xbf16>
      tpu.vector_store %arg10[%c0_23, %c0_24], %45 {strides = array<i32>} : memref<64x128xbf16, #tpu.memory_space<vmem>>, vector<64x128xbf16>,
    } else {
    }
    %c128_i32 = arith.constant 128 : i32
    %8 = arith.muli %arg2, %c128_i32 : i32
    %9 = tpu.assume_multiple %8, 128 : i32
    %c0 = arith.constant 0 : index
    %10 = arith.index_cast %9 : i32 to index
    %11 = vector.load %arg10[%c0, %10] : memref<64x128xbf16, #tpu.memory_space<vmem>>, vector<64x128xbf16>
    %c0_4 = arith.constant 0 : index
    %c0_5 = arith.constant 0 : index
    %12 = vector.load %arg9[%c0_4, %c0_5] : memref<64x128xf32, #tpu.memory_space<vmem>>, vector<64x128xf32>
    %c0_6 = arith.constant 0 : index
    %c0_7 = arith.constant 0 : index
    %13 = vector.load %arg6[%c0_6, %c0_7] : memref<128x128xbf16, #tpu.memory_space<vmem>>, vector<128x128xbf16>
    %cst = arith.constant dense<0.000000e+00> : vector<64x128xf32>
    %14 = tpu.matmul %11, %13, %cst {dimension_numbers = #tpu.dot_dimension_numbers<[1], [0], [0], [1], [0, 0, 1, 1], [], []>} : vector<64x128xbf16>, vector<128x128xbf16>, vector<64x128xf32> -> vector<64x128xf32>
    %15 = arith.addf %12, %14 : vector<64x128xf32>
    %c0_8 = arith.constant 0 : index
    %c0_9 = arith.constant 0 : index
    %16 = vector.load %arg9[%c0_8, %c0_9] : memref<64x128xf32, #tpu.memory_space<vmem>>, vector<64x128xf32>
    tpu.vector_store %arg9[%c0_8, %c0_9], %15 {strides = array<i32>} : memref<64x128xf32, #tpu.memory_space<vmem>>, vector<64x128xf32>,
    %c0_i32_10 = arith.constant 0 : i32
    %17 = arith.cmpi eq, %arg2, %c0_i32_10 : i32
    %18 = arith.extui %17 : i1 to i32
    %c0_i32_11 = arith.constant 0 : i32
    %19 = arith.cmpi ne, %18, %c0_i32_11 : i32
    scf.if %19 {
      %c0_12 = arith.constant 0 : index
      %c0_13 = arith.constant 0 : index
      %20 = vector.load %arg9[%c0_12, %c0_13] : memref<64x128xf32, #tpu.memory_space<vmem>>, vector<64x128xf32>
      %c0_14 = arith.constant 0 : index
      %c0_15 = arith.constant 0 : index
      %21 = vector.load %arg7[%c0_14, %c0_15] : memref<1x128xf32, #tpu.memory_space<vmem>>, vector<1x128xf32>
      %22 = vector.broadcast %21 : vector<1x128xf32> to vector<64x128xf32>
      %23 = arith.addf %20, %22 : vector<64x128xf32>
      %24 = arith.truncf %23 : vector<64x128xf32> to vector<64x128xbf16>
      %c0_16 = arith.constant 0 : index
      %c0_17 = arith.constant 0 : index
      %25 = vector.load %arg8[%c0_16, %c0_17] : memref<64x128xbf16, #tpu.memory_space<vmem>>, vector<64x128xbf16>
      tpu.vector_store %arg8[%c0_16, %c0_17], %24 {strides = array<i32>} : memref<64x128xbf16, #tpu.memory_space<vmem>>, vector<64x128xbf16>,
    } else {
    }
    return
  }
  func.func @transform_0(%arg0: i32, %arg1: i32, %arg2: i32) -> (i32, i32) {
    %c0_i32 = arith.constant 0 : i32
    %c0_i32_0 = arith.constant 0 : i32
    return %arg0, %c0_i32 : i32, i32
  }
  func.func @transform_1(%arg0: i32, %arg1: i32, %arg2: i32) -> (i32, i32) {
    %c0_i32 = arith.constant 0 : i32
    %c0_i32_0 = arith.constant 0 : i32
    %c0_i32_1 = arith.constant 0 : i32
    return %c0_i32, %c0_i32_0 : i32, i32
  }
  func.func @transform_2(%arg0: i32, %arg1: i32, %arg2: i32) -> (i32, i32) {
    %c0_i32 = arith.constant 0 : i32
    %c0_i32_0 = arith.constant 0 : i32
    %c0_i32_1 = arith.constant 0 : i32
    return %c0_i32, %c0_i32_0 : i32, i32
  }
  func.func @transform_3(%arg0: i32, %arg1: i32, %arg2: i32) -> (i32, i32) {
    %c0_i32 = arith.constant 0 : i32
    return %arg2, %arg1 : i32, i32
  }
  func.func @transform_4(%arg0: i32, %arg1: i32, %arg2: i32) -> (i32, i32) {
    %c0_i32 = arith.constant 0 : i32
    %c0_i32_0 = arith.constant 0 : i32
    return %c0_i32, %arg1 : i32, i32
  }
  func.func @transform_5(%arg0: i32, %arg1: i32, %arg2: i32) -> (i32, i32) {
    %c0_i32 = arith.constant 0 : i32
    return %arg0, %arg1 : i32, i32
  }
}

module attributes {stable_mosaic.version = 11 : i64} {
  func.func @_fused_linear_kernel(%arg0: i32, %arg1: i32, %arg2: i32, %arg3: memref<32x256xf32, #tpu.memory_space<vmem>>, %arg4: memref<256x128xbf16, #tpu.memory_space<vmem>>, %arg5: memref<1x128xf32, #tpu.memory_space<vmem>>, %arg6: memref<32x128xf32, #tpu.memory_space<vmem>>, %arg7: memref<32x128xf32, #tpu.memory_space<vmem>>, %arg8: memref<32x256xbf16, #tpu.memory_space<vmem>>) attributes {dimension_semantics = [#tpu.dimension_semantics<parallel>, #tpu.dimension_semantics<arbitrary>, #tpu.dimension_semantics<arbitrary>], iteration_bounds = array<i64: 1, 1, 1>, scalar_prefetch = 0 : i64, scratch_operands = 2 : i64, tpu.core_type = #tpu.core_type<tc>, window_params = [{transform_indices = @transform_0, window_bounds = array<i64: 32, 256>}, {transform_indices = @transform_1, window_bounds = array<i64: 256, 128>}, {transform_indices = @transform_2, window_bounds = array<i64: 1, 128>}, {transform_indices = @transform_3, window_bounds = array<i64: 32, 128>}]} {
    %c0_i32 = arith.constant 0 : i32
    %0 = arith.cmpi eq, %arg2, %c0_i32 : i32
    %1 = arith.extui %0 : i1 to i32
    %c0_i32_0 = arith.constant 0 : i32
    %2 = arith.cmpi ne, %1, %c0_i32_0 : i32
    scf.if %2 {
      %cst_12 = arith.constant 0.000000e+00 : f32
      %20 = vector.broadcast %cst_12 : f32 to vector<32x128xf32>
      %c0_13 = arith.constant 0 : index
      %c0_14 = arith.constant 0 : index
      %21 = vector.load %arg7[%c0_13, %c0_14] : memref<32x128xf32, #tpu.memory_space<vmem>>, vector<32x128xf32>
      tpu.vector_store %arg7[%c0_13, %c0_14], %20 {strides = array<i32>} : memref<32x128xf32, #tpu.memory_space<vmem>>, vector<32x128xf32>,
    } else {
    }
    %c0_i32_1 = arith.constant 0 : i32
    %3 = arith.cmpi eq, %arg1, %c0_i32_1 : i32
    %c0_i32_2 = arith.constant 0 : i32
    %4 = arith.cmpi eq, %arg2, %c0_i32_2 : i32
    %5 = arith.andi %3, %4 : i1
    %6 = arith.extui %5 : i1 to i32
    %c0_i32_3 = arith.constant 0 : i32
    %7 = arith.cmpi ne, %6, %c0_i32_3 : i32
    scf.if %7 {
      %c0_12 = arith.constant 0 : index
      %c0_13 = arith.constant 0 : index
      %20 = vector.load %arg3[%c0_12, %c0_13] : memref<32x256xf32, #tpu.memory_space<vmem>>, vector<32x256xf32>
      %21 = arith.truncf %20 : vector<32x256xf32> to vector<32x256xbf16>
      %c0_14 = arith.constant 0 : index
      %c0_15 = arith.constant 0 : index
      %22 = vector.load %arg8[%c0_14, %c0_15] : memref<32x256xbf16, #tpu.memory_space<vmem>>, vector<32x256xbf16>
      tpu.vector_store %arg8[%c0_14, %c0_15], %21 {strides = array<i32>} : memref<32x256xbf16, #tpu.memory_space<vmem>>, vector<32x256xbf16>,
    } else {
    }
    %c256_i32 = arith.constant 256 : i32
    %8 = arith.muli %arg2, %c256_i32 : i32
    %9 = tpu.assume_multiple %8, 128 : i32
    %c0 = arith.constant 0 : index
    %10 = arith.index_cast %9 : i32 to index
    %11 = vector.load %arg8[%c0, %10] : memref<32x256xbf16, #tpu.memory_space<vmem>>, vector<32x256xbf16>
    %c0_4 = arith.constant 0 : index
    %c0_5 = arith.constant 0 : index
    %12 = vector.load %arg7[%c0_4, %c0_5] : memref<32x128xf32, #tpu.memory_space<vmem>>, vector<32x128xf32>
    %c0_6 = arith.constant 0 : index
    %c0_7 = arith.constant 0 : index
    %13 = vector.load %arg4[%c0_6, %c0_7] : memref<256x128xbf16, #tpu.memory_space<vmem>>, vector<256x128xbf16>
    %cst = arith.constant dense<0.000000e+00> : vector<32x128xf32>
    %14 = tpu.matmul %11, %13, %cst {dimension_numbers = #tpu.dot_dimension_numbers<[1], [0], [0], [1], [0, 0, 1, 1], [], []>} : vector<32x256xbf16>, vector<256x128xbf16>, vector<32x128xf32> -> vector<32x128xf32>
    %15 = arith.addf %12, %14 : vector<32x128xf32>
    %c0_8 = arith.constant 0 : index
    %c0_9 = arith.constant 0 : index
    %16 = vector.load %arg7[%c0_8, %c0_9] : memref<32x128xf32, #tpu.memory_space<vmem>>, vector<32x128xf32>
    tpu.vector_store %arg7[%c0_8, %c0_9], %15 {strides = array<i32>} : memref<32x128xf32, #tpu.memory_space<vmem>>, vector<32x128xf32>,
    %c0_i32_10 = arith.constant 0 : i32
    %17 = arith.cmpi eq, %arg2, %c0_i32_10 : i32
    %18 = arith.extui %17 : i1 to i32
    %c0_i32_11 = arith.constant 0 : i32
    %19 = arith.cmpi ne, %18, %c0_i32_11 : i32
    scf.if %19 {
      %c0_12 = arith.constant 0 : index
      %c0_13 = arith.constant 0 : index
      %20 = vector.load %arg7[%c0_12, %c0_13] : memref<32x128xf32, #tpu.memory_space<vmem>>, vector<32x128xf32>
      %c0_14 = arith.constant 0 : index
      %c0_15 = arith.constant 0 : index
      %21 = vector.load %arg5[%c0_14, %c0_15] : memref<1x128xf32, #tpu.memory_space<vmem>>, vector<1x128xf32>
      %22 = vector.broadcast %21 : vector<1x128xf32> to vector<32x128xf32>
      %23 = arith.addf %20, %22 : vector<32x128xf32>
      %c0_16 = arith.constant 0 : index
      %c0_17 = arith.constant 0 : index
      %24 = vector.load %arg6[%c0_16, %c0_17] : memref<32x128xf32, #tpu.memory_space<vmem>>, vector<32x128xf32>
      tpu.vector_store %arg6[%c0_16, %c0_17], %23 {strides = array<i32>} : memref<32x128xf32, #tpu.memory_space<vmem>>, vector<32x128xf32>,
    } else {
    }
    return
  }
  func.func @transform_0(%arg0: i32, %arg1: i32, %arg2: i32) -> (i32, i32) {
    %c0_i32 = arith.constant 0 : i32
    %c0_i32_0 = arith.constant 0 : i32
    return %arg0, %c0_i32 : i32, i32
  }
  func.func @transform_1(%arg0: i32, %arg1: i32, %arg2: i32) -> (i32, i32) {
    %c0_i32 = arith.constant 0 : i32
    return %arg2, %arg1 : i32, i32
  }
  func.func @transform_2(%arg0: i32, %arg1: i32, %arg2: i32) -> (i32, i32) {
    %c0_i32 = arith.constant 0 : i32
    %c0_i32_0 = arith.constant 0 : i32
    return %c0_i32, %arg1 : i32, i32
  }
  func.func @transform_3(%arg0: i32, %arg1: i32, %arg2: i32) -> (i32, i32) {
    %c0_i32 = arith.constant 0 : i32
    return %arg0, %arg1 : i32, i32
  }
}

module attributes {stable_mosaic.version = 11 : i64} {
  func.func @_fused_linear_kernel(%arg0: i32, %arg1: i32, %arg2: i32, %arg3: memref<64x128xbf16, #tpu.memory_space<vmem>>, %arg4: memref<128x128xbf16, #tpu.memory_space<vmem>>, %arg5: memref<1x128xf32, #tpu.memory_space<vmem>>, %arg6: memref<64x128xf32, #tpu.memory_space<vmem>>, %arg7: memref<64x128xf32, #tpu.memory_space<vmem>>, %arg8: memref<64x128xf32, #tpu.memory_space<vmem>>) attributes {dimension_semantics = [#tpu.dimension_semantics<parallel>, #tpu.dimension_semantics<arbitrary>, #tpu.dimension_semantics<arbitrary>], iteration_bounds = array<i64: 1, 1, 1>, scalar_prefetch = 0 : i64, scratch_operands = 1 : i64, tpu.core_type = #tpu.core_type<tc>, window_params = [{transform_indices = @transform_0, window_bounds = array<i64: 64, 128>}, {transform_indices = @transform_1, window_bounds = array<i64: 128, 128>}, {transform_indices = @transform_2, window_bounds = array<i64: 1, 128>}, {transform_indices = @transform_3, window_bounds = array<i64: 64, 128>}, {transform_indices = @transform_4, window_bounds = array<i64: 64, 128>}]} {
    %c0_i32 = arith.constant 0 : i32
    %0 = arith.cmpi eq, %arg2, %c0_i32 : i32
    %1 = arith.extui %0 : i1 to i32
    %c0_i32_0 = arith.constant 0 : i32
    %2 = arith.cmpi ne, %1, %c0_i32_0 : i32
    scf.if %2 {
      %cst_9 = arith.constant 0.000000e+00 : f32
      %15 = vector.broadcast %cst_9 : f32 to vector<64x128xf32>
      %c0_10 = arith.constant 0 : index
      %c0_11 = arith.constant 0 : index
      %16 = vector.load %arg8[%c0_10, %c0_11] : memref<64x128xf32, #tpu.memory_space<vmem>>, vector<64x128xf32>
      tpu.vector_store %arg8[%c0_10, %c0_11], %15 {strides = array<i32>} : memref<64x128xf32, #tpu.memory_space<vmem>>, vector<64x128xf32>,
    } else {
    }
    %c128_i32 = arith.constant 128 : i32
    %3 = arith.muli %arg2, %c128_i32 : i32
    %4 = tpu.assume_multiple %3, 128 : i32
    %c0 = arith.constant 0 : index
    %5 = arith.index_cast %4 : i32 to index
    %6 = vector.load %arg3[%c0, %5] : memref<64x128xbf16, #tpu.memory_space<vmem>>, vector<64x128xbf16>
    %c0_1 = arith.constant 0 : index
    %c0_2 = arith.constant 0 : index
    %7 = vector.load %arg8[%c0_1, %c0_2] : memref<64x128xf32, #tpu.memory_space<vmem>>, vector<64x128xf32>
    %c0_3 = arith.constant 0 : index
    %c0_4 = arith.constant 0 : index
    %8 = vector.load %arg4[%c0_3, %c0_4] : memref<128x128xbf16, #tpu.memory_space<vmem>>, vector<128x128xbf16>
    %cst = arith.constant dense<0.000000e+00> : vector<64x128xf32>
    %9 = tpu.matmul %6, %8, %cst {dimension_numbers = #tpu.dot_dimension_numbers<[1], [0], [0], [1], [0, 0, 1, 1], [], []>} : vector<64x128xbf16>, vector<128x128xbf16>, vector<64x128xf32> -> vector<64x128xf32>
    %10 = arith.addf %7, %9 : vector<64x128xf32>
    %c0_5 = arith.constant 0 : index
    %c0_6 = arith.constant 0 : index
    %11 = vector.load %arg8[%c0_5, %c0_6] : memref<64x128xf32, #tpu.memory_space<vmem>>, vector<64x128xf32>
    tpu.vector_store %arg8[%c0_5, %c0_6], %10 {strides = array<i32>} : memref<64x128xf32, #tpu.memory_space<vmem>>, vector<64x128xf32>,
    %c0_i32_7 = arith.constant 0 : i32
    %12 = arith.cmpi eq, %arg2, %c0_i32_7 : i32
    %13 = arith.extui %12 : i1 to i32
    %c0_i32_8 = arith.constant 0 : i32
    %14 = arith.cmpi ne, %13, %c0_i32_8 : i32
    scf.if %14 {
      %c0_9 = arith.constant 0 : index
      %c0_10 = arith.constant 0 : index
      %15 = vector.load %arg8[%c0_9, %c0_10] : memref<64x128xf32, #tpu.memory_space<vmem>>, vector<64x128xf32>
      %c0_11 = arith.constant 0 : index
      %c0_12 = arith.constant 0 : index
      %16 = vector.load %arg5[%c0_11, %c0_12] : memref<1x128xf32, #tpu.memory_space<vmem>>, vector<1x128xf32>
      %17 = vector.broadcast %16 : vector<1x128xf32> to vector<64x128xf32>
      %18 = arith.addf %15, %17 : vector<64x128xf32>
      %c0_13 = arith.constant 0 : index
      %c0_14 = arith.constant 0 : index
      %19 = vector.load %arg6[%c0_13, %c0_14] : memref<64x128xf32, #tpu.memory_space<vmem>>, vector<64x128xf32>
      %20 = arith.addf %18, %19 : vector<64x128xf32>
      %c0_15 = arith.constant 0 : index
      %c0_16 = arith.constant 0 : index
      %21 = vector.load %arg7[%c0_15, %c0_16] : memref<64x128xf32, #tpu.memory_space<vmem>>, vector<64x128xf32>
      tpu.vector_store %arg7[%c0_15, %c0_16], %20 {strides = array<i32>} : memref<64x128xf32, #tpu.memory_space<vmem>>, vector<64x128xf32>,
    } else {
    }
    return
  }
  func.func @transform_0(%arg0: i32, %arg1: i32, %arg2: i32) -> (i32, i32) {
    %c0_i32 = arith.constant 0 : i32
    %c0_i32_0 = arith.constant 0 : i32
    return %arg0, %c0_i32 : i32, i32
  }
  func.func @transform_1(%arg0: i32, %arg1: i32, %arg2: i32) -> (i32, i32) {
    %c0_i32 = arith.constant 0 : i32
    return %arg2, %arg1 : i32, i32
  }
  func.func @transform_2(%arg0: i32, %arg1: i32, %arg2: i32) -> (i32, i32) {
    %c0_i32 = arith.constant 0 : i32
    %c0_i32_0 = arith.constant 0 : i32
    return %c0_i32, %arg1 : i32, i32
  }
  func.func @transform_3(%arg0: i32, %arg1: i32, %arg2: i32) -> (i32, i32) {
    %c0_i32 = arith.constant 0 : i32
    return %arg0, %arg1 : i32, i32
  }
  func.func @transform_4(%arg0: i32, %arg1: i32, %arg2: i32) -> (i32, i32) {
    %c0_i32 = arith.constant 0 : i32
    return %arg0, %arg1 : i32, i32
  }
}

module attributes {stable_mosaic.version = 11 : i64} {
  func.func @_flash_attn_kernel(%arg0: i32, %arg1: i32, %arg2: i32, %arg3: i32, %arg4: memref<1x32x128xbf16, #tpu.memory_space<vmem>>, %arg5: memref<1x32x128xbf16, #tpu.memory_space<vmem>>, %arg6: memref<1x32x128xbf16, #tpu.memory_space<vmem>>, %arg7: memref<1x32x128xbf16, #tpu.memory_space<vmem>>, %arg8: memref<4x32x1xf32, #tpu.memory_space<vmem>>, %arg9: memref<4x32x1xf32, #tpu.memory_space<vmem>>, %arg10: memref<4x32x32xf32, #tpu.memory_space<vmem>>) attributes {dimension_semantics = [#tpu.dimension_semantics<parallel>, #tpu.dimension_semantics<parallel>, #tpu.dimension_semantics<parallel>, #tpu.dimension_semantics<arbitrary>], iteration_bounds = array<i64: 2, 1, 1, 1>, scalar_prefetch = 0 : i64, scratch_operands = 3 : i64, tpu.core_type = #tpu.core_type<tc>, window_params = [{transform_indices = @transform_0, window_bounds = array<i64: 1, 32, 128>}, {transform_indices = @transform_1, window_bounds = array<i64: 1, 32, 128>}, {transform_indices = @transform_2, window_bounds = array<i64: 1, 32, 128>}, {transform_indices = @transform_3, window_bounds = array<i64: 1, 32, 128>}]} {
    %c0_i32 = arith.constant 0 : i32
    %0 = arith.cmpi eq, %arg3, %c0_i32 : i32
    %1 = arith.extui %0 : i1 to i32
    %c0_i32_0 = arith.constant 0 : i32
    %2 = arith.cmpi ne, %1, %c0_i32_0 : i32
    scf.if %2 {
      %cst_99 = arith.constant -1.000000e+30 : f32
      %164 = vector.broadcast %cst_99 : f32 to vector<4x32x1xf32>
      %c0_100 = arith.constant 0 : index
      %c0_101 = arith.constant 0 : index
      %c0_102 = arith.constant 0 : index
      %165 = vector.load %arg8[%c0_100, %c0_101, %c0_102] : memref<4x32x1xf32, #tpu.memory_space<vmem>>, vector<4x32x1xf32>
      tpu.vector_store %arg8[%c0_100, %c0_101, %c0_102], %164 {strides = array<i32>} : memref<4x32x1xf32, #tpu.memory_space<vmem>>, vector<4x32x1xf32>,
      %cst_103 = arith.constant 0.000000e+00 : f32
      %166 = vector.broadcast %cst_103 : f32 to vector<4x32x1xf32>
      %c0_104 = arith.constant 0 : index
      %c0_105 = arith.constant 0 : index
      %c0_106 = arith.constant 0 : index
      %167 = vector.load %arg9[%c0_104, %c0_105, %c0_106] : memref<4x32x1xf32, #tpu.memory_space<vmem>>, vector<4x32x1xf32>
      tpu.vector_store %arg9[%c0_104, %c0_105, %c0_106], %166 {strides = array<i32>} : memref<4x32x1xf32, #tpu.memory_space<vmem>>, vector<4x32x1xf32>,
      %cst_107 = arith.constant 0.000000e+00 : f32
      %168 = vector.broadcast %cst_107 : f32 to vector<4x32x32xf32>
      %c0_108 = arith.constant 0 : index
      %c0_109 = arith.constant 0 : index
      %c0_110 = arith.constant 0 : index
      %169 = vector.load %arg10[%c0_108, %c0_109, %c0_110] : memref<4x32x32xf32, #tpu.memory_space<vmem>>, vector<4x32x32xf32>
      tpu.vector_store %arg10[%c0_108, %c0_109, %c0_110], %168 {strides = array<i32>} : memref<4x32x32xf32, #tpu.memory_space<vmem>>, vector<4x32x32xf32>,
    } else {
    }
    %c0 = arith.constant 0 : index
    %c0_1 = arith.constant 0 : index
    %c0_2 = arith.constant 0 : index
    %3 = vector.load %arg4[%c0, %c0_1, %c0_2] : memref<1x32x128xbf16, #tpu.memory_space<vmem>>, vector<1x32x128xbf16>
    %4 = vector.shape_cast %3 : vector<1x32x128xbf16> to vector<32x128xbf16>
    %c0_3 = arith.constant 0 : index
    %c0_4 = arith.constant 0 : index
    %c0_5 = arith.constant 0 : index
    %5 = vector.load %arg5[%c0_3, %c0_4, %c0_5] : memref<1x32x128xbf16, #tpu.memory_space<vmem>>, vector<1x32x128xbf16>
    %6 = vector.shape_cast %5 : vector<1x32x128xbf16> to vector<32x128xbf16>
    %c0_6 = arith.constant 0 : index
    %c0_7 = arith.constant 0 : index
    %c0_8 = arith.constant 0 : index
    %7 = vector.load %arg6[%c0_6, %c0_7, %c0_8] : memref<1x32x128xbf16, #tpu.memory_space<vmem>>, vector<1x32x128xbf16>
    %8 = vector.shape_cast %7 : vector<1x32x128xbf16> to vector<32x128xbf16>
    %9 = vector.extract_strided_slice %4 {offsets = [0, 0], sizes = [32, 32], strides = [1, 1]} : vector<32x128xbf16> to vector<32x32xbf16>
    %10 = vector.extract_strided_slice %6 {offsets = [0, 0], sizes = [32, 32], strides = [1, 1]} : vector<32x128xbf16> to vector<32x32xbf16>
    %11 = vector.extract_strided_slice %8 {offsets = [0, 0], sizes = [32, 32], strides = [1, 1]} : vector<32x128xbf16> to vector<32x32xbf16>
    %cst = arith.constant dense<0.000000e+00> : vector<32x32xf32>
    %12 = tpu.matmul %9, %10, %cst {dimension_numbers = #tpu.dot_dimension_numbers<[1], [1], [0], [0], [0, 0, 1, 0], [], []>} : vector<32x32xbf16>, vector<32x32xbf16>, vector<32x32xf32> -> vector<32x32xf32>
    %cst_9 = arith.constant 0.176776692 : f32
    %13 = vector.broadcast %cst_9 : f32 to vector<32x32xf32>
    %14 = arith.mulf %12, %13 : vector<32x32xf32>
    %c0_10 = arith.constant 0 : index
    %c0_11 = arith.constant 0 : index
    %c0_12 = arith.constant 0 : index
    %15 = vector.load %arg8[%c0_10, %c0_11, %c0_12] : memref<4x32x1xf32, #tpu.memory_space<vmem>>, vector<1x32x1xf32>
    %16 = vector.shape_cast %15 : vector<1x32x1xf32> to vector<32x1xf32>
    %cst_13 = arith.constant dense<0xFF800000> : vector<32xf32>
    %17 = vector.multi_reduction <maximumf>, %14, %cst_13 [1] : vector<32x32xf32> to vector<32xf32>
    %18 = vector.shape_cast %17 : vector<32xf32> to vector<32x1xf32>
    %19 = arith.maximumf %16, %18 : vector<32x1xf32>
    %20 = arith.subf %16, %19 : vector<32x1xf32>
    %21 = math.exp %20 : vector<32x1xf32>
    %22 = vector.broadcast %19 : vector<32x1xf32> to vector<32x32xf32>
    %23 = arith.subf %14, %22 : vector<32x32xf32>
    %24 = math.exp %23 : vector<32x32xf32>
    %c0_14 = arith.constant 0 : index
    %c0_15 = arith.constant 0 : index
    %c0_16 = arith.constant 0 : index
    %25 = vector.load %arg9[%c0_14, %c0_15, %c0_16] : memref<4x32x1xf32, #tpu.memory_space<vmem>>, vector<1x32x1xf32>
    %26 = vector.shape_cast %25 : vector<1x32x1xf32> to vector<32x1xf32>
    %27 = arith.mulf %21, %26 : vector<32x1xf32>
    %cst_17 = arith.constant dense<0.000000e+00> : vector<32xf32>
    %28 = vector.multi_reduction <add>, %24, %cst_17 [1] : vector<32x32xf32> to vector<32xf32>
    %29 = vector.shape_cast %28 : vector<32xf32> to vector<32x1xf32>
    %30 = arith.addf %27, %29 : vector<32x1xf32>
    %c0_18 = arith.constant 0 : index
    %c0_19 = arith.constant 0 : index
    %c0_20 = arith.constant 0 : index
    %31 = vector.load %arg9[%c0_18, %c0_19, %c0_20] : memref<4x32x1xf32, #tpu.memory_space<vmem>>, vector<1x32x1xf32>
    %32 = vector.shape_cast %31 : vector<1x32x1xf32> to vector<32x1xf32>
    %33 = vector.shape_cast %30 : vector<32x1xf32> to vector<1x32x1xf32>
    tpu.vector_store %arg9[%c0_18, %c0_19, %c0_20], %33 {strides = array<i32>} : memref<4x32x1xf32, #tpu.memory_space<vmem>>, vector<1x32x1xf32>,
    %c0_21 = arith.constant 0 : index
    %c0_22 = arith.constant 0 : index
    %c0_23 = arith.constant 0 : index
    %34 = vector.load %arg10[%c0_21, %c0_22, %c0_23] : memref<4x32x32xf32, #tpu.memory_space<vmem>>, vector<1x32x32xf32>
    %35 = vector.shape_cast %34 : vector<1x32x32xf32> to vector<32x32xf32>
    %36 = vector.broadcast %21 : vector<32x1xf32> to vector<32x32xf32>
    %37 = arith.mulf %36, %35 : vector<32x32xf32>
    %38 = arith.truncf %24 : vector<32x32xf32> to vector<32x32xbf16>
    %cst_24 = arith.constant dense<0.000000e+00> : vector<32x32xf32>
    %39 = tpu.matmul %38, %11, %cst_24 {dimension_numbers = #tpu.dot_dimension_numbers<[1], [0], [0], [1], [0, 0, 1, 1], [], []>} : vector<32x32xbf16>, vector<32x32xbf16>, vector<32x32xf32> -> vector<32x32xf32>
    %40 = arith.addf %37, %39 : vector<32x32xf32>
    %c0_25 = arith.constant 0 : index
    %c0_26 = arith.constant 0 : index
    %c0_27 = arith.constant 0 : index
    %41 = vector.load %arg10[%c0_25, %c0_26, %c0_27] : memref<4x32x32xf32, #tpu.memory_space<vmem>>, vector<1x32x32xf32>
    %42 = vector.shape_cast %41 : vector<1x32x32xf32> to vector<32x32xf32>
    %43 = vector.shape_cast %40 : vector<32x32xf32> to vector<1x32x32xf32>
    tpu.vector_store %arg10[%c0_25, %c0_26, %c0_27], %43 {strides = array<i32>} : memref<4x32x32xf32, #tpu.memory_space<vmem>>, vector<1x32x32xf32>,
    %c0_28 = arith.constant 0 : index
    %c0_29 = arith.constant 0 : index
    %c0_30 = arith.constant 0 : index
    %44 = vector.load %arg8[%c0_28, %c0_29, %c0_30] : memref<4x32x1xf32, #tpu.memory_space<vmem>>, vector<1x32x1xf32>
    %45 = vector.shape_cast %44 : vector<1x32x1xf32> to vector<32x1xf32>
    %46 = vector.shape_cast %19 : vector<32x1xf32> to vector<1x32x1xf32>
    tpu.vector_store %arg8[%c0_28, %c0_29, %c0_30], %46 {strides = array<i32>} : memref<4x32x1xf32, #tpu.memory_space<vmem>>, vector<1x32x1xf32>,
    %47 = vector.extract_strided_slice %4 {offsets = [0, 32], sizes = [32, 32], strides = [1, 1]} : vector<32x128xbf16> to vector<32x32xbf16>
    %48 = vector.extract_strided_slice %6 {offsets = [0, 32], sizes = [32, 32], strides = [1, 1]} : vector<32x128xbf16> to vector<32x32xbf16>
    %49 = vector.extract_strided_slice %8 {offsets = [0, 32], sizes = [32, 32], strides = [1, 1]} : vector<32x128xbf16> to vector<32x32xbf16>
    %cst_31 = arith.constant dense<0.000000e+00> : vector<32x32xf32>
    %50 = tpu.matmul %47, %48, %cst_31 {dimension_numbers = #tpu.dot_dimension_numbers<[1], [1], [0], [0], [0, 0, 1, 0], [], []>} : vector<32x32xbf16>, vector<32x32xbf16>, vector<32x32xf32> -> vector<32x32xf32>
    %cst_32 = arith.constant 0.176776692 : f32
    %51 = vector.broadcast %cst_32 : f32 to vector<32x32xf32>
    %52 = arith.mulf %50, %51 : vector<32x32xf32>
    %c1 = arith.constant 1 : index
    %c0_33 = arith.constant 0 : index
    %c0_34 = arith.constant 0 : index
    %53 = vector.load %arg8[%c1, %c0_33, %c0_34] : memref<4x32x1xf32, #tpu.memory_space<vmem>>, vector<1x32x1xf32>
    %54 = vector.shape_cast %53 : vector<1x32x1xf32> to vector<32x1xf32>
    %cst_35 = arith.constant dense<0xFF800000> : vector<32xf32>
    %55 = vector.multi_reduction <maximumf>, %52, %cst_35 [1] : vector<32x32xf32> to vector<32xf32>
    %56 = vector.shape_cast %55 : vector<32xf32> to vector<32x1xf32>
    %57 = arith.maximumf %54, %56 : vector<32x1xf32>
    %58 = arith.subf %54, %57 : vector<32x1xf32>
    %59 = math.exp %58 : vector<32x1xf32>
    %60 = vector.broadcast %57 : vector<32x1xf32> to vector<32x32xf32>
    %61 = arith.subf %52, %60 : vector<32x32xf32>
    %62 = math.exp %61 : vector<32x32xf32>
    %c1_36 = arith.constant 1 : index
    %c0_37 = arith.constant 0 : index
    %c0_38 = arith.constant 0 : index
    %63 = vector.load %arg9[%c1_36, %c0_37, %c0_38] : memref<4x32x1xf32, #tpu.memory_space<vmem>>, vector<1x32x1xf32>
    %64 = vector.shape_cast %63 : vector<1x32x1xf32> to vector<32x1xf32>
    %65 = arith.mulf %59, %64 : vector<32x1xf32>
    %cst_39 = arith.constant dense<0.000000e+00> : vector<32xf32>
    %66 = vector.multi_reduction <add>, %62, %cst_39 [1] : vector<32x32xf32> to vector<32xf32>
    %67 = vector.shape_cast %66 : vector<32xf32> to vector<32x1xf32>
    %68 = arith.addf %65, %67 : vector<32x1xf32>
    %c1_40 = arith.constant 1 : index
    %c0_41 = arith.constant 0 : index
    %c0_42 = arith.constant 0 : index
    %69 = vector.load %arg9[%c1_40, %c0_41, %c0_42] : memref<4x32x1xf32, #tpu.memory_space<vmem>>, vector<1x32x1xf32>
    %70 = vector.shape_cast %69 : vector<1x32x1xf32> to vector<32x1xf32>
    %71 = vector.shape_cast %68 : vector<32x1xf32> to vector<1x32x1xf32>
    tpu.vector_store %arg9[%c1_40, %c0_41, %c0_42], %71 {strides = array<i32>} : memref<4x32x1xf32, #tpu.memory_space<vmem>>, vector<1x32x1xf32>,
    %c1_43 = arith.constant 1 : index
    %c0_44 = arith.constant 0 : index
    %c0_45 = arith.constant 0 : index
    %72 = vector.load %arg10[%c1_43, %c0_44, %c0_45] : memref<4x32x32xf32, #tpu.memory_space<vmem>>, vector<1x32x32xf32>
    %73 = vector.shape_cast %72 : vector<1x32x32xf32> to vector<32x32xf32>
    %74 = vector.broadcast %59 : vector<32x1xf32> to vector<32x32xf32>
    %75 = arith.mulf %74, %73 : vector<32x32xf32>
    %76 = arith.truncf %62 : vector<32x32xf32> to vector<32x32xbf16>
    %cst_46 = arith.constant dense<0.000000e+00> : vector<32x32xf32>
    %77 = tpu.matmul %76, %49, %cst_46 {dimension_numbers = #tpu.dot_dimension_numbers<[1], [0], [0], [1], [0, 0, 1, 1], [], []>} : vector<32x32xbf16>, vector<32x32xbf16>, vector<32x32xf32> -> vector<32x32xf32>
    %78 = arith.addf %75, %77 : vector<32x32xf32>
    %c1_47 = arith.constant 1 : index
    %c0_48 = arith.constant 0 : index
    %c0_49 = arith.constant 0 : index
    %79 = vector.load %arg10[%c1_47, %c0_48, %c0_49] : memref<4x32x32xf32, #tpu.memory_space<vmem>>, vector<1x32x32xf32>
    %80 = vector.shape_cast %79 : vector<1x32x32xf32> to vector<32x32xf32>
    %81 = vector.shape_cast %78 : vector<32x32xf32> to vector<1x32x32xf32>
    tpu.vector_store %arg10[%c1_47, %c0_48, %c0_49], %81 {strides = array<i32>} : memref<4x32x32xf32, #tpu.memory_space<vmem>>, vector<1x32x32xf32>,
    %c1_50 = arith.constant 1 : index
    %c0_51 = arith.constant 0 : index
    %c0_52 = arith.constant 0 : index
    %82 = vector.load %arg8[%c1_50, %c0_51, %c0_52] : memref<4x32x1xf32, #tpu.memory_space<vmem>>, vector<1x32x1xf32>
    %83 = vector.shape_cast %82 : vector<1x32x1xf32> to vector<32x1xf32>
    %84 = vector.shape_cast %57 : vector<32x1xf32> to vector<1x32x1xf32>
    tpu.vector_store %arg8[%c1_50, %c0_51, %c0_52], %84 {strides = array<i32>} : memref<4x32x1xf32, #tpu.memory_space<vmem>>, vector<1x32x1xf32>,
    %85 = vector.extract_strided_slice %4 {offsets = [0, 64], sizes = [32, 32], strides = [1, 1]} : vector<32x128xbf16> to vector<32x32xbf16>
    %86 = vector.extract_strided_slice %6 {offsets = [0, 64], sizes = [32, 32], strides = [1, 1]} : vector<32x128xbf16> to vector<32x32xbf16>
    %87 = vector.extract_strided_slice %8 {offsets = [0, 64], sizes = [32, 32], strides = [1, 1]} : vector<32x128xbf16> to vector<32x32xbf16>
    %cst_53 = arith.constant dense<0.000000e+00> : vector<32x32xf32>
    %88 = tpu.matmul %85, %86, %cst_53 {dimension_numbers = #tpu.dot_dimension_numbers<[1], [1], [0], [0], [0, 0, 1, 0], [], []>} : vector<32x32xbf16>, vector<32x32xbf16>, vector<32x32xf32> -> vector<32x32xf32>
    %cst_54 = arith.constant 0.176776692 : f32
    %89 = vector.broadcast %cst_54 : f32 to vector<32x32xf32>
    %90 = arith.mulf %88, %89 : vector<32x32xf32>
    %c2 = arith.constant 2 : index
    %c0_55 = arith.constant 0 : index
    %c0_56 = arith.constant 0 : index
    %91 = vector.load %arg8[%c2, %c0_55, %c0_56] : memref<4x32x1xf32, #tpu.memory_space<vmem>>, vector<1x32x1xf32>
    %92 = vector.shape_cast %91 : vector<1x32x1xf32> to vector<32x1xf32>
    %cst_57 = arith.constant dense<0xFF800000> : vector<32xf32>
    %93 = vector.multi_reduction <maximumf>, %90, %cst_57 [1] : vector<32x32xf32> to vector<32xf32>
    %94 = vector.shape_cast %93 : vector<32xf32> to vector<32x1xf32>
    %95 = arith.maximumf %92, %94 : vector<32x1xf32>
    %96 = arith.subf %92, %95 : vector<32x1xf32>
    %97 = math.exp %96 : vector<32x1xf32>
    %98 = vector.broadcast %95 : vector<32x1xf32> to vector<32x32xf32>
    %99 = arith.subf %90, %98 : vector<32x32xf32>
    %100 = math.exp %99 : vector<32x32xf32>
    %c2_58 = arith.constant 2 : index
    %c0_59 = arith.constant 0 : index
    %c0_60 = arith.constant 0 : index
    %101 = vector.load %arg9[%c2_58, %c0_59, %c0_60] : memref<4x32x1xf32, #tpu.memory_space<vmem>>, vector<1x32x1xf32>
    %102 = vector.shape_cast %101 : vector<1x32x1xf32> to vector<32x1xf32>
    %103 = arith.mulf %97, %102 : vector<32x1xf32>
    %cst_61 = arith.constant dense<0.000000e+00> : vector<32xf32>
    %104 = vector.multi_reduction <add>, %100, %cst_61 [1] : vector<32x32xf32> to vector<32xf32>
    %105 = vector.shape_cast %104 : vector<32xf32> to vector<32x1xf32>
    %106 = arith.addf %103, %105 : vector<32x1xf32>
    %c2_62 = arith.constant 2 : index
    %c0_63 = arith.constant 0 : index
    %c0_64 = arith.constant 0 : index
    %107 = vector.load %arg9[%c2_62, %c0_63, %c0_64] : memref<4x32x1xf32, #tpu.memory_space<vmem>>, vector<1x32x1xf32>
    %108 = vector.shape_cast %107 : vector<1x32x1xf32> to vector<32x1xf32>
    %109 = vector.shape_cast %106 : vector<32x1xf32> to vector<1x32x1xf32>
    tpu.vector_store %arg9[%c2_62, %c0_63, %c0_64], %109 {strides = array<i32>} : memref<4x32x1xf32, #tpu.memory_space<vmem>>, vector<1x32x1xf32>,
    %c2_65 = arith.constant 2 : index
    %c0_66 = arith.constant 0 : index
    %c0_67 = arith.constant 0 : index
    %110 = vector.load %arg10[%c2_65, %c0_66, %c0_67] : memref<4x32x32xf32, #tpu.memory_space<vmem>>, vector<1x32x32xf32>
    %111 = vector.shape_cast %110 : vector<1x32x32xf32> to vector<32x32xf32>
    %112 = vector.broadcast %97 : vector<32x1xf32> to vector<32x32xf32>
    %113 = arith.mulf %112, %111 : vector<32x32xf32>
    %114 = arith.truncf %100 : vector<32x32xf32> to vector<32x32xbf16>
    %cst_68 = arith.constant dense<0.000000e+00> : vector<32x32xf32>
    %115 = tpu.matmul %114, %87, %cst_68 {dimension_numbers = #tpu.dot_dimension_numbers<[1], [0], [0], [1], [0, 0, 1, 1], [], []>} : vector<32x32xbf16>, vector<32x32xbf16>, vector<32x32xf32> -> vector<32x32xf32>
    %116 = arith.addf %113, %115 : vector<32x32xf32>
    %c2_69 = arith.constant 2 : index
    %c0_70 = arith.constant 0 : index
    %c0_71 = arith.constant 0 : index
    %117 = vector.load %arg10[%c2_69, %c0_70, %c0_71] : memref<4x32x32xf32, #tpu.memory_space<vmem>>, vector<1x32x32xf32>
    %118 = vector.shape_cast %117 : vector<1x32x32xf32> to vector<32x32xf32>
    %119 = vector.shape_cast %116 : vector<32x32xf32> to vector<1x32x32xf32>
    tpu.vector_store %arg10[%c2_69, %c0_70, %c0_71], %119 {strides = array<i32>} : memref<4x32x32xf32, #tpu.memory_space<vmem>>, vector<1x32x32xf32>,
    %c2_72 = arith.constant 2 : index
    %c0_73 = arith.constant 0 : index
    %c0_74 = arith.constant 0 : index
    %120 = vector.load %arg8[%c2_72, %c0_73, %c0_74] : memref<4x32x1xf32, #tpu.memory_space<vmem>>, vector<1x32x1xf32>
    %121 = vector.shape_cast %120 : vector<1x32x1xf32> to vector<32x1xf32>
    %122 = vector.shape_cast %95 : vector<32x1xf32> to vector<1x32x1xf32>
    tpu.vector_store %arg8[%c2_72, %c0_73, %c0_74], %122 {strides = array<i32>} : memref<4x32x1xf32, #tpu.memory_space<vmem>>, vector<1x32x1xf32>,
    %123 = vector.extract_strided_slice %4 {offsets = [0, 96], sizes = [32, 32], strides = [1, 1]} : vector<32x128xbf16> to vector<32x32xbf16>
    %124 = vector.extract_strided_slice %6 {offsets = [0, 96], sizes = [32, 32], strides = [1, 1]} : vector<32x128xbf16> to vector<32x32xbf16>
    %125 = vector.extract_strided_slice %8 {offsets = [0, 96], sizes = [32, 32], strides = [1, 1]} : vector<32x128xbf16> to vector<32x32xbf16>
    %cst_75 = arith.constant dense<0.000000e+00> : vector<32x32xf32>
    %126 = tpu.matmul %123, %124, %cst_75 {dimension_numbers = #tpu.dot_dimension_numbers<[1], [1], [0], [0], [0, 0, 1, 0], [], []>} : vector<32x32xbf16>, vector<32x32xbf16>, vector<32x32xf32> -> vector<32x32xf32>
    %cst_76 = arith.constant 0.176776692 : f32
    %127 = vector.broadcast %cst_76 : f32 to vector<32x32xf32>
    %128 = arith.mulf %126, %127 : vector<32x32xf32>
    %c3 = arith.constant 3 : index
    %c0_77 = arith.constant 0 : index
    %c0_78 = arith.constant 0 : index
    %129 = vector.load %arg8[%c3, %c0_77, %c0_78] : memref<4x32x1xf32, #tpu.memory_space<vmem>>, vector<1x32x1xf32>
    %130 = vector.shape_cast %129 : vector<1x32x1xf32> to vector<32x1xf32>
    %cst_79 = arith.constant dense<0xFF800000> : vector<32xf32>
    %131 = vector.multi_reduction <maximumf>, %128, %cst_79 [1] : vector<32x32xf32> to vector<32xf32>
    %132 = vector.shape_cast %131 : vector<32xf32> to vector<32x1xf32>
    %133 = arith.maximumf %130, %132 : vector<32x1xf32>
    %134 = arith.subf %130, %133 : vector<32x1xf32>
    %135 = math.exp %134 : vector<32x1xf32>
    %136 = vector.broadcast %133 : vector<32x1xf32> to vector<32x32xf32>
    %137 = arith.subf %128, %136 : vector<32x32xf32>
    %138 = math.exp %137 : vector<32x32xf32>
    %c3_80 = arith.constant 3 : index
    %c0_81 = arith.constant 0 : index
    %c0_82 = arith.constant 0 : index
    %139 = vector.load %arg9[%c3_80, %c0_81, %c0_82] : memref<4x32x1xf32, #tpu.memory_space<vmem>>, vector<1x32x1xf32>
    %140 = vector.shape_cast %139 : vector<1x32x1xf32> to vector<32x1xf32>
    %141 = arith.mulf %135, %140 : vector<32x1xf32>
    %cst_83 = arith.constant dense<0.000000e+00> : vector<32xf32>
    %142 = vector.multi_reduction <add>, %138, %cst_83 [1] : vector<32x32xf32> to vector<32xf32>
    %143 = vector.shape_cast %142 : vector<32xf32> to vector<32x1xf32>
    %144 = arith.addf %141, %143 : vector<32x1xf32>
    %c3_84 = arith.constant 3 : index
    %c0_85 = arith.constant 0 : index
    %c0_86 = arith.constant 0 : index
    %145 = vector.load %arg9[%c3_84, %c0_85, %c0_86] : memref<4x32x1xf32, #tpu.memory_space<vmem>>, vector<1x32x1xf32>
    %146 = vector.shape_cast %145 : vector<1x32x1xf32> to vector<32x1xf32>
    %147 = vector.shape_cast %144 : vector<32x1xf32> to vector<1x32x1xf32>
    tpu.vector_store %arg9[%c3_84, %c0_85, %c0_86], %147 {strides = array<i32>} : memref<4x32x1xf32, #tpu.memory_space<vmem>>, vector<1x32x1xf32>,
    %c3_87 = arith.constant 3 : index
    %c0_88 = arith.constant 0 : index
    %c0_89 = arith.constant 0 : index
    %148 = vector.load %arg10[%c3_87, %c0_88, %c0_89] : memref<4x32x32xf32, #tpu.memory_space<vmem>>, vector<1x32x32xf32>
    %149 = vector.shape_cast %148 : vector<1x32x32xf32> to vector<32x32xf32>
    %150 = vector.broadcast %135 : vector<32x1xf32> to vector<32x32xf32>
    %151 = arith.mulf %150, %149 : vector<32x32xf32>
    %152 = arith.truncf %138 : vector<32x32xf32> to vector<32x32xbf16>
    %cst_90 = arith.constant dense<0.000000e+00> : vector<32x32xf32>
    %153 = tpu.matmul %152, %125, %cst_90 {dimension_numbers = #tpu.dot_dimension_numbers<[1], [0], [0], [1], [0, 0, 1, 1], [], []>} : vector<32x32xbf16>, vector<32x32xbf16>, vector<32x32xf32> -> vector<32x32xf32>
    %154 = arith.addf %151, %153 : vector<32x32xf32>
    %c3_91 = arith.constant 3 : index
    %c0_92 = arith.constant 0 : index
    %c0_93 = arith.constant 0 : index
    %155 = vector.load %arg10[%c3_91, %c0_92, %c0_93] : memref<4x32x32xf32, #tpu.memory_space<vmem>>, vector<1x32x32xf32>
    %156 = vector.shape_cast %155 : vector<1x32x32xf32> to vector<32x32xf32>
    %157 = vector.shape_cast %154 : vector<32x32xf32> to vector<1x32x32xf32>
    tpu.vector_store %arg10[%c3_91, %c0_92, %c0_93], %157 {strides = array<i32>} : memref<4x32x32xf32, #tpu.memory_space<vmem>>, vector<1x32x32xf32>,
    %c3_94 = arith.constant 3 : index
    %c0_95 = arith.constant 0 : index
    %c0_96 = arith.constant 0 : index
    %158 = vector.load %arg8[%c3_94, %c0_95, %c0_96] : memref<4x32x1xf32, #tpu.memory_space<vmem>>, vector<1x32x1xf32>
    %159 = vector.shape_cast %158 : vector<1x32x1xf32> to vector<32x1xf32>
    %160 = vector.shape_cast %133 : vector<32x1xf32> to vector<1x32x1xf32>
    tpu.vector_store %arg8[%c3_94, %c0_95, %c0_96], %160 {strides = array<i32>} : memref<4x32x1xf32, #tpu.memory_space<vmem>>, vector<1x32x1xf32>,
    %c0_i32_97 = arith.constant 0 : i32
    %161 = arith.cmpi eq, %arg3, %c0_i32_97 : i32
    %162 = arith.extui %161 : i1 to i32
    %c0_i32_98 = arith.constant 0 : i32
    %163 = arith.cmpi ne, %162, %c0_i32_98 : i32
    scf.if %163 {
      %c0_99 = arith.constant 0 : index
      %c0_100 = arith.constant 0 : index
      %c0_101 = arith.constant 0 : index
      %164 = vector.load %arg9[%c0_99, %c0_100, %c0_101] : memref<4x32x1xf32, #tpu.memory_space<vmem>>, vector<1x32x1xf32>
      %165 = vector.shape_cast %164 : vector<1x32x1xf32> to vector<32x1xf32>
      %166 = tpu.reciprocal %165 {approx = true} : vector<32x1xf32> -> vector<32x1xf32>
      %c0_102 = arith.constant 0 : index
      %c0_103 = arith.constant 0 : index
      %c0_104 = arith.constant 0 : index
      %167 = vector.load %arg10[%c0_102, %c0_103, %c0_104] : memref<4x32x32xf32, #tpu.memory_space<vmem>>, vector<1x32x32xf32>
      %168 = vector.shape_cast %167 : vector<1x32x32xf32> to vector<32x32xf32>
      %169 = vector.broadcast %166 : vector<32x1xf32> to vector<32x32xf32>
      %170 = arith.mulf %168, %169 : vector<32x32xf32>
      %c1_105 = arith.constant 1 : index
      %c0_106 = arith.constant 0 : index
      %c0_107 = arith.constant 0 : index
      %171 = vector.load %arg9[%c1_105, %c0_106, %c0_107] : memref<4x32x1xf32, #tpu.memory_space<vmem>>, vector<1x32x1xf32>
      %172 = vector.shape_cast %171 : vector<1x32x1xf32> to vector<32x1xf32>
      %173 = tpu.reciprocal %172 {approx = true} : vector<32x1xf32> -> vector<32x1xf32>
      %c1_108 = arith.constant 1 : index
      %c0_109 = arith.constant 0 : index
      %c0_110 = arith.constant 0 : index
      %174 = vector.load %arg10[%c1_108, %c0_109, %c0_110] : memref<4x32x32xf32, #tpu.memory_space<vmem>>, vector<1x32x32xf32>
      %175 = vector.shape_cast %174 : vector<1x32x32xf32> to vector<32x32xf32>
      %176 = vector.broadcast %173 : vector<32x1xf32> to vector<32x32xf32>
      %177 = arith.mulf %175, %176 : vector<32x32xf32>
      %c2_111 = arith.constant 2 : index
      %c0_112 = arith.constant 0 : index
      %c0_113 = arith.constant 0 : index
      %178 = vector.load %arg9[%c2_111, %c0_112, %c0_113] : memref<4x32x1xf32, #tpu.memory_space<vmem>>, vector<1x32x1xf32>
      %179 = vector.shape_cast %178 : vector<1x32x1xf32> to vector<32x1xf32>
      %180 = tpu.reciprocal %179 {approx = true} : vector<32x1xf32> -> vector<32x1xf32>
      %c2_114 = arith.constant 2 : index
      %c0_115 = arith.constant 0 : index
      %c0_116 = arith.constant 0 : index
      %181 = vector.load %arg10[%c2_114, %c0_115, %c0_116] : memref<4x32x32xf32, #tpu.memory_space<vmem>>, vector<1x32x32xf32>
      %182 = vector.shape_cast %181 : vector<1x32x32xf32> to vector<32x32xf32>
      %183 = vector.broadcast %180 : vector<32x1xf32> to vector<32x32xf32>
      %184 = arith.mulf %182, %183 : vector<32x32xf32>
      %c3_117 = arith.constant 3 : index
      %c0_118 = arith.constant 0 : index
      %c0_119 = arith.constant 0 : index
      %185 = vector.load %arg9[%c3_117, %c0_118, %c0_119] : memref<4x32x1xf32, #tpu.memory_space<vmem>>, vector<1x32x1xf32>
      %186 = vector.shape_cast %185 : vector<1x32x1xf32> to vector<32x1xf32>
      %187 = tpu.reciprocal %186 {approx = true} : vector<32x1xf32> -> vector<32x1xf32>
      %c3_120 = arith.constant 3 : index
      %c0_121 = arith.constant 0 : index
      %c0_122 = arith.constant 0 : index
      %188 = vector.load %arg10[%c3_120, %c0_121, %c0_122] : memref<4x32x32xf32, #tpu.memory_space<vmem>>, vector<1x32x32xf32>
      %189 = vector.shape_cast %188 : vector<1x32x32xf32> to vector<32x32xf32>
      %190 = vector.broadcast %187 : vector<32x1xf32> to vector<32x32xf32>
      %191 = arith.mulf %189, %190 : vector<32x32xf32>
      %192 = tpu.concatenate %170, %177, %184, %191 in 1 : vector<32x32xf32>, vector<32x32xf32>, vector<32x32xf32>, vector<32x32xf32> -> vector<32x128xf32>
      %193 = arith.truncf %192 : vector<32x128xf32> to vector<32x128xbf16>
      %c0_123 = arith.constant 0 : index
      %c0_124 = arith.constant 0 : index
      %c0_125 = arith.constant 0 : index
      %194 = vector.load %arg7[%c0_123, %c0_124, %c0_125] : memref<1x32x128xbf16, #tpu.memory_space<vmem>>, vector<1x32x128xbf16>
      %195 = vector.shape_cast %194 : vector<1x32x128xbf16> to vector<32x128xbf16>
      %196 = vector.shape_cast %193 : vector<32x128xbf16> to vector<1x32x128xbf16>
      tpu.vector_store %arg7[%c0_123, %c0_124, %c0_125], %196 {strides = array<i32>} : memref<1x32x128xbf16, #tpu.memory_space<vmem>>, vector<1x32x128xbf16>,
    } else {
    }
    return
  }
  func.func @transform_0(%arg0: i32, %arg1: i32, %arg2: i32, %arg3: i32) -> (i32, i32, i32) {
    %c0_i32 = arith.constant 0 : i32
    return %arg0, %arg2, %arg1 : i32, i32, i32
  }
  func.func @transform_1(%arg0: i32, %arg1: i32, %arg2: i32, %arg3: i32) -> (i32, i32, i32) {
    %c1_i32 = arith.constant 1 : i32
    %0 = arith.addi %c1_i32, %arg1 : i32
    %c0_i32 = arith.constant 0 : i32
    return %arg0, %arg3, %0 : i32, i32, i32
  }
  func.func @transform_2(%arg0: i32, %arg1: i32, %arg2: i32, %arg3: i32) -> (i32, i32, i32) {
    %c2_i32 = arith.constant 2 : i32
    %0 = arith.addi %c2_i32, %arg1 : i32
    %c0_i32 = arith.constant 0 : i32
    return %arg0, %arg3, %0 : i32, i32, i32
  }
  func.func @transform_3(%arg0: i32, %arg1: i32, %arg2: i32, %arg3: i32) -> (i32, i32, i32) {
    %c0_i32 = arith.constant 0 : i32
    return %arg0, %arg2, %arg1 : i32, i32, i32
  }
}

module attributes {stable_mosaic.version = 11 : i64} {
  func.func @_fused_linear_kernel(%arg0: i32, %arg1: i32, %arg2: i32, %arg3: memref<64x256xbf16, #tpu.memory_space<vmem>>, %arg4: memref<256x128xbf16, #tpu.memory_space<vmem>>, %arg5: memref<1x128xf32, #tpu.memory_space<vmem>>, %arg6: memref<64x128xf32, #tpu.memory_space<vmem>>, %arg7: memref<64x128xf32, #tpu.memory_space<vmem>>, %arg8: memref<64x128xf32, #tpu.memory_space<vmem>>) attributes {dimension_semantics = [#tpu.dimension_semantics<parallel>, #tpu.dimension_semantics<arbitrary>, #tpu.dimension_semantics<arbitrary>], iteration_bounds = array<i64: 1, 1, 1>, scalar_prefetch = 0 : i64, scratch_operands = 1 : i64, tpu.core_type = #tpu.core_type<tc>, window_params = [{transform_indices = @transform_0, window_bounds = array<i64: 64, 256>}, {transform_indices = @transform_1, window_bounds = array<i64: 256, 128>}, {transform_indices = @transform_2, window_bounds = array<i64: 1, 128>}, {transform_indices = @transform_3, window_bounds = array<i64: 64, 128>}, {transform_indices = @transform_4, window_bounds = array<i64: 64, 128>}]} {
    %c0_i32 = arith.constant 0 : i32
    %0 = arith.cmpi eq, %arg2, %c0_i32 : i32
    %1 = arith.extui %0 : i1 to i32
    %c0_i32_0 = arith.constant 0 : i32
    %2 = arith.cmpi ne, %1, %c0_i32_0 : i32
    scf.if %2 {
      %cst_9 = arith.constant 0.000000e+00 : f32
      %15 = vector.broadcast %cst_9 : f32 to vector<64x128xf32>
      %c0_10 = arith.constant 0 : index
      %c0_11 = arith.constant 0 : index
      %16 = vector.load %arg8[%c0_10, %c0_11] : memref<64x128xf32, #tpu.memory_space<vmem>>, vector<64x128xf32>
      tpu.vector_store %arg8[%c0_10, %c0_11], %15 {strides = array<i32>} : memref<64x128xf32, #tpu.memory_space<vmem>>, vector<64x128xf32>,
    } else {
    }
    %c256_i32 = arith.constant 256 : i32
    %3 = arith.muli %arg2, %c256_i32 : i32
    %4 = tpu.assume_multiple %3, 128 : i32
    %c0 = arith.constant 0 : index
    %5 = arith.index_cast %4 : i32 to index
    %6 = vector.load %arg3[%c0, %5] : memref<64x256xbf16, #tpu.memory_space<vmem>>, vector<64x256xbf16>
    %c0_1 = arith.constant 0 : index
    %c0_2 = arith.constant 0 : index
    %7 = vector.load %arg8[%c0_1, %c0_2] : memref<64x128xf32, #tpu.memory_space<vmem>>, vector<64x128xf32>
    %c0_3 = arith.constant 0 : index
    %c0_4 = arith.constant 0 : index
    %8 = vector.load %arg4[%c0_3, %c0_4] : memref<256x128xbf16, #tpu.memory_space<vmem>>, vector<256x128xbf16>
    %cst = arith.constant dense<0.000000e+00> : vector<64x128xf32>
    %9 = tpu.matmul %6, %8, %cst {dimension_numbers = #tpu.dot_dimension_numbers<[1], [0], [0], [1], [0, 0, 1, 1], [], []>} : vector<64x256xbf16>, vector<256x128xbf16>, vector<64x128xf32> -> vector<64x128xf32>
    %10 = arith.addf %7, %9 : vector<64x128xf32>
    %c0_5 = arith.constant 0 : index
    %c0_6 = arith.constant 0 : index
    %11 = vector.load %arg8[%c0_5, %c0_6] : memref<64x128xf32, #tpu.memory_space<vmem>>, vector<64x128xf32>
    tpu.vector_store %arg8[%c0_5, %c0_6], %10 {strides = array<i32>} : memref<64x128xf32, #tpu.memory_space<vmem>>, vector<64x128xf32>,
    %c0_i32_7 = arith.constant 0 : i32
    %12 = arith.cmpi eq, %arg2, %c0_i32_7 : i32
    %13 = arith.extui %12 : i1 to i32
    %c0_i32_8 = arith.constant 0 : i32
    %14 = arith.cmpi ne, %13, %c0_i32_8 : i32
    scf.if %14 {
      %c0_9 = arith.constant 0 : index
      %c0_10 = arith.constant 0 : index
      %15 = vector.load %arg8[%c0_9, %c0_10] : memref<64x128xf32, #tpu.memory_space<vmem>>, vector<64x128xf32>
      %c0_11 = arith.constant 0 : index
      %c0_12 = arith.constant 0 : index
      %16 = vector.load %arg5[%c0_11, %c0_12] : memref<1x128xf32, #tpu.memory_space<vmem>>, vector<1x128xf32>
      %17 = vector.broadcast %16 : vector<1x128xf32> to vector<64x128xf32>
      %18 = arith.addf %15, %17 : vector<64x128xf32>
      %c0_13 = arith.constant 0 : index
      %c0_14 = arith.constant 0 : index
      %19 = vector.load %arg6[%c0_13, %c0_14] : memref<64x128xf32, #tpu.memory_space<vmem>>, vector<64x128xf32>
      %20 = arith.addf %18, %19 : vector<64x128xf32>
      %c0_15 = arith.constant 0 : index
      %c0_16 = arith.constant 0 : index
      %21 = vector.load %arg7[%c0_15, %c0_16] : memref<64x128xf32, #tpu.memory_space<vmem>>, vector<64x128xf32>
      tpu.vector_store %arg7[%c0_15, %c0_16], %20 {strides = array<i32>} : memref<64x128xf32, #tpu.memory_space<vmem>>, vector<64x128xf32>,
    } else {
    }
    return
  }
  func.func @transform_0(%arg0: i32, %arg1: i32, %arg2: i32) -> (i32, i32) {
    %c0_i32 = arith.constant 0 : i32
    %c0_i32_0 = arith.constant 0 : i32
    return %arg0, %c0_i32 : i32, i32
  }
  func.func @transform_1(%arg0: i32, %arg1: i32, %arg2: i32) -> (i32, i32) {
    %c0_i32 = arith.constant 0 : i32
    return %arg2, %arg1 : i32, i32
  }
  func.func @transform_2(%arg0: i32, %arg1: i32, %arg2: i32) -> (i32, i32) {
    %c0_i32 = arith.constant 0 : i32
    %c0_i32_0 = arith.constant 0 : i32
    return %c0_i32, %arg1 : i32, i32
  }
  func.func @transform_3(%arg0: i32, %arg1: i32, %arg2: i32) -> (i32, i32) {
    %c0_i32 = arith.constant 0 : i32
    return %arg0, %arg1 : i32, i32
  }
  func.func @transform_4(%arg0: i32, %arg1: i32, %arg2: i32) -> (i32, i32) {
    %c0_i32 = arith.constant 0 : i32
    return %arg0, %arg1 : i32, i32
  }
}

module attributes {stable_mosaic.version = 11 : i64} {
  func.func @_layernorm_kernel(%arg0: i32, %arg1: memref<64x128xf32, #tpu.memory_space<vmem>>, %arg2: memref<1x128xf32, #tpu.memory_space<vmem>>, %arg3: memref<1x128xf32, #tpu.memory_space<vmem>>, %arg4: memref<64x128xf32, #tpu.memory_space<vmem>>) attributes {dimension_semantics = [#tpu.dimension_semantics<parallel>], iteration_bounds = array<i64: 1>, scalar_prefetch = 0 : i64, scratch_operands = 0 : i64, tpu.core_type = #tpu.core_type<tc>, window_params = [{transform_indices = @transform_0, window_bounds = array<i64: 64, 128>}, {pipeline_mode = #tpu.pipeline_mode<synchronous>, transform_indices = @transform_1, window_bounds = array<i64: 1, 128>}, {pipeline_mode = #tpu.pipeline_mode<synchronous>, transform_indices = @transform_2, window_bounds = array<i64: 1, 128>}, {transform_indices = @transform_3, window_bounds = array<i64: 64, 128>}]} {
    %c0 = arith.constant 0 : index
    %c0_0 = arith.constant 0 : index
    %0 = vector.load %arg1[%c0, %c0_0] : memref<64x128xf32, #tpu.memory_space<vmem>>, vector<64x128xf32>
    %cst = arith.constant dense<0.000000e+00> : vector<64xf32>
    %1 = vector.multi_reduction <add>, %0, %cst [1] : vector<64x128xf32> to vector<64xf32>
    %2 = vector.shape_cast %1 : vector<64xf32> to vector<64x1xf32>
    %cst_1 = arith.constant 7.812500e-03 : f32
    %3 = vector.broadcast %cst_1 : f32 to vector<64x1xf32>
    %4 = arith.mulf %2, %3 : vector<64x1xf32>
    %5 = arith.mulf %0, %0 : vector<64x128xf32>
    %cst_2 = arith.constant dense<0.000000e+00> : vector<64xf32>
    %6 = vector.multi_reduction <add>, %5, %cst_2 [1] : vector<64x128xf32> to vector<64xf32>
    %7 = vector.shape_cast %6 : vector<64xf32> to vector<64x1xf32>
    %cst_3 = arith.constant 7.812500e-03 : f32
    %8 = vector.broadcast %cst_3 : f32 to vector<64x1xf32>
    %9 = arith.mulf %7, %8 : vector<64x1xf32>
    %10 = arith.mulf %4, %4 : vector<64x1xf32>
    %11 = arith.subf %9, %10 : vector<64x1xf32>
    %cst_4 = arith.constant 9.99999997E-7 : f32
    %12 = vector.broadcast %cst_4 : f32 to vector<64x1xf32>
    %13 = arith.addf %11, %12 : vector<64x1xf32>
    %14 = math.rsqrt %13 : vector<64x1xf32>
    %15 = vector.broadcast %4 : vector<64x1xf32> to vector<64x128xf32>
    %16 = arith.subf %0, %15 : vector<64x128xf32>
    %17 = vector.broadcast %14 : vector<64x1xf32> to vector<64x128xf32>
    %18 = arith.mulf %16, %17 : vector<64x128xf32>
    %c0_5 = arith.constant 0 : index
    %c0_6 = arith.constant 0 : index
    %19 = vector.load %arg2[%c0_5, %c0_6] : memref<1x128xf32, #tpu.memory_space<vmem>>, vector<1x128xf32>
    %20 = vector.broadcast %19 : vector<1x128xf32> to vector<64x128xf32>
    %21 = arith.mulf %18, %20 : vector<64x128xf32>
    %c0_7 = arith.constant 0 : index
    %c0_8 = arith.constant 0 : index
    %22 = vector.load %arg3[%c0_7, %c0_8] : memref<1x128xf32, #tpu.memory_space<vmem>>, vector<1x128xf32>
    %23 = vector.broadcast %22 : vector<1x128xf32> to vector<64x128xf32>
    %24 = arith.addf %21, %23 : vector<64x128xf32>
    %c0_9 = arith.constant 0 : index
    %c0_10 = arith.constant 0 : index
    %25 = vector.load %arg4[%c0_9, %c0_10] : memref<64x128xf32, #tpu.memory_space<vmem>>, vector<64x128xf32>
    tpu.vector_store %arg4[%c0_9, %c0_10], %24 {strides = array<i32>} : memref<64x128xf32, #tpu.memory_space<vmem>>, vector<64x128xf32>,
    return
  }
  func.func @transform_0(%arg0: i32) -> (i32, i32) {
    %c0_i32 = arith.constant 0 : i32
    %c0_i32_0 = arith.constant 0 : i32
    return %arg0, %c0_i32 : i32, i32
  }
  func.func @transform_1(%arg0: i32) -> (i32, i32) {
    %c0_i32 = arith.constant 0 : i32
    %c0_i32_0 = arith.constant 0 : i32
    %c0_i32_1 = arith.constant 0 : i32
    return %c0_i32, %c0_i32_0 : i32, i32
  }
  func.func @transform_2(%arg0: i32) -> (i32, i32) {
    %c0_i32 = arith.constant 0 : i32
    %c0_i32_0 = arith.constant 0 : i32
    %c0_i32_1 = arith.constant 0 : i32
    return %c0_i32, %c0_i32_0 : i32, i32
  }
  func.func @transform_3(%arg0: i32) -> (i32, i32) {
    %c0_i32 = arith.constant 0 : i32
    %c0_i32_0 = arith.constant 0 : i32
    return %arg0, %c0_i32 : i32, i32
  }
}

module attributes {stable_mosaic.version = 11 : i64} {
  func.func @_fused_linear_kernel(%arg0: i32, %arg1: i32, %arg2: i32, %arg3: memref<64x128xf32, #tpu.memory_space<vmem>>, %arg4: memref<1x128xf32, #tpu.memory_space<vmem>>, %arg5: memref<1x128xf32, #tpu.memory_space<vmem>>, %arg6: memref<128x256xbf16, #tpu.memory_space<vmem>>, %arg7: memref<1x256xf32, #tpu.memory_space<vmem>>, %arg8: memref<64x256xbf16, #tpu.memory_space<vmem>>, %arg9: memref<64x256xf32, #tpu.memory_space<vmem>>, %arg10: memref<64x128xbf16, #tpu.memory_space<vmem>>) attributes {dimension_semantics = [#tpu.dimension_semantics<parallel>, #tpu.dimension_semantics<arbitrary>, #tpu.dimension_semantics<arbitrary>], iteration_bounds = array<i64: 1, 1, 1>, scalar_prefetch = 0 : i64, scratch_operands = 2 : i64, tpu.core_type = #tpu.core_type<tc>, window_params = [{transform_indices = @transform_0, window_bounds = array<i64: 64, 128>}, {pipeline_mode = #tpu.pipeline_mode<synchronous>, transform_indices = @transform_1, window_bounds = array<i64: 1, 128>}, {pipeline_mode = #tpu.pipeline_mode<synchronous>, transform_indices = @transform_2, window_bounds = array<i64: 1, 128>}, {transform_indices = @transform_3, window_bounds = array<i64: 128, 256>}, {transform_indices = @transform_4, window_bounds = array<i64: 1, 256>}, {transform_indices = @transform_5, window_bounds = array<i64: 64, 256>}]} {
    %c0_i32 = arith.constant 0 : i32
    %0 = arith.cmpi eq, %arg2, %c0_i32 : i32
    %1 = arith.extui %0 : i1 to i32
    %c0_i32_0 = arith.constant 0 : i32
    %2 = arith.cmpi ne, %1, %c0_i32_0 : i32
    scf.if %2 {
      %cst_12 = arith.constant 0.000000e+00 : f32
      %20 = vector.broadcast %cst_12 : f32 to vector<64x256xf32>
      %c0_13 = arith.constant 0 : index
      %c0_14 = arith.constant 0 : index
      %21 = vector.load %arg9[%c0_13, %c0_14] : memref<64x256xf32, #tpu.memory_space<vmem>>, vector<64x256xf32>
      tpu.vector_store %arg9[%c0_13, %c0_14], %20 {strides = array<i32>} : memref<64x256xf32, #tpu.memory_space<vmem>>, vector<64x256xf32>,
    } else {
    }
    %c0_i32_1 = arith.constant 0 : i32
    %3 = arith.cmpi eq, %arg1, %c0_i32_1 : i32
    %c0_i32_2 = arith.constant 0 : i32
    %4 = arith.cmpi eq, %arg2, %c0_i32_2 : i32
    %5 = arith.andi %3, %4 : i1
    %6 = arith.extui %5 : i1 to i32
    %c0_i32_3 = arith.constant 0 : i32
    %7 = arith.cmpi ne, %6, %c0_i32_3 : i32
    scf.if %7 {
      %c0_12 = arith.constant 0 : index
      %c0_13 = arith.constant 0 : index
      %20 = vector.load %arg3[%c0_12, %c0_13] : memref<64x128xf32, #tpu.memory_space<vmem>>, vector<64x128xf32>
      %cst_14 = arith.constant dense<0.000000e+00> : vector<64xf32>
      %21 = vector.multi_reduction <add>, %20, %cst_14 [1] : vector<64x128xf32> to vector<64xf32>
      %22 = vector.shape_cast %21 : vector<64xf32> to vector<64x1xf32>
      %cst_15 = arith.constant 7.812500e-03 : f32
      %23 = vector.broadcast %cst_15 : f32 to vector<64x1xf32>
      %24 = arith.mulf %22, %23 : vector<64x1xf32>
      %25 = arith.mulf %20, %20 : vector<64x128xf32>
      %cst_16 = arith.constant dense<0.000000e+00> : vector<64xf32>
      %26 = vector.multi_reduction <add>, %25, %cst_16 [1] : vector<64x128xf32> to vector<64xf32>
      %27 = vector.shape_cast %26 : vector<64xf32> to vector<64x1xf32>
      %cst_17 = arith.constant 7.812500e-03 : f32
      %28 = vector.broadcast %cst_17 : f32 to vector<64x1xf32>
      %29 = arith.mulf %27, %28 : vector<64x1xf32>
      %30 = arith.mulf %24, %24 : vector<64x1xf32>
      %31 = arith.subf %29, %30 : vector<64x1xf32>
      %cst_18 = arith.constant 9.99999997E-7 : f32
      %32 = vector.broadcast %cst_18 : f32 to vector<64x1xf32>
      %33 = arith.addf %31, %32 : vector<64x1xf32>
      %34 = math.rsqrt %33 : vector<64x1xf32>
      %35 = vector.broadcast %24 : vector<64x1xf32> to vector<64x128xf32>
      %36 = arith.subf %20, %35 : vector<64x128xf32>
      %37 = vector.broadcast %34 : vector<64x1xf32> to vector<64x128xf32>
      %38 = arith.mulf %36, %37 : vector<64x128xf32>
      %c0_19 = arith.constant 0 : index
      %c0_20 = arith.constant 0 : index
      %39 = vector.load %arg4[%c0_19, %c0_20] : memref<1x128xf32, #tpu.memory_space<vmem>>, vector<1x128xf32>
      %40 = vector.broadcast %39 : vector<1x128xf32> to vector<64x128xf32>
      %41 = arith.mulf %38, %40 : vector<64x128xf32>
      %c0_21 = arith.constant 0 : index
      %c0_22 = arith.constant 0 : index
      %42 = vector.load %arg5[%c0_21, %c0_22] : memref<1x128xf32, #tpu.memory_space<vmem>>, vector<1x128xf32>
      %43 = vector.broadcast %42 : vector<1x128xf32> to vector<64x128xf32>
      %44 = arith.addf %41, %43 : vector<64x128xf32>
      %45 = arith.truncf %44 : vector<64x128xf32> to vector<64x128xbf16>
      %c0_23 = arith.constant 0 : index
      %c0_24 = arith.constant 0 : index
      %46 = vector.load %arg10[%c0_23, %c0_24] : memref<64x128xbf16, #tpu.memory_space<vmem>>, vector<64x128xbf16>
      tpu.vector_store %arg10[%c0_23, %c0_24], %45 {strides = array<i32>} : memref<64x128xbf16, #tpu.memory_space<vmem>>, vector<64x128xbf16>,
    } else {
    }
    %c128_i32 = arith.constant 128 : i32
    %8 = arith.muli %arg2, %c128_i32 : i32
    %9 = tpu.assume_multiple %8, 128 : i32
    %c0 = arith.constant 0 : index
    %10 = arith.index_cast %9 : i32 to index
    %11 = vector.load %arg10[%c0, %10] : memref<64x128xbf16, #tpu.memory_space<vmem>>, vector<64x128xbf16>
    %c0_4 = arith.constant 0 : index
    %c0_5 = arith.constant 0 : index
    %12 = vector.load %arg9[%c0_4, %c0_5] : memref<64x256xf32, #tpu.memory_space<vmem>>, vector<64x256xf32>
    %c0_6 = arith.constant 0 : index
    %c0_7 = arith.constant 0 : index
    %13 = vector.load %arg6[%c0_6, %c0_7] : memref<128x256xbf16, #tpu.memory_space<vmem>>, vector<128x256xbf16>
    %cst = arith.constant dense<0.000000e+00> : vector<64x256xf32>
    %14 = tpu.matmul %11, %13, %cst {dimension_numbers = #tpu.dot_dimension_numbers<[1], [0], [0], [1], [0, 0, 1, 1], [], []>} : vector<64x128xbf16>, vector<128x256xbf16>, vector<64x256xf32> -> vector<64x256xf32>
    %15 = arith.addf %12, %14 : vector<64x256xf32>
    %c0_8 = arith.constant 0 : index
    %c0_9 = arith.constant 0 : index
    %16 = vector.load %arg9[%c0_8, %c0_9] : memref<64x256xf32, #tpu.memory_space<vmem>>, vector<64x256xf32>
    tpu.vector_store %arg9[%c0_8, %c0_9], %15 {strides = array<i32>} : memref<64x256xf32, #tpu.memory_space<vmem>>, vector<64x256xf32>,
    %c0_i32_10 = arith.constant 0 : i32
    %17 = arith.cmpi eq, %arg2, %c0_i32_10 : i32
    %18 = arith.extui %17 : i1 to i32
    %c0_i32_11 = arith.constant 0 : i32
    %19 = arith.cmpi ne, %18, %c0_i32_11 : i32
    scf.if %19 {
      %c0_12 = arith.constant 0 : index
      %c0_13 = arith.constant 0 : index
      %20 = vector.load %arg9[%c0_12, %c0_13] : memref<64x256xf32, #tpu.memory_space<vmem>>, vector<64x256xf32>
      %c0_14 = arith.constant 0 : index
      %c0_15 = arith.constant 0 : index
      %21 = vector.load %arg7[%c0_14, %c0_15] : memref<1x256xf32, #tpu.memory_space<vmem>>, vector<1x256xf32>
      %22 = vector.broadcast %21 : vector<1x256xf32> to vector<64x256xf32>
      %23 = arith.addf %20, %22 : vector<64x256xf32>
      %24 = arith.mulf %23, %23 : vector<64x256xf32>
      %25 = arith.mulf %23, %24 : vector<64x256xf32>
      %cst_16 = arith.constant 4.471500e-02 : f32
      %26 = vector.broadcast %cst_16 : f32 to vector<64x256xf32>
      %27 = arith.mulf %26, %25 : vector<64x256xf32>
      %28 = arith.addf %23, %27 : vector<64x256xf32>
      %cst_17 = arith.constant 0.797884583 : f32
      %29 = vector.broadcast %cst_17 : f32 to vector<64x256xf32>
      %30 = arith.mulf %29, %28 : vector<64x256xf32>
      %31 = math.tanh %30 : vector<64x256xf32>
      %cst_18 = arith.constant 1.000000e+00 : f32
      %32 = vector.broadcast %cst_18 : f32 to vector<64x256xf32>
      %33 = arith.addf %32, %31 : vector<64x256xf32>
      %cst_19 = arith.constant 5.000000e-01 : f32
      %34 = vector.broadcast %cst_19 : f32 to vector<64x256xf32>
      %35 = arith.mulf %34, %33 : vector<64x256xf32>
      %36 = arith.mulf %23, %35 : vector<64x256xf32>
      %37 = arith.truncf %36 : vector<64x256xf32> to vector<64x256xbf16>
      %c0_20 = arith.constant 0 : index
      %c0_21 = arith.constant 0 : index
      %38 = vector.load %arg8[%c0_20, %c0_21] : memref<64x256xbf16, #tpu.memory_space<vmem>>, vector<64x256xbf16>
      tpu.vector_store %arg8[%c0_20, %c0_21], %37 {strides = array<i32>} : memref<64x256xbf16, #tpu.memory_space<vmem>>, vector<64x256xbf16>,
    } else {
    }
    return
  }
  func.func @transform_0(%arg0: i32, %arg1: i32, %arg2: i32) -> (i32, i32) {
    %c0_i32 = arith.constant 0 : i32
    %c0_i32_0 = arith.constant 0 : i32
    return %arg0, %c0_i32 : i32, i32
  }
  func.func @transform_1(%arg0: i32, %arg1: i32, %arg2: i32) -> (i32, i32) {
    %c0_i32 = arith.constant 0 : i32
    %c0_i32_0 = arith.constant 0 : i32
    %c0_i32_1 = arith.constant 0 : i32
    return %c0_i32, %c0_i32_0 : i32, i32
  }
  func.func @transform_2(%arg0: i32, %arg1: i32, %arg2: i32) -> (i32, i32) {
    %c0_i32 = arith.constant 0 : i32
    %c0_i32_0 = arith.constant 0 : i32
    %c0_i32_1 = arith.constant 0 : i32
    return %c0_i32, %c0_i32_0 : i32, i32
  }
  func.func @transform_3(%arg0: i32, %arg1: i32, %arg2: i32) -> (i32, i32) {
    %c0_i32 = arith.constant 0 : i32
    return %arg2, %arg1 : i32, i32
  }
  func.func @transform_4(%arg0: i32, %arg1: i32, %arg2: i32) -> (i32, i32) {
    %c0_i32 = arith.constant 0 : i32
    %c0_i32_0 = arith.constant 0 : i32
    return %c0_i32, %arg1 : i32, i32
  }
  func.func @transform_5(%arg0: i32, %arg1: i32, %arg2: i32) -> (i32, i32) {
    %c0_i32 = arith.constant 0 : i32
    return %arg0, %arg1 : i32, i32
  }
}

</mosaic_0001>

<bundles_post_ra>
// kernel: eomt_forward.12
= control target key start
LH: loop header
LB: loop body
LE: loop exit
PB: predicated region body
PF: predicated region fallthrough
CT: control target
= control target key end

     0   :  { %s454_s1 = inlined_call_operand.vmem [shape: bf16[256,128], index: 1, kind: input, shape index: {}]   ;;  %s455_s0 = inlined_call_operand.vmem [shape: f32[32,256], index: 0, kind: input, shape index: {}]   ;;  %s456_s2 = inlined_call_operand.vmem [shape: f32[1,128], index: 2, kind: input, shape index: {}]   ;;  %s457_s3 = inlined_call_operand.vmem [shape: f32[32,128], index: 3, kind: output, shape index: {}]  }
   0x1   :  { %v331_v0 = vld [vmem:[%s454_s1 + $0x40] sm:$0xff]   ;;  %v333_v2 = vld [vmem:[%s454_s1 + $0x48] sm:$0xff]   ;;  %v335_v4 = vld [vmem:[%s454_s1 + $0x50] sm:$0xff]  }
   0x2   :  { %v332_v1 = vld [vmem:[%s454_s1] sm:$0xff]   ;;  %287 = vmatprep.subr.bf16.mxu0 %v331_v0  ;;  %315 = vmatprep.subr.bf16.mxu1 %v331_v0  ;;  %v334_v3 = vld [vmem:[%s454_s1 + $0x8] sm:$0xff]   ;;  %v336_v5 = vld [vmem:[%s454_s1 + $0x10] sm:$0xff]  }
   0x3   :  { %288 = vmatpush3.bf16.msra.mxu0 %v332_v1  ;;  %323 = vmatpush3.bf16.msra.mxu1 %v332_v1  ;;  %v337_v6 = vld [vmem:[%s454_s1 + $0x58] sm:$0xff]   ;;  %v339_v8 = vld [vmem:[%s454_s1 + $0x60] sm:$0xff]   ;;  %v341_v10 = vld [vmem:[%s454_s1 + $0x68] sm:$0xff]  }
   0x4   :  { %289 = vmatprep.subr.bf16.mxu0 %v333_v2  ;;  %316 = vmatprep.subr.bf16.mxu1 %v333_v2  ;;  %v338_v7 = vld [vmem:[%s454_s1 + $0x18] sm:$0xff]   ;;  %v340_v9 = vld [vmem:[%s454_s1 + $0x20] sm:$0xff]   ;;  %v29_v11 = vld [vmem:[%s455_s0 + $0x8] sm:$0xff] }
   0x5   :  { %v31_v12 = vld [vmem:[%s455_s0 + $0x18] sm:$0xff]  ;;  %v33_v13 = vld [vmem:[%s455_s0 + $0x28] sm:$0xff]  ;;  %v343_v18 = vld [vmem:[%s454_s1 + $0x70] sm:$0xff]  }
   0x6   :  { %v37_v14 = vpack.c.bf16 %v31_v12, %v29_v11  ;;  %v35_v15 = vld [vmem:[%s455_s0 + $0x38] sm:$0xff]  ;;  %v342_v17 = vld [vmem:[%s454_s1 + $0x28] sm:$0xff]   ;;  %v344_v19 = vld [vmem:[%s454_s1 + $0x30] sm:$0xff]  }
   0x7   :  { %290 = vmatpush3.bf16.msra.mxu0 %v334_v3  ;;  %324 = vmatpush3.bf16.msra.mxu1 %v334_v3  ;;  %v39_v16 = vpack.c.bf16 %v35_v15, %v33_v13  ;;  %v345_v20 = vld [vmem:[%s454_s1 + $0x78] sm:$0xff]   ;;  %v28_v22 = vld [vmem:[%s455_s0] sm:$0xff]  ;;  %v30_v23 = vld [vmem:[%s455_s0 + $0x10] sm:$0xff] }
   0x8   :  { %291 = vmatprep.subr.bf16.mxu0 %v335_v4  ;;  %317 = vmatprep.subr.bf16.mxu1 %v335_v4  ;;  %v346_v21 = vld [vmem:[%s454_s1 + $0x38] sm:$0xff]   ;;  %v32_v24 = vld [vmem:[%s455_s0 + $0x20] sm:$0xff]  ;;  %v34_v25 = vld [vmem:[%s455_s0 + $0x30] sm:$0xff]  ;;  %v36_v26 = vpack.c.bf16 %v30_v23, %v28_v22 }
   0x9   :  { %217 = vmatprep.mubr.bf16.mxu0 %v37_v14  ;;  %225 = vmatprep.mubr.bf16.mxu1 %v39_v16  ;;  %v38_v27 = vpack.c.bf16 %v34_v25, %v32_v24  ;;  %v286_v31 = vld [vmem:[%s456_s2] ss:$0 sm:$0xff] }
   0xb   :  { %292 = vmatpush3.bf16.msra.mxu0 %v336_v5  ;;  %325 = vmatpush3.bf16.msra.mxu1 %v336_v5 }
   0xc   :  { %293 = vmatprep.subr.bf16.mxu0 %v337_v6  ;;  %318 = vmatprep.subr.bf16.mxu1 %v337_v6 }
   0xf   :  { %294 = vmatpush3.bf16.msra.mxu0 %v338_v7  ;;  %326 = vmatpush3.bf16.msra.mxu1 %v338_v7 }
  0x10   :  { %295 = vmatprep.subr.bf16.mxu0 %v339_v8  ;;  %319 = vmatprep.subr.bf16.mxu1 %v339_v8 }
  0x13   :  { %296 = vmatpush3.bf16.msra.mxu0 %v340_v9  ;;  %327 = vmatpush3.bf16.msra.mxu1 %v340_v9 }
  0x14   :  { %297 = vmatprep.subr.bf16.mxu0 %v341_v10  ;;  %320 = vmatprep.subr.bf16.mxu1 %v341_v10 }
  0x17   :  { %298 = vmatpush3.bf16.msra.mxu0 %v342_v17  ;;  %328 = vmatpush3.bf16.msra.mxu1 %v342_v17 }
  0x18   :  { %299 = vmatprep.subr.bf16.mxu0 %v343_v18  ;;  %321 = vmatprep.subr.bf16.mxu1 %v343_v18 }
  0x1b   :  { %300 = vmatpush3.bf16.msra.mxu0 %v344_v19  ;;  %329 = vmatpush3.bf16.msra.mxu1 %v344_v19 }
  0x1c   :  { %301 = vmatprep.subr.bf16.mxu0 %v345_v20  ;;  %322 = vmatprep.subr.bf16.mxu1 %v345_v20 }
  0x1f   :  { %302 = vmatpush3.bf16.msra.mxu0 %v346_v21  ;;  %330 = vmatpush3.bf16.msra.mxu1 %v346_v21 }
  0x22   :  { %218 = vmatmul.mubr.bf16.vlgmr.msra.gmra.mrb[0].mxu0 %v36_v26  ;;  %226 = vmatmul.mubr.bf16.vlgmr.msra.gmra.mrb[0].mxu1 %v38_v27 }
  0xf5   :  { %v303_v28 = vpop.f32.mrb[0].mxu0  ;;  %v309_v29 = vpop.f32.mrb[0].mxu1 }
  0xf6   :  { %v304_v30 = vpop.f32.mrb[1].mxu0  ;;  %v310_v32 = vpop.f32.mrb[1].mxu1 }
  0xf7   :  { %v305_v33 = vadd.f32 %v304_v30, %v303_v28  ;;  %v311_v34 = vadd.f32 %v310_v32, %v309_v29  ;;  %v306_v35 = vpop.f32.mrb[2].mxu0  ;;  %v312_v36 = vpop.f32.mrb[2].mxu1 }
  0xf8   :  { %v307_v37 = vpop.f32.mrb[3].mxu0  ;;  %v313_v38 = vpop.f32.mrb[3].mxu1 }
  0xf9   :  { %v256_v39 = vadd.f32 %v305_v33, %v286_v31  ;;  %v258_v40 = vadd.f32 %v311_v34, %v286_v31  ;;  %v308_v41 = vadd.f32 %v307_v37, %v306_v35  ;;  %v314_v42 = vadd.f32 %v313_v38, %v312_v36 }
  0xfb   :  { %260 = vst [vmem:[%s457_s3] sm:$0xff] %v256_v39  ;;  %262 = vst [vmem:[%s457_s3 + $0x10] sm:$0xff] %v258_v40  ;;  %v257_v43 = vadd.f32 %v308_v41, %v286_v31  ;;  %v259_v44 = vadd.f32 %v314_v42, %v286_v31 }
  0xfd   :  { %261 = vst [vmem:[%s457_s3 + $0x8] sm:$0xff] %v257_v43  ;;  %263 = vst [vmem:[%s457_s3 + $0x18] sm:$0xff] %v259_v44 }

// kernel: eomt_forward.13
= control target key start
LH: loop header
LB: loop body
LE: loop exit
PB: predicated region body
PF: predicated region fallthrough
CT: control target
= control target key end

     0   :  { %s1211_s18 = smov 0   ;;  %s1213_s19 = smov 0   ;;  %s1447_s0 = inlined_call_operand.vmem [shape: f32[64,128], index: 0, kind: input, shape index: {}]   ;;  %s1448_s1 = inlined_call_operand.vmem [shape: f32[1,128], index: 1, kind: input, shape index: {}]   ;;  %s1449_s2 = inlined_call_operand.vmem [shape: f32[1,128], index: 2, kind: input, shape index: {}]   ;;  %s1450_s3 = inlined_call_operand.vmem [shape: bf16[128,384], index: 3, kind: input, shape index: {}]   ;;  %s1451_s4 = inlined_call_operand.vmem [shape: f32[1,384], index: 4, kind: input, shape index: {}]   ;;  %s1452_s5 = inlined_call_operand.vmem [shape: bf16[64,384], index: 5, kind: output, shape index: {}]  }
   0x1   :  { %s1215_s20 = smov 0   ;;  %s1217_s21 = smov 0  }
   0x2   :  { %s1219_s22 = smov 0  }
   0x3 LB: > { %s30_s23 = sadd.s32 1, %s1174_s21  ;;  %s957_s24 = sadd.s32 4294967295, %s1178_s22   ;;  %s1178_s22 = sphi %s1219_s22, %s15_s22   ;;  %s1174_s21 = sphi %s1217_s21, %s1457_s21   ;;  %s1170_s20 = sphi %s1215_s20, %s1456_s20   ;;  %s1166_s19 = sphi %s1213_s19, %s1455_s19   ;;  %s1162_s18 = sphi %s1211_s18, %s1454_s18  }
   0x4   : > { %p32_p0 = scmp.ge.s32.totalorder %s30_s23, 3  ;;  %p118_p1 = scmp.ne.s32.totalorder %s1166_s19, %s1162_s18 }
   0x5   : > { %p119_p2 = scmp.eq.s32.totalorder %s1178_s22, 0  ;;  %p176_p4 = scmp.eq.s32.totalorder %s957_s24, 2 }
   0x6   : > { %s1459_s23 = smov (%p32_p0, %s30_s23), 0  ;;  %s111_s26 = sadd.s32 1, %s1166_s19 }
   0x7   : > { %p120_p3 = por %p119_p2, %p118_p1  ;;  %s107_s25 = ssub.s32 %s1174_s21, %s1459_s23 }
   0x8   : > { %p109_p5 = scmp.eq.s32.totalorder %s107_s25, 0  ;;  %p1246_p6 = por %p176_p4, %p118_p1 }
   0x9   : > { %p961_p7 = scmp.ge.s32.totalorder %s1178_s22, 3 }
   0xa   : > { %s1251_s28 = scalar_select %p109_p5, %s1166_s19, %s111_s26  }
   0xb   : > { %213 = sbr.rel (%p961_p7) target bundleno = 32 (0x20), region = 28 }
  0x12   : > { %216 = sbr.rel (!%p120_p3) target bundleno = 32 (0x20), region = 32  ;;  %s218_s29 = sand.u32 (%p120_p3), 1, %s1166_s19  }
  0x13   : > { %s963_s30 = sshll.u32 (%p120_p3), %s1174_s21, 2  ;;  %s962_s6 = sshll.u32 (%p120_p3), %s218_s29, 6 }
  0x14   : > { %s1259_s9 = scalar_lea.vmem (%p120_p3), %s1450_s3, %s963_s30  ;;  %s220_s10 = scalar_lea.vmem (%p120_p3), [#allocation4], %s962_s6 }
  0x15   : > { %v241_v0 = vld [vmem:[%s1259_s9] sm:$0xf] (%p120_p3)  ;;  %v243_v1 = vld [vmem:[%s1259_s9 + $0xc] sm:$0xf] (%p120_p3)  ;;  %v245_v2 = vld [vmem:[%s1259_s9 + $0x18] sm:$0xf] (%p120_p3) }
  0x16   : > { %242 = vst [vmem:[%s220_s10] sm:$0xf] (%p120_p3), %v241_v0  ;;  %244 = vst [vmem:[%s220_s10 + $0x4] sm:$0xf] (%p120_p3), %v243_v1  ;;  %v247_v3 = vld [vmem:[%s1259_s9 + $0x24] sm:$0xf] (%p120_p3) }
  0x17   : > { %v249_v4 = vld [vmem:[%s1259_s9 + $0x30] sm:$0xf] (%p120_p3)  ;;  %246 = vst [vmem:[%s220_s10 + $0x8] sm:$0xf] (%p120_p3), %v245_v2  ;;  %248 = vst [vmem:[%s220_s10 + $0xc] sm:$0xf] (%p120_p3), %v247_v3 }
  0x18   : > { %250 = vst [vmem:[%s220_s10 + $0x10] sm:$0xf] (%p120_p3), %v249_v4  ;;  %v251_v5 = vld [vmem:[%s1259_s9 + $0x3c] sm:$0xf] (%p120_p3)  ;;  %v253_v6 = vld [vmem:[%s1259_s9 + $0x48] sm:$0xf] (%p120_p3) }
  0x19   : > { %v255_v7 = vld [vmem:[%s1259_s9 + $0x54] sm:$0xf]  ;;  %252 = vst [vmem:[%s220_s10 + $0x14] sm:$0xf] %v251_v5  ;;  %254 = vst [vmem:[%s220_s10 + $0x18] sm:$0xf] %v253_v6 }
  0x1a   : > { %256 = vst [vmem:[%s220_s10 + $0x1c] sm:$0xf] %v255_v7  ;;  %v257_v8 = vld [vmem:[%s1259_s9 + $0x60] sm:$0xf]  ;;  %v259_v9 = vld [vmem:[%s1259_s9 + $0x6c] sm:$0xf] }
  0x1b   : > { %v261_v10 = vld [vmem:[%s1259_s9 + $0x78] sm:$0xf]  ;;  %258 = vst [vmem:[%s220_s10 + $0x20] sm:$0xf] %v257_v8  ;;  %260 = vst [vmem:[%s220_s10 + $0x24] sm:$0xf] %v259_v9 }
  0x1c   : > { %262 = vst [vmem:[%s220_s10 + $0x28] sm:$0xf] %v261_v10  ;;  %v263_v11 = vld [vmem:[%s1259_s9 + $0x84] sm:$0xf]  ;;  %v265_v12 = vld [vmem:[%s1259_s9 + $0x90] sm:$0xf] }
  0x1d   : > { %v267_v13 = vld [vmem:[%s1259_s9 + $0x9c] sm:$0xf]  ;;  %264 = vst [vmem:[%s220_s10 + $0x2c] sm:$0xf] %v263_v11  ;;  %266 = vst [vmem:[%s220_s10 + $0x30] sm:$0xf] %v265_v12 }
  0x1e   : > { %268 = vst [vmem:[%s220_s10 + $0x34] sm:$0xf] %v267_v13  ;;  %v269_v14 = vld [vmem:[%s1259_s9 + $0xa8] sm:$0xf]  ;;  %v271_v15 = vld [vmem:[%s1259_s9 + $0xb4] sm:$0xf] }
  0x1f   : > { %270 = vst [vmem:[%s220_s10 + $0x38] sm:$0xf] %v269_v14  ;;  %272 = vst [vmem:[%s220_s10 + $0x3c] sm:$0xf] %v271_v15 }
  0x20 PF: > { %p964_p8 = scmp.ge.s32.totalorder %s1178_s22, 1  ;;  %p332_p9 = scmp.lt.s32.totalorder %s1178_s22, 4 }
  0x22   : > { %p333_p10 = pnand %p964_p8, %p332_p9 }
  0x23   : > { %s339_s11 = sand.u32 (!%p333_p10), 1, %s1162_s18   ;;  %p380_p11 = scmp.lt.s32.totalorder (!%p333_p10), %s1170_s20, 2  ;;  %v1180_v16 = vmov (!%p333_p10), 0.0  }
  0x24   : > { %336 = sbr.rel (%p333_p10) target bundleno = 508 (0x1fc), region = 77  ;;  %s965_s12 = sshll.u32 (!%p333_p10), %s339_s11, 6  ;;  %389 = vst [vmem:[#allocation2] sm:$0xff] (!%p333_p10), %v1180_v16  ;;  %390 = vst [vmem:[#allocation2 + $0x8] sm:$0xff] (!%p333_p10), %v1180_v16 }
  0x25   : > { %s966_s13 = sshll.u32 (!%p333_p10), %s339_s11, 5  ;;  %391 = vst [vmem:[#allocation2 + $0x10] sm:$0xff] (!%p333_p10), %v1180_v16  ;;  %392 = vst [vmem:[#allocation2 + $0x18] sm:$0xff] (!%p333_p10), %v1180_v16  ;;  %p397_p12 = scmp.eq.s32.totalorder (!%p333_p10), %s1170_s20, 0 }
  0x26   : > { %393 = vst [vmem:[#allocation2 + $0x20] sm:$0xff] (!%p333_p10), %v1180_v16  ;;  %394 = vst [vmem:[#allocation2 + $0x28] sm:$0xff] (!%p333_p10), %v1180_v16  ;;  %s1289_s18 = scalar_lea.vmem (!%p333_p10), [#allocation4], %s965_s12  ;;  %s1291_s24 = scalar_lea.vmem (!%p333_p10), [#allocation5], %s966_s13 }
  0x27   : > { %395 = vst [vmem:[#allocation2 + $0x30] sm:$0xff] (!%p333_p10), %v1180_v16  ;;  %396 = vst [vmem:[#allocation2 + $0x38] sm:$0xff] (!%p333_p10), %v1180_v16 }
  0x2b   : > { %s1282_s14 = scalar_select %p380_p11, %s1170_s20, 2 }
  0x2c   : > { %401 = sbr.rel (!%p397_p12) target bundleno = 242 (0xf2), region = 89  ;;  %v1296_v17 = vld [vmem:[%s1447_s0 + $0x10] sm:$0xff] (%p397_p12)  ;;  %v1301_v18 = vld [vmem:[%s1447_s0] sm:$0xff] (%p397_p12)  ;;  %v1308_v19 = vld [vmem:[%s1447_s0 + $0x18] sm:$0xff] (%p397_p12) }
  0x2d   : > { %s382_s17 = scalar_lea.vmem %s1451_s4, %s1282_s14  ;;  %414 = vadd.xlane.f32.xlu1 (%p397_p12), %v1296_v17  ;;  %410 = vadd.xlane.f32.xlu0 (%p397_p12), %v1301_v18  ;;  %v1313_v20 = vld [vmem:[%s1447_s0 + $0x8] sm:$0xff] (%p397_p12)  ;;  %v1325_v22 = vld [vmem:[%s1447_s0 + $0x20] sm:$0xff] (%p397_p12)  ;;  %v1332_v23 = vld [vmem:[%s1447_s0 + $0x38] sm:$0xff] (%p397_p12)  ;;  %v434_v26 = vmul.f32 (%p397_p12), %v1301_v18, %v1301_v18  ;;  %v437_v27 = vmul.f32 (%p397_p12), %v1308_v19, %v1308_v19  ;;  %v436_v28 = vmul.f32 (%p397_p12), %v1296_v17, %v1296_v17 }
  0x2e   : > { %v1320_v21 = vld [vmem:[%s1447_s0 + $0x28] sm:$0xff] (%p397_p12)  ;;  %v1337_v24 = vld [vmem:[%s1447_s0 + $0x30] sm:$0xff] (%p397_p12)  ;;  %v435_v25 = vmul.f32 (%p397_p12), %v1313_v20, %v1313_v20  ;;  %v438_v30 = vmul.f32 (%p397_p12), %v1325_v22, %v1325_v22  ;;  %v441_v31 = vmul.f32 (%p397_p12), %v1332_v23, %v1332_v23 }
  0x2f   : > { %v439_v29 = vmul.f32 (%p397_p12), %v1320_v21, %v1320_v21  ;;  %v440_v32 = vmul.f32 (%p397_p12), %v1337_v24, %v1337_v24 }
  0x31   : > { %416 = vadd.xlane.f32.xlu1 (%p397_p12), %v1308_v19  ;;  %412 = vadd.xlane.f32.xlu0 (%p397_p12), %v1313_v20 }
  0x35   : > { %420 = vadd.xlane.f32.xlu1 %v1320_v21  ;;  %418 = vadd.xlane.f32.xlu0 %v1325_v22 }
  0x39   : > { %424 = vadd.xlane.f32.xlu1 %v1332_v23  ;;  %422 = vadd.xlane.f32.xlu0 %v1337_v24 }
  0x3d   : > { %444 = vadd.xlane.f32.xlu1 %v435_v25  ;;  %442 = vadd.xlane.f32.xlu0 %v434_v26 }
  0x41   : > { %448 = vadd.xlane.f32.xlu1 %v437_v27  ;;  %446 = vadd.xlane.f32.xlu0 %v436_v28 }
  0x45   : > { %452 = vadd.xlane.f32.xlu1 %v439_v29  ;;  %450 = vadd.xlane.f32.xlu0 %v438_v30 }
  0x49   : > { %456 = vadd.xlane.f32.xlu1 %v441_v31  ;;  %454 = vadd.xlane.f32.xlu0 %v440_v32 }
  0xba   : > { %v415_v33 = vpop.xlane.xlu1 %414  ;;  %v411_v34 = vpop.xlane.xlu0 %410 }
  0xbb   : > { %v426_v41 = vmul.f32 0.0078125, %v411_v34  ;;  %v1357_v43 = vmul.f32 0.0078125, %v415_v33  ;;  %v968_v34 = vld [vmem:[%s1448_s1] ss:$0 sm:$0xff] }
  0xbd   : > { %v466_v47 = vmul.f32 %v426_v41, %v426_v41  ;;  %v468_v54 = vmul.f32 %v1357_v43, %v1357_v43  ;;  %v498_v33 = vsub.f32 %v1301_v18, %v426_v41  ;;  %v500_v41 = vsub.f32 %v1296_v17, %v1357_v43 }
  0xbe   : > { %v417_v35 = vpop.xlane.xlu1 %416  ;;  %v413_v36 = vpop.xlane.xlu0 %412 }
  0xbf   : > { %v427_v42 = vmul.f32 0.0078125, %v413_v36  ;;  %v1359_v44 = vmul.f32 0.0078125, %v417_v35 }
  0xc1   : > { %v467_v48 = vmul.f32 %v427_v42, %v427_v42  ;;  %v469_v55 = vmul.f32 %v1359_v44, %v1359_v44  ;;  %v499_v31 = vsub.f32 %v1313_v20, %v427_v42  ;;  %v501_v20 = vsub.f32 %v1308_v19, %v1359_v44 }
  0xc2   : > { %v421_v37 = vpop.xlane.xlu1 %420  ;;  %v419_v38 = vpop.xlane.xlu0 %418 }
  0xc3   : > { %v1361_v51 = vmul.f32 0.0078125, %v421_v37  ;;  %v1367_v56 = vmul.f32 0.0078125, %v419_v38 }
  0xc5   : > { %v471_v63 = vmul.f32 %v1361_v51, %v1361_v51  ;;  %v470_v2 = vmul.f32 %v1367_v56, %v1367_v56  ;;  %v502_v19 = vsub.f32 %v1325_v22, %v1367_v56 }
  0xc6   : > { %v425_v39 = vpop.xlane.xlu1 %424  ;;  %v423_v40 = vpop.xlane.xlu0 %422 }
  0xc7   : > { %v1373_v3 = vmul.f32 0.0078125, %v425_v39  ;;  %v1375_v4 = vmul.f32 0.0078125, %v423_v40  ;;  %v969_v39 = vld [vmem:[%s1449_s2] ss:$0 sm:$0xff] }
  0xc9   : > { %v473_v13 = vmul.f32 %v1373_v3, %v1373_v3  ;;  %v472_v14 = vmul.f32 %v1375_v4, %v1375_v4 }
  0xca   : > { %v445_v45 = vpop.xlane.xlu1 %444  ;;  %v443_v46 = vpop.xlane.xlu0 %442 }
  0xcb   : > { %v459_v49 = vmul.f32 0.0078125, %v445_v45  ;;  %v458_v50 = vmul.f32 0.0078125, %v443_v46 }
  0xcd   : > { %v475_v52 = vsub.f32 %v459_v49, %v467_v48  ;;  %v474_v53 = vsub.f32 %v458_v50, %v466_v47 }
  0xce   : > { %v449_v57 = vpop.xlane.xlu1 %448  ;;  %v447_v58 = vpop.xlane.xlu0 %446 }
  0xcf   : > { %v483_v59 = vadd.f32 1e-06, %v475_v52  ;;  %v482_v60 = vadd.f32 1e-06, %v474_v53  ;;  %v461_v61 = vmul.f32 0.0078125, %v449_v57  ;;  %v460_v62 = vmul.f32 0.0078125, %v447_v58 }
  0xd0   : > { %v503_v52 = vsub.f32 %v1320_v21, %v1361_v51  ;;  %v504_v21 = vsub.f32 %v1337_v24, %v1375_v4 }
  0xd1   : > { %1116 = vrsqrt.f32 %v483_v59  ;;  %v477_v0 = vsub.f32 %v461_v61, %v469_v55  ;;  %v476_v1 = vsub.f32 %v460_v62, %v468_v54 }
  0xd2   : > { %1118 = vrsqrt.f32 %v482_v60  ;;  %v453_v5 = vpop.xlane.xlu1 %452  ;;  %v451_v6 = vpop.xlane.xlu0 %450  ;;  %v505_v60 = vsub.f32 %v1332_v23, %v1373_v3 }
  0xd3   : > { %v485_v7 = vadd.f32 1e-06, %v477_v0  ;;  %v484_v8 = vadd.f32 1e-06, %v476_v1  ;;  %v463_v9 = vmul.f32 0.0078125, %v453_v5  ;;  %v462_v10 = vmul.f32 0.0078125, %v451_v6 }
  0xd5   : > { %1120 = vrsqrt.f32 %v485_v7  ;;  %v479_v11 = vsub.f32 %v463_v9, %v471_v63  ;;  %v478_v12 = vsub.f32 %v462_v10, %v470_v2 }
  0xd6   : > { %1122 = vrsqrt.f32 %v484_v8  ;;  %v457_v15 = vpop.xlane.xlu1 %456  ;;  %v455_v16 = vpop.xlane.xlu0 %454 }
  0xd7   : > { %v487_v25 = vadd.f32 1e-06, %v479_v11  ;;  %v486_v26 = vadd.f32 1e-06, %v478_v12  ;;  %v465_v27 = vmul.f32 0.0078125, %v457_v15  ;;  %v464_v28 = vmul.f32 0.0078125, %v455_v16 }
  0xd9   : > { %1124 = vrsqrt.f32 %v487_v25  ;;  %v481_v29 = vsub.f32 %v465_v27, %v473_v13  ;;  %v480_v30 = vsub.f32 %v464_v28, %v472_v14 }
  0xda   : > { %1126 = vrsqrt.f32 %v486_v26 }
  0xdb   : > { %v1117_v32 = vpop.eup %1116  ;;  %v489_v35 = vadd.f32 1e-06, %v481_v29  ;;  %v488_v36 = vadd.f32 1e-06, %v480_v30 }
  0xdc   : > { %v1119_v37 = vpop.eup %1118  ;;  %v507_v38 = vmul.f32 %v1117_v32, %v499_v31 }
  0xdd   : > { %v506_v40 = vmul.f32 %v1119_v37, %v498_v33  ;;  %1128 = vrsqrt.f32 %v489_v35 }
  0xde   : > { %v522_v42 = vmul.f32 %v968_v34, %v507_v38  ;;  %1130 = vrsqrt.f32 %v488_v36 }
  0xdf   : > { %v1121_v18 = vpop.eup %1120  ;;  %v521_v45 = vmul.f32 %v968_v34, %v506_v40 }
  0xe0   : > { %v1123_v46 = vpop.eup %1122  ;;  %v537_v47 = vadd.f32 %v969_v39, %v522_v42  ;;  %v509_v48 = vmul.f32 %v1121_v18, %v501_v20 }
  0xe1   : > { %v536_v49 = vadd.f32 %v969_v39, %v521_v45  ;;  %v508_v50 = vmul.f32 %v1123_v46, %v500_v41 }
  0xe2   : > { %v524_v53 = vmul.f32 %v968_v34, %v509_v48 }
  0xe3   : > { %v1125_v54 = vpop.eup %1124  ;;  %v544_v44 = vpack.c.bf16 %v537_v47, %v536_v49  ;;  %v523_v55 = vmul.f32 %v968_v34, %v508_v50 }
  0xe4   : > { %v1127_v57 = vpop.eup %1126  ;;  %v539_v58 = vadd.f32 %v969_v39, %v524_v53  ;;  %v511_v59 = vmul.f32 %v1125_v54, %v503_v52 }
  0xe5   : > { %548 = vst [vmem:[#allocation3] sm:$0xff] %v544_v44  ;;  %v538_v17 = vadd.f32 %v969_v39, %v523_v55  ;;  %v510_v43 = vmul.f32 %v1127_v57, %v502_v19 }
  0xe6   : > { %v526_v61 = vmul.f32 %v968_v34, %v511_v59 }
  0xe7   : > { %v1129_v62 = vpop.eup %1128  ;;  %v545_v51 = vpack.c.bf16 %v539_v58, %v538_v17  ;;  %v525_v63 = vmul.f32 %v968_v34, %v510_v43 }
  0xe8   : > { %v1131_v0 = vpop.eup %1130  ;;  %v541_v22 = vadd.f32 %v969_v39, %v526_v61  ;;  %v513_v56 = vmul.f32 %v1129_v62, %v505_v60 }
  0xe9   : > { %549 = vst [vmem:[#allocation3 + $0x8] sm:$0xff] %v545_v51  ;;  %v540_v1 = vadd.f32 %v969_v39, %v525_v63  ;;  %v512_v2 = vmul.f32 %v1131_v0, %v504_v21 }
  0xea   : > { %v528_v5 = vmul.f32 %v968_v34, %v513_v56 }
  0xeb   : > { %v546_v6 = vpack.c.bf16 %v541_v22, %v540_v1  ;;  %v527_v7 = vmul.f32 %v968_v34, %v512_v2 }
  0xec   : > { %v543_v8 = vadd.f32 %v969_v39, %v528_v5 }
  0xed   : > { %550 = vst [vmem:[#allocation3 + $0x10] sm:$0xff] %v546_v6  ;;  %v542_v9 = vadd.f32 %v969_v39, %v527_v7 }
  0xef   : > { %v547_v23 = vpack.c.bf16 %v543_v8, %v542_v9 }
  0xf1   : > { %551 = vst [vmem:[#allocation3 + $0x18] sm:$0xff] %v547_v23 }
  0xf2 PF: > { %v1132_v24 = vld [vmem:[%s1289_s18] sm:$0xff]   ;;  %v1133_v3 = vld [vmem:[%s1289_s18 + $0x8] sm:$0xff]   ;;  %v1134_v4 = vld [vmem:[%s1289_s18 + $0x10] sm:$0xff]   ;;  %s988_s14 = sshll.u32 (%p1246_p6), %s1170_s20, 2 }
  0xf3   : > { %1035 = vmatprep.subr.bf16.mxu0 %v1132_v24  ;;  %1059 = vmatprep.subr.bf16.mxu1 %v1132_v24  ;;  %v1135_v10 = vld [vmem:[%s1289_s18 + $0x18] sm:$0xff]   ;;  %v557_v11 = vld [vmem:[#allocation3] sm:$0xff]  ;;  %v1137_v14 = vld [vmem:[%s1289_s18 + $0x28] sm:$0xff]   ;;  %s791_s10 = scalar_lea.vmem (%p1246_p6), %s1452_s5, %s988_s14 }
  0xf4   : > { %1036 = vmatpush3.bf16.msra.mxu0 %v1132_v24  ;;  %1067 = vmatpush3.bf16.msra.mxu1 %v1132_v24  ;;  %v559_v12 = vld [vmem:[#allocation3 + $0x10] sm:$0xff]  ;;  %v1136_v13 = vld [vmem:[%s1289_s18 + $0x20] sm:$0xff]   ;;  %v1139_v16 = vld [vmem:[%s1289_s18 + $0x38] sm:$0xff]  }
  0xf5   : > { %1037 = vmatprep.subr.bf16.mxu0 %v1133_v3  ;;  %1060 = vmatprep.subr.bf16.mxu1 %v1133_v3  ;;  %v1138_v15 = vld [vmem:[%s1289_s18 + $0x30] sm:$0xff]   ;;  %v558_v25 = vld [vmem:[#allocation3 + $0x8] sm:$0xff]  ;;  %v561_v29 = vld [vmem:[#allocation2] sm:$0xff] }
  0xf6   : > { %1051 = vmatprep.mubr.bf16.mxu0 %v557_v11  ;;  %1055 = vmatprep.mubr.bf16.mxu1 %v559_v12  ;;  %v563_v27 = vld [vmem:[#allocation2 + $0x10] sm:$0xff]  ;;  %v565_v30 = vld [vmem:[#allocation2 + $0x20] sm:$0xff]  ;;  %v564_v33 = vld [vmem:[#allocation2 + $0x18] sm:$0xff] }
  0xf7   : > { %v567_v28 = vld [vmem:[#allocation2 + $0x30] sm:$0xff]  ;;  %v568_v34 = vld [vmem:[#allocation2 + $0x38] sm:$0xff]  ;;  %v562_v39 = vld [vmem:[#allocation2 + $0x8] sm:$0xff] }
  0xf8   : > { %1038 = vmatpush3.bf16.msra.mxu0 %v1133_v3  ;;  %1068 = vmatpush3.bf16.msra.mxu1 %v1133_v3  ;;  %v560_v26 = vld [vmem:[#allocation3 + $0x18] sm:$0xff]  ;;  %v566_v40 = vld [vmem:[#allocation2 + $0x28] sm:$0xff]  ;;  %v978_v20 = vld [vmem:[%s382_s17] ss:$0 sm:$0xff] }
  0xf9   : > { %1039 = vmatprep.subr.bf16.mxu0 %v1134_v4  ;;  %1061 = vmatprep.subr.bf16.mxu1 %v1134_v4 }
  0xfc   : > { %1040 = vmatpush3.bf16.msra.mxu0 %v1134_v4  ;;  %1069 = vmatpush3.bf16.msra.mxu1 %v1134_v4 }
  0xfd   : > { %1041 = vmatprep.subr.bf16.mxu0 %v1135_v10  ;;  %1062 = vmatprep.subr.bf16.mxu1 %v1135_v10 }
 0x100   : > { %1042 = vmatpush3.bf16.msra.mxu0 %v1135_v10  ;;  %1070 = vmatpush3.bf16.msra.mxu1 %v1135_v10 }
 0x101   : > { %1043 = vmatprep.subr.bf16.mxu0 %v1136_v13  ;;  %1063 = vmatprep.subr.bf16.mxu1 %v1136_v13 }
 0x104   : > { %1044 = vmatpush3.bf16.msra.mxu0 %v1136_v13  ;;  %1071 = vmatpush3.bf16.msra.mxu1 %v1136_v13 }
 0x105   : > { %1045 = vmatprep.subr.bf16.mxu0 %v1137_v14  ;;  %1064 = vmatprep.subr.bf16.mxu1 %v1137_v14 }
 0x108   : > { %1046 = vmatpush3.bf16.msra.mxu0 %v1137_v14  ;;  %1072 = vmatpush3.bf16.msra.mxu1 %v1137_v14 }
 0x109   : > { %1047 = vmatprep.subr.bf16.mxu0 %v1138_v15  ;;  %1065 = vmatprep.subr.bf16.mxu1 %v1138_v15 }
 0x10c   : > { %1048 = vmatpush3.bf16.msra.mxu0 %v1138_v15  ;;  %1073 = vmatpush3.bf16.msra.mxu1 %v1138_v15 }
 0x10d   : > { %1049 = vmatprep.subr.bf16.mxu0 %v1139_v16  ;;  %1066 = vmatprep.subr.bf16.mxu1 %v1139_v16 }
 0x110   : > { %1050 = vmatpush3.bf16.msra.mxu0 %v1139_v16  ;;  %1074 = vmatpush3.bf16.msra.mxu1 %v1139_v16 }
 0x113   : > { %1052 = vmatmul.mubr.bf16.vlgmr.msra.gmra.mrb[0].mxu0 %v558_v25  ;;  %1056 = vmatmul.mubr.bf16.vlgmr.msra.gmra.mrb[0].mxu1 %v560_v26 }
 0x1e6   : > { %v1053_v31 = vpop.f32.mrb[0].mxu0  ;;  %v1057_v32 = vpop.f32.mrb[0].mxu1 }
 0x1e7   : > { %v700_v35 = vadd.f32 %v1053_v31, %v563_v27  ;;  %v704_v36 = vadd.f32 %v1057_v32, %v567_v28  ;;  %v667_v37 = vpop.f32.mrb[1].mxu0  ;;  %v683_v38 = vpop.f32.mrb[1].mxu1 }
 0x1e8   : > { %v698_v42 = vadd.f32 %v667_v37, %v561_v29  ;;  %v702_v18 = vadd.f32 %v683_v38, %v565_v30  ;;  %v1054_v41 = vpop.f32.mrb[2].mxu0  ;;  %v1058_v45 = vpop.f32.mrb[2].mxu1 }
 0x1e9   : > { %708 = vst [vmem:[#allocation2 + $0x10] sm:$0xff] %v700_v35  ;;  %712 = vst [vmem:[#allocation2 + $0x30] sm:$0xff] %v704_v36  ;;  %v701_v46 = vadd.f32 %v1054_v41, %v564_v33  ;;  %v705_v47 = vadd.f32 %v1058_v45, %v568_v34  ;;  %v670_v48 = vpop.f32.mrb[3].mxu0  ;;  %v686_v49 = vpop.f32.mrb[3].mxu1  ;;  %v734_v53 = vadd.f32 %v978_v20, %v700_v35 }
 0x1ea   : > { %706 = vst [vmem:[#allocation2] sm:$0xff] %v698_v42  ;;  %710 = vst [vmem:[#allocation2 + $0x20] sm:$0xff] %v702_v18  ;;  %v699_v50 = vadd.f32 %v670_v48, %v562_v39  ;;  %v703_v52 = vadd.f32 %v686_v49, %v566_v40  ;;  %v738_v54 = vadd.f32 %v978_v20, %v704_v36  ;;  %786 = sbr.rel (!%p1246_p6) target bundleno = 508 (0x1fc), region = 97 }
 0x1eb   : > { %709 = vst [vmem:[#allocation2 + $0x18] sm:$0xff] %v701_v46  ;;  %v735_v19 = vadd.f32 %v978_v20, %v701_v46  ;;  %713 = vst [vmem:[#allocation2 + $0x38] sm:$0xff] %v705_v47  ;;  %v739_v44 = vadd.f32 %v978_v20, %v705_v47  ;;  %v732_v55 = vadd.f32 %v978_v20, %v698_v42 }
 0x1ec   : > { %v736_v57 = vadd.f32 %v978_v20, %v702_v18  ;;  %707 = vst [vmem:[#allocation2 + $0x8] sm:$0xff] %v699_v50  ;;  %v733_v58 = vadd.f32 %v978_v20, %v699_v50  ;;  %711 = vst [vmem:[#allocation2 + $0x28] sm:$0xff] %v703_v52  ;;  %v737_v59 = vadd.f32 %v978_v20, %v703_v52 }
 0x1ed   : > { %v1008_v17 = vpack.c.bf16 %v735_v19, %v734_v53  ;;  %v1018_v43 = vpack.c.bf16 %v739_v44, %v738_v54 }
 0x1ee   : > { %v1003_v60 = vpack.c.bf16 %v733_v58, %v732_v55  ;;  %v1013_v61 = vpack.c.bf16 %v737_v59, %v736_v57 }
 0x1ef   : > { %1020 = vst [vmem:[%s1291_s24 + $0x8] sm:$0xff] %v1008_v17   ;;  %1022 = vst [vmem:[%s1291_s24 + $0x18] sm:$0xff] %v1018_v43  }
 0x1f0   : > { %1004 = vst [vmem:[%s1291_s24] sm:$0xff] %v1003_v60   ;;  %1021 = vst [vmem:[%s1291_s24 + $0x10] sm:$0xff] %v1013_v61  }
 0x1f6   : > { %v811_v51 = vld [vmem:[%s1291_s24 + $0x8] sm:$0xf]  ;;  %v813_v63 = vld [vmem:[%s1291_s24 + $0xc] sm:$0xf]  ;;  %v819_v56 = vld [vmem:[%s1291_s24 + $0x18] sm:$0xf] }
 0x1f7   : > { %v807_v62 = vld [vmem:[%s1291_s24] sm:$0xf]  ;;  %v809_v21 = vld [vmem:[%s1291_s24 + $0x4] sm:$0xf]  ;;  %v815_v0 = vld [vmem:[%s1291_s24 + $0x10] sm:$0xf] }
 0x1f8   : > { %808 = vst [vmem:[%s791_s10] sm:$0xf] %v807_v62  ;;  %810 = vst [vmem:[%s791_s10 + $0xc] sm:$0xf] %v809_v21  ;;  %v817_v22 = vld [vmem:[%s1291_s24 + $0x14] sm:$0xf] }
 0x1f9   : > { %812 = vst [vmem:[%s791_s10 + $0x18] sm:$0xf] %v811_v51  ;;  %814 = vst [vmem:[%s791_s10 + $0x24] sm:$0xf] %v813_v63  ;;  %v821_v1 = vld [vmem:[%s1291_s24 + $0x1c] sm:$0xf] }
 0x1fa   : > { %816 = vst [vmem:[%s791_s10 + $0x30] sm:$0xf] %v815_v0  ;;  %818 = vst [vmem:[%s791_s10 + $0x3c] sm:$0xf] %v817_v22 }
 0x1fb   : > { %820 = vst [vmem:[%s791_s10 + $0x48] sm:$0xf] %v819_v56  ;;  %822 = vst [vmem:[%s791_s10 + $0x54] sm:$0xf] %v821_v1 }
 0x1fc PF: > { %s15_s22 = sadd.s32 1, %s1178_s22   ;;  %s1454_s18 = smov %s1166_s19 }
 0x1fd   : > { %p12_p13 = scmp.ge.s32.totalorder %s15_s22, 5   ;;  %s1455_s19 = smov %s1251_s28 }
 0x1fe   : > { %s1456_s20 = smov %s1174_s21  ;;  %s1457_s21 = smov %s1459_s23 }
 0x1ff   :  { %14 = sbr.rel (!%p12_p13) target bundleno = 3 (0x3), region = 176 }

// kernel: eomt_forward.15
= control target key start
LH: loop header
LB: loop body
LE: loop exit
PB: predicated region body
PF: predicated region fallthrough
CT: control target
= control target key end

     0   :  { %s465_s1 = inlined_call_operand.vmem [shape: bf16[128,128], index: 1, kind: input, shape index: {}]   ;;  %s466_s0 = inlined_call_operand.vmem [shape: bf16[64,128], index: 0, kind: input, shape index: {}]   ;;  %s467_s2 = inlined_call_operand.vmem [shape: f32[1,128], index: 2, kind: input, shape index: {}]   ;;  %s468_s3 = inlined_call_operand.vmem [shape: f32[64,128], index: 3, kind: input, shape index: {}]   ;;  %s469_s4 = inlined_call_operand.vmem [shape: f32[64,128], index: 4, kind: output, shape index: {}]  }
   0x1   :  { %v341_v0 = vld [vmem:[%s465_s1] sm:$0xff]   ;;  %v342_v1 = vld [vmem:[%s465_s1 + $0x8] sm:$0xff]   ;;  %v343_v2 = vld [vmem:[%s465_s1 + $0x10] sm:$0xff]  }
   0x2   :  { %301 = vmatprep.subr.bf16.mxu0 %v341_v0  ;;  %325 = vmatprep.subr.bf16.mxu1 %v341_v0  ;;  %v344_v3 = vld [vmem:[%s465_s1 + $0x18] sm:$0xff]   ;;  %v349_v4 = vld [vmem:[%s466_s0] sm:$0xff]   ;;  %v350_v5 = vld [vmem:[%s466_s0 + $0x10] sm:$0xff]  }
   0x3   :  { %302 = vmatpush3.bf16.msra.mxu0 %v341_v0  ;;  %333 = vmatpush3.bf16.msra.mxu1 %v341_v0  ;;  %v345_v6 = vld [vmem:[%s465_s1 + $0x20] sm:$0xff]   ;;  %v346_v7 = vld [vmem:[%s465_s1 + $0x28] sm:$0xff]   ;;  %v347_v8 = vld [vmem:[%s465_s1 + $0x30] sm:$0xff]  }
   0x4   :  { %303 = vmatprep.subr.bf16.mxu0 %v342_v1  ;;  %326 = vmatprep.subr.bf16.mxu1 %v342_v1  ;;  %v348_v9 = vld [vmem:[%s465_s1 + $0x38] sm:$0xff]   ;;  %v351_v10 = vld [vmem:[%s466_s0 + $0x8] sm:$0xff]   ;;  %v288_v12 = vld [vmem:[%s467_s2] ss:$0 sm:$0xff] }
   0x5   :  { %317 = vmatprep.mubr.bf16.mxu0 %v349_v4  ;;  %321 = vmatprep.mubr.bf16.mxu1 %v350_v5  ;;  %v352_v11 = vld [vmem:[%s466_s0 + $0x18] sm:$0xff]   ;;  %v248_v14 = vld [vmem:[%s468_s3 + $0x10] sm:$0xff]  ;;  %v246_v20 = vld [vmem:[%s468_s3] sm:$0xff] }
   0x6   :  { %v252_v16 = vld [vmem:[%s468_s3 + $0x30] sm:$0xff]  ;;  %v250_v22 = vld [vmem:[%s468_s3 + $0x20] sm:$0xff]  ;;  %v249_v26 = vld [vmem:[%s468_s3 + $0x18] sm:$0xff] }
   0x7   :  { %304 = vmatpush3.bf16.msra.mxu0 %v342_v1  ;;  %334 = vmatpush3.bf16.msra.mxu1 %v342_v1  ;;  %v253_v28 = vld [vmem:[%s468_s3 + $0x38] sm:$0xff]  ;;  %v247_v34 = vld [vmem:[%s468_s3 + $0x8] sm:$0xff] }
   0x8   :  { %305 = vmatprep.subr.bf16.mxu0 %v343_v2  ;;  %327 = vmatprep.subr.bf16.mxu1 %v343_v2  ;;  %v251_v36 = vld [vmem:[%s468_s3 + $0x28] sm:$0xff] }
   0xb   :  { %306 = vmatpush3.bf16.msra.mxu0 %v343_v2  ;;  %335 = vmatpush3.bf16.msra.mxu1 %v343_v2 }
   0xc   :  { %307 = vmatprep.subr.bf16.mxu0 %v344_v3  ;;  %328 = vmatprep.subr.bf16.mxu1 %v344_v3 }
   0xf   :  { %308 = vmatpush3.bf16.msra.mxu0 %v344_v3  ;;  %336 = vmatpush3.bf16.msra.mxu1 %v344_v3 }
  0x10   :  { %309 = vmatprep.subr.bf16.mxu0 %v345_v6  ;;  %329 = vmatprep.subr.bf16.mxu1 %v345_v6 }
  0x13   :  { %310 = vmatpush3.bf16.msra.mxu0 %v345_v6  ;;  %337 = vmatpush3.bf16.msra.mxu1 %v345_v6 }
  0x14   :  { %311 = vmatprep.subr.bf16.mxu0 %v346_v7  ;;  %330 = vmatprep.subr.bf16.mxu1 %v346_v7 }
  0x17   :  { %312 = vmatpush3.bf16.msra.mxu0 %v346_v7  ;;  %338 = vmatpush3.bf16.msra.mxu1 %v346_v7 }
  0x18   :  { %313 = vmatprep.subr.bf16.mxu0 %v347_v8  ;;  %331 = vmatprep.subr.bf16.mxu1 %v347_v8 }
  0x1b   :  { %314 = vmatpush3.bf16.msra.mxu0 %v347_v8  ;;  %339 = vmatpush3.bf16.msra.mxu1 %v347_v8 }
  0x1c   :  { %315 = vmatprep.subr.bf16.mxu0 %v348_v9  ;;  %332 = vmatprep.subr.bf16.mxu1 %v348_v9 }
  0x1f   :  { %316 = vmatpush3.bf16.msra.mxu0 %v348_v9  ;;  %340 = vmatpush3.bf16.msra.mxu1 %v348_v9 }
  0x22   :  { %318 = vmatmul.mubr.bf16.vlgmr.msra.gmra.mrb[0].mxu0 %v351_v10  ;;  %322 = vmatmul.mubr.bf16.vlgmr.msra.gmra.mrb[0].mxu1 %v352_v11 }
  0xf5   :  { %v319_v13 = vpop.f32.mrb[0].mxu0  ;;  %v323_v15 = vpop.f32.mrb[0].mxu1 }
  0xf6   :  { %v240_v17 = vadd.f32 %v319_v13, %v288_v12  ;;  %v244_v18 = vadd.f32 %v323_v15, %v288_v12  ;;  %v173_v19 = vpop.f32.mrb[1].mxu0  ;;  %v189_v21 = vpop.f32.mrb[1].mxu1 }
  0xf7   :  { %v238_v23 = vadd.f32 %v288_v12, %v173_v19  ;;  %v242_v24 = vadd.f32 %v288_v12, %v189_v21  ;;  %v320_v25 = vpop.f32.mrb[2].mxu0  ;;  %v324_v27 = vpop.f32.mrb[2].mxu1 }
  0xf8   :  { %v256_v29 = vadd.f32 %v248_v14, %v240_v17  ;;  %v260_v30 = vadd.f32 %v252_v16, %v244_v18  ;;  %v241_v31 = vadd.f32 %v320_v25, %v288_v12  ;;  %v245_v32 = vadd.f32 %v324_v27, %v288_v12  ;;  %v176_v33 = vpop.f32.mrb[3].mxu0  ;;  %v192_v35 = vpop.f32.mrb[3].mxu1 }
  0xf9   :  { %v254_v37 = vadd.f32 %v246_v20, %v238_v23  ;;  %v258_v38 = vadd.f32 %v250_v22, %v242_v24  ;;  %v239_v39 = vadd.f32 %v288_v12, %v176_v33  ;;  %v243_v40 = vadd.f32 %v288_v12, %v192_v35 }
  0xfa   :  { %264 = vst [vmem:[%s469_s4 + $0x10] sm:$0xff] %v256_v29  ;;  %268 = vst [vmem:[%s469_s4 + $0x30] sm:$0xff] %v260_v30  ;;  %v257_v41 = vadd.f32 %v249_v26, %v241_v31  ;;  %v261_v42 = vadd.f32 %v253_v28, %v245_v32 }
  0xfb   :  { %262 = vst [vmem:[%s469_s4] sm:$0xff] %v254_v37  ;;  %266 = vst [vmem:[%s469_s4 + $0x20] sm:$0xff] %v258_v38  ;;  %v255_v43 = vadd.f32 %v247_v34, %v239_v39  ;;  %v259_v44 = vadd.f32 %v251_v36, %v243_v40 }
  0xfc   :  { %265 = vst [vmem:[%s469_s4 + $0x18] sm:$0xff] %v257_v41  ;;  %269 = vst [vmem:[%s469_s4 + $0x38] sm:$0xff] %v261_v42 }
  0xfd   :  { %263 = vst [vmem:[%s469_s4 + $0x8] sm:$0xff] %v255_v43  ;;  %267 = vst [vmem:[%s469_s4 + $0x28] sm:$0xff] %v259_v44 }

// kernel: eomt_forward.14
= control target key start
LH: loop header
LB: loop body
LE: loop exit
PB: predicated region body
PF: predicated region fallthrough
CT: control target
= control target key end

     0   :  { %s2422_s12 = smov 0   ;;  %s2424_s13 = smov 0   ;;  %s3065_s0 = inlined_call_operand.vmem [shape: bf16[2,32,384], index: 0, kind: input, shape index: {}, may-alias: {0,1,2}]   ;;  %s3066_s1 = inlined_call_operand.vmem [shape: bf16[2,32,384], index: 1, kind: input, shape index: {}, may-alias: {0,1,2}]   ;;  %s3067_s2 = inlined_call_operand.vmem [shape: bf16[2,32,384], index: 2, kind: input, shape index: {}, may-alias: {0,1,2}]   ;;  %s3068_s3 = inlined_call_operand.vmem [shape: bf16[2,32,128], index: 3, kind: output, shape index: {}]  }
   0x1   :  { %s2426_s14 = smov 0   ;;  %s2428_s15 = smov 0  }
   0x2   :  { %s2430_s16 = smov 0  }
   0x3 LB: > { %s39_s17 = sadd.s32 1, %s2390_s15  ;;  %p57_p1 = scmp.ne.s32.totalorder %s2382_s13, %s2378_s12  ;;  %s2394_s16 = sphi %s2430_s16, %s13_s16   ;;  %s2390_s15 = sphi %s2428_s15, %s3093_s15   ;;  %s2386_s14 = sphi %s2426_s14, %s3092_s14   ;;  %s2382_s13 = sphi %s2424_s13, %s3091_s13   ;;  %s2378_s12 = sphi %s2422_s12, %s3090_s12  }
   0x4   : > { %p41_p0 = scmp.ge.s32.totalorder %s39_s17, 2  ;;  %p58_p2 = scmp.eq.s32.totalorder %s2394_s16, 0 }
   0x5   : > { %s50_s20 = sadd.s32 1, %s2382_s13  ;;  %p2006_p5 = scmp.ge.s32.totalorder %s2394_s16, 2 }
   0x6   : > { %s3095_s17 = smov (%p41_p0, %s39_s17), 0  ;;  %p2453_p3 = por %p58_p2, %p57_p1 }
   0x7   : > { %s43_s19 = ssub.s32 %s2390_s15, %s3095_s17  ;;  %177 = sbr.rel (%p2006_p5) target bundleno = 35 (0x23), region = 16 }
   0x8   : > { %p48_p4 = scmp.eq.s32.totalorder %s43_s19, 0 }
   0xa   : > { %s2461_s21 = scalar_select %p48_p4, %s2382_s13, %s50_s20  }
   0xe   : > { %180 = sbr.rel (!%p2453_p3) target bundleno = 21 (0x15), region = 20  ;;  %s182_s22 = sand.u32 (%p2453_p3), 1, %s2382_s13  }
   0xf   : > { %s2175_s23 = smul.u32 (%p2453_p3), 48, %s2390_s15  ;;  %s2007_s24 = sshll.u32 (%p2453_p3), %s182_s22, 4 }
  0x10   : > { %s184_s28 = scalar_lea.vmem (%p2453_p3), [#allocation5], %s2007_s24 }
  0x11   : > { %s191_s27 = scalar_lea.vmem (%p2453_p3), %s3065_s0, %s2175_s23 }
  0x12   : > { %v207_v0 = vld [vmem:[%s191_s27] sm:$0xf] (%p2453_p3)  ;;  %v209_v1 = vld [vmem:[%s191_s27 + $0xc] sm:$0xf] (%p2453_p3)  ;;  %v211_v2 = vld [vmem:[%s191_s27 + $0x18] sm:$0xf] (%p2453_p3) }
  0x13   : > { %208 = vst [vmem:[%s184_s28] sm:$0xf] (%p2453_p3), %v207_v0  ;;  %210 = vst [vmem:[%s184_s28 + $0x4] sm:$0xf] (%p2453_p3), %v209_v1  ;;  %v213_v3 = vld [vmem:[%s191_s27 + $0x24] sm:$0xf] (%p2453_p3) }
  0x14   : > { %212 = vst [vmem:[%s184_s28 + $0x8] sm:$0xf] (%p2453_p3), %v211_v2  ;;  %214 = vst [vmem:[%s184_s28 + $0xc] sm:$0xf] (%p2453_p3), %v213_v3 }
  0x15 PF: > { %245 = sbr.rel (!%p2453_p3) target bundleno = 28 (0x1c), region = 61  ;;  %s247_s29 = sand.u32 (%p2453_p3), 1, %s2382_s13  }
  0x16   : > { %s2010_s30 = smul.u32 (%p2453_p3), 48, %s2390_s15  ;;  %s2009_s4 = sshll.u32 (%p2453_p3), %s247_s29, 4 }
  0x17   : > { %s249_s8 = scalar_lea.vmem (%p2453_p3), [#allocation6], %s2009_s4 }
  0x18   : > { %s1901_s7 = scalar_lea.vmem (%p2453_p3), %s3066_s1, %s2010_s30 }
  0x19   : > { %v2011_v4 = vld [vmem:[%s1901_s7 + $0x4] sm:$0xf] (%p2453_p3)  ;;  %v2012_v5 = vld [vmem:[%s1901_s7 + $0x10] sm:$0xf] (%p2453_p3)  ;;  %v2013_v6 = vld [vmem:[%s1901_s7 + $0x1c] sm:$0xf] (%p2453_p3) }
  0x1a   : > { %274 = vst [vmem:[%s249_s8] sm:$0xf] (%p2453_p3), %v2011_v4  ;;  %276 = vst [vmem:[%s249_s8 + $0x4] sm:$0xf] (%p2453_p3), %v2012_v5  ;;  %v2014_v7 = vld [vmem:[%s1901_s7 + $0x28] sm:$0xf] (%p2453_p3) }
  0x1b   : > { %278 = vst [vmem:[%s249_s8 + $0x8] sm:$0xf] (%p2453_p3), %v2013_v6  ;;  %280 = vst [vmem:[%s249_s8 + $0xc] sm:$0xf] (%p2453_p3), %v2014_v7 }
  0x1c PF: > { %311 = sbr.rel (!%p2453_p3) target bundleno = 35 (0x23), region = 102  ;;  %s313_s9 = sand.u32 (%p2453_p3), 1, %s2382_s13  }
  0x1d   : > { %s2016_s10 = smul.u32 (%p2453_p3), 48, %s2390_s15  ;;  %s2015_s11 = sshll.u32 (%p2453_p3), %s313_s9, 4 }
  0x1e   : > { %s315_s23 = scalar_lea.vmem (%p2453_p3), [#allocation7], %s2015_s11 }
  0x1f   : > { %s1910_s22 = scalar_lea.vmem (%p2453_p3), %s3067_s2, %s2016_s10 }
  0x20   : > { %v2017_v8 = vld [vmem:[%s1910_s22 + $0x8] sm:$0xf] (%p2453_p3)  ;;  %v2018_v9 = vld [vmem:[%s1910_s22 + $0x14] sm:$0xf] (%p2453_p3)  ;;  %v2019_v10 = vld [vmem:[%s1910_s22 + $0x20] sm:$0xf] (%p2453_p3) }
  0x21   : > { %340 = vst [vmem:[%s315_s23] sm:$0xf] (%p2453_p3), %v2017_v8  ;;  %342 = vst [vmem:[%s315_s23 + $0x4] sm:$0xf] (%p2453_p3), %v2018_v9  ;;  %v2020_v11 = vld [vmem:[%s1910_s22 + $0x2c] sm:$0xf] (%p2453_p3) }
  0x22   : > { %344 = vst [vmem:[%s315_s23 + $0x8] sm:$0xf] (%p2453_p3), %v2019_v10  ;;  %346 = vst [vmem:[%s315_s23 + $0xc] sm:$0xf] (%p2453_p3), %v2020_v11 }
  0x23 PF: > { %p2021_p6 = scmp.ge.s32.totalorder %s2394_s16, 1  ;;  %p376_p7 = scmp.lt.s32.totalorder %s2394_s16, 3 }
  0x25   : > { %p377_p8 = pnand %p2021_p6, %p376_p7 }
  0x27   : > { %380 = sbr.rel (%p377_p8) target bundleno = 2579 (0xa13), region = 143 }
  0x2e   : > { %s383_s18 = sand.u32 1, %s2378_s12   ;;  %vm491_vm0 = vcmask 261120   ;;  %vm458_vm1 = vcmask 7168   ;;  %v2396_v18 = vmov -1e+30   ;;  %v2397_v31 = vmov 0  }
  0x2f   : > { %s2488_s24 = sshll.u32 %s383_s18, 4  ;;  %461 = vst.msk [vmem:[#allocation2 + $0x10] sm:$0xff] %vm458_vm1, %v2396_v18  ;;  %459 = vst.msk [vmem:[#allocation2] sm:$0xff] %vm458_vm1, %v2396_v18  ;;  %2223 = vset.pattern.permute.xlu1 %v2397_v31  ;;  %2222 = vset.pattern.permute.xlu0 %v2397_v31  ;;  %v2398_v32 = vmov 0.0   ;;  %s2399_s27 = smov 96   ;;  %vm1820_vm2 = vcmask 523264  }
  0x30   : > { %s392_s25 = scalar_lea.vmem [#allocation6], %s2488_s24  ;;  %s385_s26 = scalar_lea.vmem [#allocation5], %s2488_s24  ;;  %460 = vst.msk [vmem:[#allocation2 + $0x8] sm:$0xff] %vm458_vm1, %v2396_v18  ;;  %462 = vst.msk [vmem:[#allocation2 + $0x18] sm:$0xff] %vm458_vm1, %v2396_v18  ;;  %vm1825_vm3 = vcmask 785408  }
  0x31   : > { %v2491_v12 = vld [vmem:[%s392_s25] sm:$0xff]   ;;  %v2493_v13 = vld [vmem:[%s392_s25 + $0x8] sm:$0xff]   ;;  %463 = vst.msk [vmem:[#allocation2 + $0x20] sm:$0xff] %vm458_vm1, %v2396_v18  ;;  %464 = vst.msk [vmem:[#allocation2 + $0x28] sm:$0xff] %vm458_vm1, %v2396_v18  ;;  %s399_s12 = scalar_lea.vmem [#allocation7], %s2488_s24  ;;  %s2400_s28 = smov 64  }
  0x32   : > { %2167 = vmatprep.subr.msk.bf16.mxu0 %vm491_vm0, %v2491_v12  ;;  %v548_v14 = vsel %vm491_vm0, %v2491_v12, 0  ;;  %v2500_v15 = vld [vmem:[%s385_s26] sm:$0xff]   ;;  %v551_v16 = vsel %vm491_vm0, %v2493_v13, 0  ;;  %v2508_v17 = vld [vmem:[%s385_s26 + $0x8] sm:$0xff]   ;;  %465 = vst.msk [vmem:[#allocation2 + $0x30] sm:$0xff] %vm458_vm1, %v2396_v18  ;;  %466 = vst.msk [vmem:[#allocation2 + $0x38] sm:$0xff] %vm458_vm1, %v2396_v18 }
  0x33   : > { %2104 = vmatpush3.bf16.xpose.msra.mxu0 %v548_v14  ;;  %2107 = vmatprep.mubr.msk.bf16.mxu0 %vm491_vm0, %v2500_v15  ;;  %467 = vst.msk [vmem:[#allocation2 + $0x40] sm:$0xff] %vm458_vm1, %v2396_v18  ;;  %468 = vst.msk [vmem:[#allocation2 + $0x48] sm:$0xff] %vm458_vm1, %v2396_v18  ;;  %v2617_v49 = vld [vmem:[%s399_s12] sm:$0xff]   ;;  %v2623_v50 = vld [vmem:[%s399_s12 + $0x8] sm:$0xff]   ;;  %s2401_s29 = smov 32   ;;  %p441_p9 = scmp.lt.s32.totalorder %s2386_s14, 1 }
  0x34   : > { %2168 = vmatprep.subr.msk.bf16.mxu0 %vm491_vm0, %v2493_v13  ;;  %469 = vst.msk [vmem:[#allocation2 + $0x50] sm:$0xff] %vm458_vm1, %v2396_v18  ;;  %470 = vst.msk [vmem:[#allocation2 + $0x58] sm:$0xff] %vm458_vm1, %v2396_v18  ;;  %2111 = vmatprep.subr.bf16.mxu1 %v2617_v49 }
  0x35   : > { %471 = vst.msk [vmem:[#allocation2 + $0x60] sm:$0xff] %vm458_vm1, %v2396_v18  ;;  %472 = vst.msk [vmem:[#allocation2 + $0x68] sm:$0xff] %vm458_vm1, %v2396_v18  ;;  %2112 = vmatpush3.bf16.msra.mxu1 %v2617_v49  ;;  %s3097_s14 = smov (!%p441_p9, %s2386_s14), 1 }
  0x36   : > { %473 = vst.msk [vmem:[#allocation2 + $0x70] sm:$0xff] %vm458_vm1, %v2396_v18  ;;  %474 = vst.msk [vmem:[#allocation2 + $0x78] sm:$0xff] %vm458_vm1, %v2396_v18  ;;  %v2576_v33 = vld [vmem:[#allocation2 + $0x10] sm:$0xff]  ;;  %v2578_v34 = vld [vmem:[#allocation2] sm:$0xff]  ;;  %2113 = vmatprep.subr.bf16.mxu1 %v2623_v50  ;;  %s2055_s30 = sshll.u32 %s3097_s14, 4 }
  0x37   : > { %476 = vst.msk [vmem:[#allocation3 + $0x8] sm:$0xff] %vm458_vm1, %v2398_v32  ;;  %475 = vst.msk [vmem:[#allocation3] sm:$0xff] %vm458_vm1, %v2398_v32  ;;  %v2586_v39 = vld [vmem:[#allocation2 + $0x18] sm:$0xff]  ;;  %v2593_v41 = vld [vmem:[#allocation2 + $0x8] sm:$0xff]  ;;  %s451_s6 = scalar_lea.vmem %s3068_s3, %s2055_s30 }
  0x38   : > { %477 = vst.msk [vmem:[#allocation3 + $0x10] sm:$0xff] %vm458_vm1, %v2398_v32  ;;  %478 = vst.msk [vmem:[#allocation3 + $0x18] sm:$0xff] %vm458_vm1, %v2398_v32  ;;  %v2669_v31 = vld [vmem:[#allocation2 + $0x20] sm:$0xff] }
  0x39   : > { %479 = vst.msk [vmem:[#allocation3 + $0x20] sm:$0xff] %vm458_vm1, %v2398_v32  ;;  %480 = vst.msk [vmem:[#allocation3 + $0x28] sm:$0xff] %vm458_vm1, %v2398_v32  ;;  %2114 = vmatpush3.bf16.msra.mxu1 %v2623_v50 }
  0x3a   : > { %481 = vst.msk [vmem:[#allocation3 + $0x30] sm:$0xff] %vm458_vm1, %v2398_v32  ;;  %482 = vst.msk [vmem:[#allocation3 + $0x38] sm:$0xff] %vm458_vm1, %v2398_v32 }
  0x3b   : > { %2106 = vmatpush3.bf16.xpose.msra.mxu0 %v551_v16  ;;  %483 = vst.msk [vmem:[#allocation3 + $0x40] sm:$0xff] %vm458_vm1, %v2398_v32  ;;  %484 = vst.msk [vmem:[#allocation3 + $0x48] sm:$0xff] %vm458_vm1, %v2398_v32 }
  0x3c   : > { %485 = vst.msk [vmem:[#allocation3 + $0x50] sm:$0xff] %vm458_vm1, %v2398_v32  ;;  %486 = vst.msk [vmem:[#allocation3 + $0x58] sm:$0xff] %vm458_vm1, %v2398_v32  ;;  %v2851_v47 = vld [vmem:[#allocation2 + $0x68] sm:$0xff] }
  0x3d   : > { %487 = vst.msk [vmem:[#allocation3 + $0x60] sm:$0xff] %vm458_vm1, %v2398_v32  ;;  %488 = vst.msk [vmem:[#allocation3 + $0x68] sm:$0xff] %vm458_vm1, %v2398_v32  ;;  %v2856_v48 = vld [vmem:[#allocation2 + $0x78] sm:$0xff]  ;;  %v2866_v42 = vld [vmem:[#allocation2 + $0x70] sm:$0xff] }
  0x3e   : > { %489 = vst.msk [vmem:[#allocation3 + $0x70] sm:$0xff] %vm458_vm1, %v2398_v32  ;;  %490 = vst.msk [vmem:[#allocation3 + $0x78] sm:$0xff] %vm458_vm1, %v2398_v32 }
  0x3f   : > { %492 = vst.msk [vmem:[#allocation4] sm:$0xff] %vm491_vm0, %v2398_v32  ;;  %493 = vst.msk [vmem:[#allocation4 + $0x8] sm:$0xff] %vm491_vm0, %v2398_v32 }
  0x40   : > { %494 = vst.msk [vmem:[#allocation4 + $0x10] sm:$0xff] %vm491_vm0, %v2398_v32  ;;  %495 = vst.msk [vmem:[#allocation4 + $0x18] sm:$0xff] %vm491_vm0, %v2398_v32 }
  0x41   : > { %496 = vst.msk [vmem:[#allocation4 + $0x20] sm:$0xff] %vm491_vm0, %v2398_v32  ;;  %497 = vst.msk [vmem:[#allocation4 + $0x28] sm:$0xff] %vm491_vm0, %v2398_v32 }
  0x42   : > { %2108 = vmatmul.mubr.msk.bf16.vlgmr.msra.gmra.mrb[0].mxu0 %vm491_vm0, %v2508_v17  ;;  %498 = vst.msk [vmem:[#allocation4 + $0x30] sm:$0xff] %vm491_vm0, %v2398_v32  ;;  %499 = vst.msk [vmem:[#allocation4 + $0x38] sm:$0xff] %vm491_vm0, %v2398_v32 }
  0x43   : > { %500 = vst.msk [vmem:[#allocation4 + $0x40] sm:$0xff] %vm491_vm0, %v2398_v32  ;;  %501 = vst.msk [vmem:[#allocation4 + $0x48] sm:$0xff] %vm491_vm0, %v2398_v32 }
  0x44   : > { %502 = vst.msk [vmem:[#allocation4 + $0x50] sm:$0xff] %vm491_vm0, %v2398_v32  ;;  %503 = vst.msk [vmem:[#allocation4 + $0x58] sm:$0xff] %vm491_vm0, %v2398_v32 }
  0x45   : > { %504 = vst.msk [vmem:[#allocation4 + $0x60] sm:$0xff] %vm491_vm0, %v2398_v32  ;;  %505 = vst.msk [vmem:[#allocation4 + $0x68] sm:$0xff] %vm491_vm0, %v2398_v32 }
  0x46   : > { %506 = vst.msk [vmem:[#allocation4 + $0x70] sm:$0xff] %vm491_vm0, %v2398_v32  ;;  %507 = vst.msk [vmem:[#allocation4 + $0x78] sm:$0xff] %vm491_vm0, %v2398_v32 }
 0x115   : > { %v2109_v19 = vpop.f32.mrb[0].mxu0 }
 0x116   : > { %v2528_v20 = vmul.f32 0.17677669, %v2109_v19  ;;  %v587_v21 = vpop.f32.mrb[1].mxu0 }
 0x117   : > { %v2530_v22 = vmul.f32 0.17677669, %v587_v21  ;;  %v2110_v23 = vpop.f32.mrb[2].mxu0 }
 0x118   : > { %v2532_v24 = vmul.f32 0.17677669, %v2110_v23  ;;  %v590_v25 = vpop.f32.mrb[3].mxu0  ;;  %v616_v26 = vsel %vm491_vm0, %v2528_v20, -inf }
 0x119   : > { %v2536_v27 = vmul.f32 0.17677669, %v590_v25  ;;  %617 = vmax.xlane.f32.xlu1 %v616_v26  ;;  %v610_v28 = vsel %vm491_vm0, %v2530_v22, -inf }
 0x11a   : > { %611 = vmax.xlane.f32.xlu0 %v610_v28  ;;  %v619_v29 = vsel %vm491_vm0, %v2532_v24, -inf }
 0x11b   : > { %v613_v30 = vsel %vm491_vm0, %v2536_v27, -inf }
 0x11d   : > { %620 = vmax.xlane.f32.xlu1 %v619_v29 }
 0x11e   : > { %614 = vmax.xlane.f32.xlu0 %v613_v30 }
 0x1a6   : > { %v618_v35 = vpop.xlane.xlu1 %617 }
 0x1a7   : > { %v2581_v36 = vmax.f32 %v2576_v33, %v618_v35  ;;  %v612_v37 = vpop.xlane.xlu0 %611  ;;  %v2671_v35 = vld [vmem:[#allocation2 + $0x28] sm:$0xff] }
 0x1a8   : > { %v2584_v38 = vmax.f32 %v2578_v34, %v612_v37 }
 0x1a9   : > { %806 = vst.msk [vmem:[#allocation2 + $0x10] sm:$0xff] %vm458_vm1, %v2581_v36  ;;  %650 = vperm.xlu1 %2223, %v2581_v36  }
 0x1aa   : > { %804 = vst.msk [vmem:[#allocation2] sm:$0xff] %vm458_vm1, %v2584_v38  ;;  %v621_v43 = vpop.xlane.xlu1 %620  ;;  %640 = vperm.xlu0 %2222, %v2584_v38  }
 0x1ab   : > { %v2601_v44 = vmax.f32 %v2586_v39, %v621_v43  ;;  %v615_v45 = vpop.xlane.xlu0 %614 }
 0x1ac   : > { %v2604_v46 = vmax.f32 %v2593_v41, %v615_v45  ;;  %v2676_v45 = vld [vmem:[#allocation2 + $0x38] sm:$0xff] }
 0x1ad   : > { %807 = vst.msk [vmem:[#allocation2 + $0x18] sm:$0xff] %vm458_vm1, %v2601_v44 }
 0x1ae   : > { %805 = vst.msk [vmem:[#allocation2 + $0x8] sm:$0xff] %vm458_vm1, %v2604_v46  ;;  %645 = vperm.xlu1 %2223, %v2604_v46  }
 0x1b2   : > { %655 = vperm.xlu1 %2223, %v2601_v44  }
 0x1b6   : > { %812 = vrot.lane.b32.xlu1 %v2491_v12, %s2399_s27 }
 0x1ba   : > { %814 = vrot.lane.b32.xlu1 %v2493_v13, %s2399_s27 }
 0x1be   : > { %808 = vrot.lane.b32.xlu1 %v2500_v15, %s2399_s27 }
 0x1c2   : > { %810 = vrot.lane.b32.xlu1 %v2508_v17, %s2399_s27 }
 0x228   : > { %v651_v51 = vpop.permute.xlu1 %650 }
 0x229   : > { %v641_v52 = vpop.permute.xlu0 %640  ;;  %v660_v54 = vsub.f32 %v2528_v20, %v651_v51 }
 0x22a   : > { %v658_v53 = vsub.f32 %v2530_v22, %v641_v52 }
 0x22b   : > { %v666_v59 = vmul.f32 1.442695, %v660_v54  ;;  %v2686_v54 = vld [vmem:[#allocation2 + $0x30] sm:$0xff] }
 0x22c   : > { %v662_v55 = vmul.f32 1.442695, %v658_v53 }
 0x22d   : > { %v646_v56 = vpop.permute.xlu1 %645 }
 0x22e   : > { %v659_v57 = vsub.f32 %v2536_v27, %v646_v56  ;;  %2260 = vpow2.f32 %v662_v55 }
 0x230   : > { %v664_v58 = vmul.f32 1.442695, %v659_v57 }
 0x231   : > { %v656_v60 = vpop.permute.xlu1 %655 }
 0x232   : > { %2262 = vpow2.f32 %v664_v58  ;;  %v661_v61 = vsub.f32 %v2532_v24, %v656_v60 }
 0x233   : > { %2264 = vpow2.f32 %v666_v59 }
 0x234   : > { %v668_v62 = vmul.f32 1.442695, %v661_v61 }
 0x235   : > { %v813_v63 = vpop.permute.xlu1 %812 }
 0x236   : > { %2266 = vpow2.f32 %v668_v62  ;;  %2169 = vmatprep.subr.msk.bf16.mxu1 %vm491_vm0, %v813_v63  ;;  %v823_v7 = vsel %vm491_vm0, %v813_v63, 0 }
 0x238   : > { %v2638_v0 = vpop.eup %2260 }
 0x239   : > { %v815_v1 = vpop.permute.xlu1 %814 }
 0x23a   : > { %v826_v9 = vsel %vm491_vm0, %v815_v1, 0 }
 0x23c   : > { %v2640_v2 = vpop.eup %2262 }
 0x23d   : > { %v727_v3 = vpack.c.bf16 %v2640_v2, %v2638_v0  ;;  %v2644_v4 = vpop.eup %2264  ;;  %v809_v8 = vpop.permute.xlu1 %808 }
 0x23f   : > { %2115 = vmatprep.mubr.msk.bf16.mxu1 %vm491_vm0, %v727_v3 }
 0x240   : > { %v2647_v5 = vpop.eup %2266 }
 0x241   : > { %v728_v6 = vpack.c.bf16 %v2647_v5, %v2644_v4  ;;  %v811_v10 = vpop.permute.xlu1 %810 }
 0x243   : > { %2116 = vmatmul.mubr.msk.bf16.vlgmr.msra.gmra.mrb[0].mxu1 %vm491_vm0, %v728_v6 }
 0x244   : > { %2120 = vmatpush3.bf16.xpose.msra.mxu1 %v823_v7  ;;  %2123 = vmatprep.mubr.msk.bf16.mxu1 %vm491_vm0, %v809_v8 }
 0x245   : > { %2170 = vmatprep.subr.msk.bf16.mxu1 %vm491_vm0, %v815_v1 }
 0x24c   : > { %2122 = vmatpush3.bf16.xpose.msra.mxu1 %v826_v9 }
 0x253   : > { %2124 = vmatmul.mubr.msk.bf16.vlgmr.msra.gmra.mrb[4].mxu1 %vm491_vm0, %v811_v10 }
 0x316   : > { %v2657_v11 = vpop.f32.mrb[0].mxu1 }
 0x317   : > { %v2659_v14 = vpop.f32.mrb[1].mxu1 }
 0x318   : > { %v2661_v16 = vpop.f32.mrb[2].mxu1 }
 0x319   : > { %v2663_v18 = vpop.f32.mrb[3].mxu1 }
 0x326   : > { %v2125_v19 = vpop.f32.mrb[4].mxu1 }
 0x327   : > { %v862_v20 = vpop.f32.mrb[5].mxu1  ;;  %v879_v27 = vmul.f32 0.17677669, %v2125_v19 }
 0x328   : > { %v877_v21 = vmul.f32 0.17677669, %v862_v20  ;;  %v2126_v22 = vpop.f32.mrb[6].mxu1 }
 0x329   : > { %v865_v23 = vpop.f32.mrb[7].mxu1  ;;  %v880_v24 = vmul.f32 0.17677669, %v2126_v22  ;;  %v892_v30 = vsel %vm491_vm0, %v879_v27, -inf }
 0x32a   : > { %v878_v25 = vmul.f32 0.17677669, %v865_v23  ;;  %v886_v26 = vsel %vm491_vm0, %v877_v21, -inf }
 0x32b   : > { %887 = vmax.xlane.f32.xlu1 %v886_v26  ;;  %v895_v29 = vsel %vm491_vm0, %v880_v24, -inf }
 0x32c   : > { %v889_v28 = vsel %vm491_vm0, %v878_v25, -inf }
 0x32d   : > { %890 = vmax.xlane.f32.xlu0 %v889_v28 }
 0x32f   : > { %896 = vmax.xlane.f32.xlu1 %v895_v29 }
 0x331   : > { %893 = vmax.xlane.f32.xlu0 %v892_v30 }
 0x3b8   : > { %v888_v32 = vpop.xlane.xlu1 %887 }
 0x3b9   : > { %v2674_v37 = vmax.f32 %v2669_v31, %v888_v32 }
 0x3ba   : > { %v891_v43 = vpop.xlane.xlu0 %890 }
 0x3bb   : > { %1075 = vst.msk [vmem:[#allocation2 + $0x20] sm:$0xff] %vm458_vm1, %v2674_v37  ;;  %v2683_v52 = vmax.f32 %v2671_v35, %v891_v43  ;;  %916 = vperm.xlu0 %2222, %v2674_v37  }
 0x3bc   : > { %v897_v53 = vpop.xlane.xlu1 %896 }
 0x3bd   : > { %1076 = vst.msk [vmem:[#allocation2 + $0x28] sm:$0xff] %vm458_vm1, %v2683_v52  ;;  %v2693_v56 = vmax.f32 %v2676_v45, %v897_v53  ;;  %921 = vperm.xlu1 %2223, %v2683_v52  }
 0x3be   : > { %v894_v57 = vpop.xlane.xlu0 %893 }
 0x3bf   : > { %1078 = vst.msk [vmem:[#allocation2 + $0x38] sm:$0xff] %vm458_vm1, %v2693_v56  ;;  %v2701_v59 = vmax.f32 %v2686_v54, %v894_v57  ;;  %931 = vperm.xlu0 %2222, %v2693_v56  }
 0x3c1   : > { %1077 = vst.msk [vmem:[#allocation2 + $0x30] sm:$0xff] %vm458_vm1, %v2701_v59  ;;  %926 = vperm.xlu1 %2223, %v2701_v59  }
 0x3c3   : > { %1008 = vrot.lane.b32.xlu0 %v2623_v50, %s2399_s27 }
 0x3c5   : > { %1006 = vrot.lane.b32.xlu1 %v2617_v49, %s2399_s27 }
 0x3c7   : > { %1085 = vrot.lane.b32.xlu0 %v2493_v13, %s2400_s28 }
 0x3c9   : > { %1083 = vrot.lane.b32.xlu1 %v2491_v12, %s2400_s28 }
 0x3cb   : > { %1081 = vrot.lane.b32.xlu0 %v2508_v17, %s2400_s28 }
 0x3cd   : > { %1079 = vrot.lane.b32.xlu1 %v2500_v15, %s2400_s28 }
 0x43a   : > { %v917_v61 = vpop.permute.xlu0 %916 }
 0x43b   : > { %v934_v62 = vsub.f32 %v877_v21, %v917_v61 }
 0x43c   : > { %v922_v63 = vpop.permute.xlu1 %921 }
 0x43d   : > { %v938_v1 = vmul.f32 1.442695, %v934_v62  ;;  %v935_v3 = vsub.f32 %v878_v25, %v922_v63 }
 0x43e   : > { %v932_v6 = vpop.permute.xlu0 %931 }
 0x43f   : > { %v940_v7 = vmul.f32 1.442695, %v935_v3  ;;  %v937_v8 = vsub.f32 %v880_v24, %v932_v6  ;;  %2268 = vpow2.f32 %v938_v1 }
 0x440   : > { %v927_v9 = vpop.permute.xlu1 %926 }
 0x441   : > { %2270 = vpow2.f32 %v940_v7  ;;  %v944_v10 = vmul.f32 1.442695, %v937_v8  ;;  %v936_v19 = vsub.f32 %v879_v27, %v927_v9 }
 0x442   : > { %v1009_v23 = vpop.permute.xlu0 %1008 }
 0x443   : > { %v942_v20 = vmul.f32 1.442695, %v936_v19  ;;  %2272 = vpow2.f32 %v944_v10 }
 0x444   : > { %v1007_v22 = vpop.permute.xlu1 %1006 }
 0x445   : > { %2274 = vpow2.f32 %v942_v20  ;;  %2127 = vmatprep.subr.bf16.mxu0 %v1007_v22 }
 0x446   : > { %2128 = vmatpush3.bf16.msra.mxu0 %v1007_v22  ;;  %v1086_v43 = vpop.permute.xlu0 %1085 }
 0x447   : > { %2129 = vmatprep.subr.bf16.mxu0 %v1009_v23  ;;  %v1097_v53 = vsel %vm491_vm0, %v1086_v43, 0 }
 0x448   : > { %v1084_v21 = vpop.permute.xlu1 %1083 }
 0x449   : > { %v2721_v26 = vpop.eup %2268  ;;  %v1094_v29 = vsel %vm491_vm0, %v1084_v21, 0 }
 0x44a   : > { %2130 = vmatpush3.bf16.msra.mxu0 %v1009_v23  ;;  %v1082_v57 = vpop.permute.xlu0 %1081 }
 0x44b   : > { %v2723_v25 = vpop.eup %2270  ;;  %2171 = vmatprep.subr.msk.bf16.mxu0 %vm491_vm0, %v1084_v21 }
 0x44c   : > { %v1004_v24 = vpack.c.bf16 %v2723_v25, %v2721_v26  ;;  %v1080_v32 = vpop.permute.xlu1 %1079 }
 0x44d   : > { %v2728_v27 = vpop.eup %2272 }
 0x44e   : > { %2131 = vmatprep.mubr.msk.bf16.mxu0 %vm491_vm0, %v1004_v24 }
 0x44f   : > { %v2731_v28 = vpop.eup %2274 }
 0x450   : > { %v1005_v30 = vpack.c.bf16 %v2728_v27, %v2731_v28 }
 0x452   : > { %2132 = vmatmul.mubr.msk.bf16.vlgmr.msra.gmra.mrb[4].mxu0 %vm491_vm0, %v1005_v30 }
 0x453   : > { %2136 = vmatpush3.bf16.xpose.msra.mxu0 %v1094_v29  ;;  %2139 = vmatprep.mubr.msk.bf16.mxu0 %vm491_vm0, %v1080_v32  ;;  %v2753_v29 = vld [vmem:[#allocation2 + $0x40] sm:$0xff]  ;;  %v2755_v32 = vld [vmem:[#allocation2 + $0x48] sm:$0xff] }
 0x454   : > { %2172 = vmatprep.subr.msk.bf16.mxu0 %vm491_vm0, %v1086_v43 }
 0x45b   : > { %2138 = vmatpush3.bf16.xpose.msra.mxu0 %v1097_v53 }
 0x462   : > { %2140 = vmatmul.mubr.msk.bf16.vlgmr.msra.gmra.mrb[8].mxu0 %vm491_vm0, %v1082_v57  ;;  %v2760_v57 = vld [vmem:[#allocation2 + $0x58] sm:$0xff] }
 0x525   : > { %v2741_v61 = vpop.f32.mrb[4].mxu0 }
 0x526   : > { %v2743_v62 = vpop.f32.mrb[5].mxu0 }
 0x527   : > { %v2745_v63 = vpop.f32.mrb[6].mxu0 }
 0x528   : > { %v2747_v1 = vpop.f32.mrb[7].mxu0 }
 0x535   : > { %v2141_v3 = vpop.f32.mrb[8].mxu0 }
 0x536   : > { %v1133_v6 = vpop.f32.mrb[9].mxu0  ;;  %v1150_v22 = vmul.f32 0.17677669, %v2141_v3 }
 0x537   : > { %v1148_v7 = vmul.f32 0.17677669, %v1133_v6  ;;  %v2142_v8 = vpop.f32.mrb[10].mxu0 }
 0x538   : > { %v1136_v9 = vpop.f32.mrb[11].mxu0  ;;  %v1151_v10 = vmul.f32 0.17677669, %v2142_v8  ;;  %v1163_v24 = vsel %vm491_vm0, %v1150_v22, -inf }
 0x539   : > { %v1149_v19 = vmul.f32 0.17677669, %v1136_v9  ;;  %v1157_v20 = vsel %vm491_vm0, %v1148_v7, -inf  ;;  %v2770_v9 = vld [vmem:[#allocation2 + $0x50] sm:$0xff] }
 0x53a   : > { %1158 = vmax.xlane.f32.xlu1 %v1157_v20  ;;  %v1166_v21 = vsel %vm491_vm0, %v1151_v10, -inf }
 0x53b   : > { %v1160_v23 = vsel %vm491_vm0, %v1149_v19, -inf }
 0x53c   : > { %1161 = vmax.xlane.f32.xlu0 %v1160_v23 }
 0x53e   : > { %1167 = vmax.xlane.f32.xlu1 %v1166_v21 }
 0x540   : > { %1164 = vmax.xlane.f32.xlu0 %v1163_v24 }
 0x5c7   : > { %v1159_v30 = vpop.xlane.xlu1 %1158 }
 0x5c8   : > { %v2758_v43 = vmax.f32 %v2753_v29, %v1159_v30 }
 0x5c9   : > { %v1162_v53 = vpop.xlane.xlu0 %1161 }
 0x5ca   : > { %1346 = vst.msk [vmem:[#allocation2 + $0x40] sm:$0xff] %vm458_vm1, %v2758_v43  ;;  %v2767_v6 = vmax.f32 %v2755_v32, %v1162_v53  ;;  %1187 = vperm.xlu0 %2222, %v2758_v43  }
 0x5cb   : > { %v1168_v8 = vpop.xlane.xlu1 %1167 }
 0x5cc   : > { %1347 = vst.msk [vmem:[#allocation2 + $0x48] sm:$0xff] %vm458_vm1, %v2767_v6  ;;  %v2777_v23 = vmax.f32 %v2760_v57, %v1168_v8  ;;  %1192 = vperm.xlu1 %2223, %v2767_v6  }
 0x5cd   : > { %v1165_v21 = vpop.xlane.xlu0 %1164 }
 0x5ce   : > { %1349 = vst.msk [vmem:[#allocation2 + $0x58] sm:$0xff] %vm458_vm1, %v2777_v23  ;;  %v2785_v30 = vmax.f32 %v2770_v9, %v1165_v21  ;;  %1202 = vperm.xlu0 %2222, %v2777_v23  }
 0x5d0   : > { %1348 = vst.msk [vmem:[#allocation2 + $0x50] sm:$0xff] %vm458_vm1, %v2785_v30  ;;  %1197 = vperm.xlu1 %2223, %v2785_v30  }
 0x5d2   : > { %1279 = vrot.lane.b32.xlu0 %v2623_v50, %s2400_s28 }
 0x5d4   : > { %1277 = vrot.lane.b32.xlu1 %v2617_v49, %s2400_s28 }
 0x5d6   : > { %1356 = vrot.lane.b32.xlu0 %v2493_v13, %s2401_s29 }
 0x5d8   : > { %1354 = vrot.lane.b32.xlu1 %v2491_v12, %s2401_s29 }
 0x5da   : > { %1352 = vrot.lane.b32.xlu0 %v2508_v17, %s2401_s29 }
 0x5dc   : > { %1350 = vrot.lane.b32.xlu1 %v2500_v15, %s2401_s29 }
 0x649   : > { %v1188_v8 = vpop.permute.xlu0 %1187 }
 0x64a   : > { %v1205_v21 = vsub.f32 %v1148_v7, %v1188_v8 }
 0x64b   : > { %v1193_v24 = vpop.permute.xlu1 %1192 }
 0x64c   : > { %v1209_v53 = vmul.f32 1.442695, %v1205_v21  ;;  %v1206_v20 = vsub.f32 %v1149_v19, %v1193_v24 }
 0x64d   : > { %v1203_v58 = vpop.permute.xlu0 %1202 }
 0x64e   : > { %v1211_v60 = vmul.f32 1.442695, %v1206_v20  ;;  %v1208_v3 = vsub.f32 %v1151_v10, %v1203_v58  ;;  %2276 = vpow2.f32 %v1209_v53 }
 0x64f   : > { %v1198_v55 = vpop.permute.xlu1 %1197 }
 0x650   : > { %2278 = vpow2.f32 %v1211_v60  ;;  %v1215_v13 = vmul.f32 1.442695, %v1208_v3  ;;  %v1207_v51 = vsub.f32 %v1150_v22, %v1198_v55 }
 0x651   : > { %v1280_v17 = vpop.permute.xlu0 %1279 }
 0x652   : > { %v1213_v12 = vmul.f32 1.442695, %v1207_v51  ;;  %2280 = vpow2.f32 %v1215_v13 }
 0x653   : > { %v1278_v40 = vpop.permute.xlu1 %1277 }
 0x654   : > { %2282 = vpow2.f32 %v1213_v12  ;;  %2143 = vmatprep.subr.bf16.mxu1 %v1278_v40 }
 0x655   : > { %2144 = vmatpush3.bf16.msra.mxu1 %v1278_v40  ;;  %v1357_v22 = vpop.permute.xlu0 %1356 }
 0x656   : > { %2145 = vmatprep.subr.bf16.mxu1 %v1280_v17  ;;  %v1368_v3 = vsel %vm491_vm0, %v1357_v22, 0 }
 0x657   : > { %v1355_v15 = vpop.permute.xlu1 %1354 }
 0x658   : > { %v2805_v7 = vpop.eup %2276  ;;  %v1365_v40 = vsel %vm491_vm0, %v1355_v15, 0 }
 0x659   : > { %2146 = vmatpush3.bf16.msra.mxu1 %v1280_v17  ;;  %v1353_v20 = vpop.permute.xlu0 %1352 }
 0x65a   : > { %v2807_v19 = vpop.eup %2278  ;;  %2173 = vmatprep.subr.msk.bf16.mxu1 %vm491_vm0, %v1355_v15 }
 0x65b   : > { %v1275_v58 = vpack.c.bf16 %v2807_v19, %v2805_v7  ;;  %v1351_v10 = vpop.permute.xlu1 %1350 }
 0x65c   : > { %v2812_v55 = vpop.eup %2280 }
 0x65d   : > { %2147 = vmatprep.mubr.msk.bf16.mxu1 %vm491_vm0, %v1275_v58 }
 0x65e   : > { %v2815_v51 = vpop.eup %2282 }
 0x65f   : > { %v1276_v60 = vpack.c.bf16 %v2812_v55, %v2815_v51 }
 0x661   : > { %2148 = vmatmul.mubr.msk.bf16.vlgmr.msra.gmra.mrb[8].mxu1 %vm491_vm0, %v1276_v60 }
 0x662   : > { %2152 = vmatpush3.bf16.xpose.msra.mxu1 %v1365_v40  ;;  %2155 = vmatprep.mubr.msk.bf16.mxu1 %vm491_vm0, %v1351_v10 }
 0x663   : > { %2174 = vmatprep.subr.msk.bf16.mxu1 %vm491_vm0, %v1357_v22 }
 0x66a   : > { %2154 = vmatpush3.bf16.xpose.msra.mxu1 %v1368_v3 }
 0x671   : > { %2156 = vmatmul.mubr.msk.bf16.vlgmr.msra.gmra.mrb[12].mxu1 %vm491_vm0, %v1353_v20 }
 0x734   : > { %v2825_v24 = vpop.f32.mrb[8].mxu1 }
 0x735   : > { %3070 = vst [vmem:[#allocation8_spill] sm:$0xff] %v2825_v24  ;;  %v2827_v53 = vpop.f32.mrb[9].mxu1 }
 0x736   : > { %v2829_v8 = vpop.f32.mrb[10].mxu1 }
 0x737   : > { %3071 = vst [vmem:[#allocation9_spill] sm:$0xff] %v2829_v8  ;;  %v2831_v21 = vpop.f32.mrb[11].mxu1 }
 0x744   : > { %v2157_v13 = vpop.f32.mrb[12].mxu1 }
 0x745   : > { %v1404_v12 = vpop.f32.mrb[13].mxu1  ;;  %v2841_v22 = vmul.f32 0.17677669, %v2157_v13 }
 0x746   : > { %v2833_v17 = vmul.f32 0.17677669, %v1404_v12  ;;  %v2158_v15 = vpop.f32.mrb[14].mxu1 }
 0x747   : > { %v1407_v58 = vpop.f32.mrb[15].mxu1  ;;  %v2835_v40 = vmul.f32 0.17677669, %v2158_v15  ;;  %v1434_v12 = vsel %vm491_vm0, %v2841_v22, -inf  ;;  %v2849_v15 = vld [vmem:[#allocation2 + $0x60] sm:$0xff] }
 0x748   : > { %v2837_v60 = vmul.f32 0.17677669, %v1407_v58  ;;  %v1428_v10 = vsel %vm491_vm0, %v2833_v17, -inf }
 0x749   : > { %1429 = vmax.xlane.f32.xlu1 %v1428_v10  ;;  %v1437_v20 = vsel %vm491_vm0, %v2835_v40, -inf }
 0x74a   : > { %v1431_v3 = vsel %vm491_vm0, %v2837_v60, -inf }
 0x74b   : > { %1432 = vmax.xlane.f32.xlu0 %v1431_v3 }
 0x74d   : > { %1438 = vmax.xlane.f32.xlu1 %v1437_v20 }
 0x74f   : > { %1435 = vmax.xlane.f32.xlu0 %v1434_v12 }
 0x7d6   : > { %v1430_v58 = vpop.xlane.xlu1 %1429 }
 0x7d7   : > { %v2854_v13 = vmax.f32 %v2849_v15, %v1430_v58  ;;  %v958_v58 = vsel %vm491_vm0, %v2723_v25, 0.0  ;;  %v1232_v25 = vsel %vm491_vm0, %v2815_v51, 0.0 }
 0x7d8   : > { %v1433_v10 = vpop.xlane.xlu0 %1432 }
 0x7d9   : > { %1617 = vst.msk [vmem:[#allocation2 + $0x60] sm:$0xff] %vm458_vm1, %v2854_v13  ;;  %v2863_v20 = vmax.f32 %v2851_v47, %v1433_v10  ;;  %1458 = vperm.xlu0 %2222, %v2854_v13   ;;  %v678_v10 = vsel %vm491_vm0, %v2638_v0, 0.0  ;;  %v964_v0 = vsel %vm491_vm0, %v2728_v27, 0.0 }
 0x7da   : > { %v1439_v12 = vpop.xlane.xlu1 %1438 }
 0x7db   : > { %1618 = vst.msk [vmem:[#allocation2 + $0x68] sm:$0xff] %vm458_vm1, %v2863_v20  ;;  %v2873_v8 = vmax.f32 %v2856_v48, %v1439_v12  ;;  %1463 = vperm.xlu1 %2223, %v2863_v20   ;;  %v684_v12 = vsel %vm491_vm0, %v2644_v4, 0.0  ;;  %v1226_v4 = vsel %vm491_vm0, %v2805_v7, 0.0 }
 0x7dc   : > { %v1436_v3 = vpop.xlane.xlu0 %1435 }
 0x7dd   : > { %1620 = vst.msk [vmem:[#allocation2 + $0x78] sm:$0xff] %vm458_vm1, %v2873_v8  ;;  %v2881_v24 = vmax.f32 %v2866_v42, %v1436_v3  ;;  %1473 = vperm.xlu0 %2222, %v2873_v8   ;;  %v681_v3 = vsel %vm491_vm0, %v2640_v2, 0.0  ;;  %v955_v2 = vsel %vm491_vm0, %v2721_v26, 0.0  ;;  %v1235_v26 = vsel %vm491_vm0, %v2812_v55, 0.0 }
 0x7df   : > { %1619 = vst.msk [vmem:[#allocation2 + $0x70] sm:$0xff] %vm458_vm1, %v2881_v24  ;;  %1468 = vperm.xlu1 %2223, %v2881_v24  }
 0x7e1   : > { %1550 = vrot.lane.b32.xlu0 %v2623_v50, %s2401_s29  ;;  %v687_v50 = vsel %vm491_vm0, %v2647_v5, 0.0  ;;  %v1229_v5 = vsel %vm491_vm0, %v2807_v19, 0.0 }
 0x7e3   : > { %1548 = vrot.lane.b32.xlu1 %v2617_v49, %s2401_s29  ;;  %v961_v49 = vsel %vm491_vm0, %v2731_v28, 0.0 }
 0x800   : > { %682 = vadd.xlane.f32.xlu0 %v681_v3 }
 0x804   : > { %685 = vadd.xlane.f32.xlu0 %v684_v12 }
 0x807   : > { %679 = vadd.xlane.f32.xlu1 %v678_v10 }
 0x808   : > { %959 = vadd.xlane.f32.xlu0 %v958_v58 }
 0x80b   : > { %688 = vadd.xlane.f32.xlu1 %v687_v50 }
 0x80c   : > { %962 = vadd.xlane.f32.xlu0 %v961_v49 }
 0x80f   : > { %956 = vadd.xlane.f32.xlu1 %v955_v2 }
 0x813   : > { %965 = vadd.xlane.f32.xlu1 %v964_v0 }
 0x817   : > { %1227 = vadd.xlane.f32.xlu1 %v1226_v4 }
 0x81b   : > { %1230 = vadd.xlane.f32.xlu1 %v1229_v5 }
 0x81f   : > { %1233 = vadd.xlane.f32.xlu1 %v1232_v25 }
 0x823   : > { %1236 = vadd.xlane.f32.xlu1 %v1235_v26 }
 0x858   : > { %v1459_v28 = vpop.permute.xlu0 %1458 }
 0x859   : > { %v1476_v27 = vsub.f32 %v2833_v17, %v1459_v28 }
 0x85a   : > { %v1464_v58 = vpop.permute.xlu1 %1463 }
 0x85b   : > { %v1480_v10 = vmul.f32 1.442695, %v1476_v27  ;;  %v1477_v7 = vsub.f32 %v2837_v60, %v1464_v58  ;;  %v3072_v27 = vsub.f32 %v2578_v34, %v2584_v38  ;;  %v3076_v34 = vsub.f32 %v2669_v31, %v2674_v37 }
 0x85c   : > { %v1474_v3 = vpop.permute.xlu0 %1473  ;;  %v3080_v31 = vsub.f32 %v2866_v42, %v2881_v24  ;;  %v671_v42 = vld [vmem:[#allocation3 + $0x8] sm:$0xff] }
 0x85d   : > { %2284 = vpow2.f32 %v1480_v10  ;;  %v1482_v12 = vmul.f32 1.442695, %v1477_v7  ;;  %v1479_v19 = vsub.f32 %v2835_v40, %v1474_v3  ;;  %v630_v58 = vmul.f32 1.442695, %v3072_v27 }
 0x85e   : > { %v1469_v50 = vpop.permute.xlu1 %1468  ;;  %v3073_v7 = vsub.f32 %v2593_v41, %v2604_v46  ;;  %v906_v38 = vmul.f32 1.442695, %v3076_v34  ;;  %v3077_v41 = vsub.f32 %v2671_v35, %v2683_v52  ;;  %v1452_v37 = vmul.f32 1.442695, %v3080_v31 }
 0x85f   : > { %2286 = vpow2.f32 %v1482_v12  ;;  %v1486_v51 = vmul.f32 1.442695, %v1479_v19  ;;  %v1478_v49 = vsub.f32 %v2841_v22, %v1469_v50  ;;  %v3074_v12 = vsub.f32 %v2586_v39, %v2601_v44 }
 0x860   : > { %v1551_v0 = vpop.permute.xlu0 %1550  ;;  %v632_v3 = vmul.f32 1.442695, %v3073_v7  ;;  %v3075_v50 = vsub.f32 %v2576_v33, %v2581_v36  ;;  %v908_v46 = vmul.f32 1.442695, %v3077_v41  ;;  %v3078_v39 = vsub.f32 %v2753_v29, %v2758_v43 }
 0x861   : > { %v1484_v2 = vmul.f32 1.442695, %v1478_v49  ;;  %2288 = vpow2.f32 %v1486_v51  ;;  %v636_v19 = vmul.f32 1.442695, %v3074_v12  ;;  %v3079_v33 = vsub.f32 %v2686_v54, %v2701_v59 }
 0x862   : > { %v1549_v55 = vpop.permute.xlu1 %1548  ;;  %v634_v51 = vmul.f32 1.442695, %v3075_v50  ;;  %v1177_v44 = vmul.f32 1.442695, %v3078_v39  ;;  %v3081_v52 = vsub.f32 %v2676_v45, %v2693_v56  ;;  %v3082_v54 = vsub.f32 %v2755_v32, %v2767_v6  ;;  %v949_v50 = vld [vmem:[#allocation3 + $0x30] sm:$0xff]  ;;  %v947_v39 = vld [vmem:[#allocation3 + $0x20] sm:$0xff] }
 0x863   : > { %2290 = vpow2.f32 %v1484_v2  ;;  %2159 = vmatprep.subr.bf16.mxu0 %v1549_v55  ;;  %v910_v36 = vmul.f32 1.442695, %v3079_v33  ;;  %v3083_v45 = vsub.f32 %v2770_v9, %v2785_v30  ;;  %v948_v30 = vld [vmem:[#allocation3 + $0x28] sm:$0xff]  ;;  %v3085_v12 = vsub.f32 %v2849_v15, %v2854_v13 }
 0x864   : > { %2160 = vmatpush3.bf16.msra.mxu0 %v1549_v55  ;;  %2292 = vpow2.f32 %v630_v58  ;;  %v912_v29 = vmul.f32 1.442695, %v3081_v52  ;;  %v1179_v59 = vmul.f32 1.442695, %v3082_v54  ;;  %v1218_v54 = vld [vmem:[#allocation3 + $0x40] sm:$0xff] }
 0x865   : > { %2161 = vmatprep.subr.bf16.mxu0 %v1551_v0  ;;  %2294 = vpow2.f32 %v632_v3  ;;  %v1181_v56 = vmul.f32 1.442695, %v3083_v45  ;;  %v673_v3 = vld [vmem:[#allocation3 + $0x18] sm:$0xff] }
 0x866   : > { %2296 = vpow2.f32 %v636_v19 }
 0x867   : > { %v2285_v17 = vpop.eup %2284  ;;  %2298 = vpow2.f32 %v634_v51 }
 0x868   : > { %v1497_v60 = vsel %vm491_vm0, %v2285_v17, 0.0  ;;  %2162 = vmatpush3.bf16.msra.mxu0 %v1551_v0  ;;  %2300 = vpow2.f32 %v906_v38 }
 0x869   : > { %v2287_v4 = vpop.eup %2286  ;;  %1498 = vadd.xlane.f32.xlu1 %v1497_v60  ;;  %2302 = vpow2.f32 %v908_v46 }
 0x86a   : > { %v1500_v40 = vsel %vm491_vm0, %v2287_v4, 0.0  ;;  %v1546_v5 = vpack.c.bf16 %v2287_v4, %v2285_v17  ;;  %2304 = vpow2.f32 %v1177_v44  ;;  %v672_v4 = vld [vmem:[#allocation3 + $0x10] sm:$0xff]  ;;  %v3086_v44 = vsub.f32 %v2851_v47, %v2863_v20 }
 0x86b   : > { %1501 = vadd.xlane.f32.xlu0 %v1500_v40  ;;  %v2289_v25 = vpop.eup %2288  ;;  %2306 = vpow2.f32 %v910_v36 }
 0x86c   : > { %2163 = vmatprep.mubr.msk.bf16.mxu0 %vm491_vm0, %v1546_v5  ;;  %v1506_v10 = vsel %vm491_vm0, %v2289_v25, 0.0  ;;  %2308 = vpow2.f32 %v1452_v37  ;;  %v1450_v15 = vmul.f32 1.442695, %v3086_v44 }
 0x86d   : > { %v2291_v22 = vpop.eup %2290  ;;  %2310 = vpow2.f32 %v912_v29 }
 0x86e   : > { %v1503_v26 = vsel %vm491_vm0, %v2291_v22, 0.0  ;;  %v1547_v28 = vpack.c.bf16 %v2289_v25, %v2291_v22  ;;  %v2293_v49 = vpop.eup %2292  ;;  %2312 = vpow2.f32 %v1179_v59  ;;  %v670_v25 = vld [vmem:[#allocation3] sm:$0xff]  ;;  %v3084_v22 = vsub.f32 %v2760_v57, %v2777_v23 }
 0x86f   : > { %1504 = vadd.xlane.f32.xlu1 %v1503_v26  ;;  %v2295_v2 = vpop.eup %2294  ;;  %2314 = vpow2.f32 %v1181_v56  ;;  %v674_v58 = vmul.f32 %v2293_v49, %v670_v25  ;;  %v1448_v57 = vmul.f32 1.442695, %v3085_v12 }
 0x870   : > { %2164 = vmatmul.mubr.msk.bf16.vlgmr.msra.gmra.mrb[12].mxu0 %vm491_vm0, %v1547_v28  ;;  %v2297_v35 = vpop.eup %2296  ;;  %v675_v17 = vmul.f32 %v2295_v2, %v671_v42  ;;  %v1183_v26 = vmul.f32 1.442695, %v3084_v22 }
 0x871   : > { %v2299_v43 = vpop.eup %2298  ;;  %v677_v38 = vmul.f32 %v2297_v35, %v673_v3 }
 0x872   : > { %v2301_v55 = vpop.eup %2300  ;;  %v676_v6 = vmul.f32 %v2299_v43, %v672_v4  ;;  %2316 = vpow2.f32 %v1183_v26 }
 0x873   : > { %1507 = vadd.xlane.f32.xlu1 %v1506_v10  ;;  %v2303_v24 = vpop.eup %2302  ;;  %2318 = vpow2.f32 %v1448_v57  ;;  %v951_v31 = vmul.f32 %v2301_v55, %v947_v39  ;;  %v1490_v39 = vld [vmem:[#allocation3 + $0x68] sm:$0xff] }
 0x874   : > { %v2960_v0 = vpop.eup %2304  ;;  %v952_v7 = vmul.f32 %v2303_v24, %v948_v30  ;;  %2320 = vpow2.f32 %v1450_v15 }
 0x875   : > { %v2307_v5 = vpop.eup %2306 }
 0x876   : > { %v2966_v32 = vpop.eup %2308  ;;  %v953_v46 = vmul.f32 %v2307_v5, %v949_v50 }
 0x877   : > { %v2311_v27 = vpop.eup %2310 }
 0x878   : > { %v2313_v34 = vpop.eup %2312 }
 0x879   : > { %v2315_v36 = vpop.eup %2314 }
 0x87c   : > { %v2317_v47 = vpop.eup %2316 }
 0x87d   : > { %v2319_v42 = vpop.eup %2318 }
 0x87e   : > { %v2321_v56 = vpop.eup %2320 }
 0x881   : > { %705 = vperm.xlu0 %2222, %v2293_v49  }
 0x884   : > { %710 = vperm.xlu1 %2223, %v2295_v2   ;;  %v950_v2 = vld [vmem:[#allocation3 + $0x38] sm:$0xff] }
 0x885   : > { %720 = vperm.xlu0 %2222, %v2297_v35   ;;  %v3087_v35 = vsub.f32 %v2856_v48, %v2873_v8  ;;  %v954_v20 = vmul.f32 %v2311_v27, %v950_v2  ;;  %v1219_v48 = vld [vmem:[#allocation3 + $0x48] sm:$0xff] }
 0x887   : > { %v1454_v52 = vmul.f32 1.442695, %v3087_v35  ;;  %v1492_v35 = vld [vmem:[#allocation3 + $0x78] sm:$0xff] }
 0x888   : > { %715 = vperm.xlu1 %2223, %v2299_v43  }
 0x889   : > { %982 = vperm.xlu0 %2222, %v2301_v55   ;;  %2322 = vpow2.f32 %v1454_v52 }
 0x88c   : > { %987 = vperm.xlu1 %2223, %v2303_v24   ;;  %v1222_v24 = vmul.f32 %v2960_v0, %v1218_v54 }
 0x88d   : > { %1253 = vperm.xlu0 %2222, %v2960_v0   ;;  %v683_v60 = vpop.xlane.xlu0 %682 }
 0x88e   : > { %v691_v40 = vadd.f32 %v683_v60, %v675_v17  ;;  %v1223_v60 = vmul.f32 %v2313_v34, %v1219_v48 }
 0x890   : > { %696 = vst.msk [vmem:[#allocation3 + $0x8] sm:$0xff] %vm458_vm1, %v691_v40  ;;  %992 = vperm.xlu1 %2223, %v2307_v5   ;;  %v1220_v5 = vld [vmem:[#allocation3 + $0x50] sm:$0xff] }
 0x891   : > { %1534 = vperm.xlu0 %2222, %v2966_v32   ;;  %v686_v9 = vpop.xlane.xlu0 %685  ;;  %v1224_v0 = vmul.f32 %v2315_v36, %v1220_v5 }
 0x892   : > { %v692_v28 = vadd.f32 %v686_v9, %v676_v6  ;;  %v1221_v9 = vld [vmem:[#allocation3 + $0x58] sm:$0xff] }
 0x893   : > { %v2323_v22 = vpop.eup %2322 }
 0x894   : > { %697 = vst.msk [vmem:[#allocation3 + $0x10] sm:$0xff] %vm458_vm1, %v692_v28  ;;  %997 = vperm.xlu1 %2223, %v2311_v27   ;;  %v680_v10 = vpop.xlane.xlu1 %679 }
 0x895   : > { %v690_v23 = vadd.f32 %v680_v10, %v674_v58  ;;  %v960_v19 = vpop.xlane.xlu0 %959  ;;  %v1225_v58 = vmul.f32 %v2317_v47, %v1221_v9 }
 0x896   : > { %v968_v51 = vadd.f32 %v960_v19, %v952_v7 }
 0x897   : > { %695 = vst.msk [vmem:[#allocation3] sm:$0xff] %vm458_vm1, %v690_v23 }
 0x898   : > { %972 = vst.msk [vmem:[#allocation3 + $0x28] sm:$0xff] %vm458_vm1, %v968_v51  ;;  %1258 = vperm.xlu1 %2223, %v2313_v34   ;;  %v689_v41 = vpop.xlane.xlu1 %688 }
 0x899   : > { %v693_v13 = vadd.f32 %v689_v41, %v677_v38  ;;  %v963_v49 = vpop.xlane.xlu0 %962 }
 0x89a   : > { %v969_v33 = vadd.f32 %v963_v49, %v953_v46  ;;  %v1489_v46 = vld [vmem:[#allocation3 + $0x60] sm:$0xff]  ;;  %v1494_v49 = vmul.f32 %v2321_v56, %v1490_v39 }
 0x89b   : > { %698 = vst.msk [vmem:[#allocation3 + $0x18] sm:$0xff] %vm458_vm1, %v693_v13  ;;  %v1493_v44 = vmul.f32 %v2319_v42, %v1489_v46 }
 0x89c   : > { %973 = vst.msk [vmem:[#allocation3 + $0x30] sm:$0xff] %vm458_vm1, %v969_v33  ;;  %1263 = vperm.xlu1 %2223, %v2315_v36   ;;  %v957_v37 = vpop.xlane.xlu1 %956  ;;  %v1491_v36 = vld [vmem:[#allocation3 + $0x70] sm:$0xff] }
 0x89d   : > { %v967_v29 = vadd.f32 %v957_v37, %v951_v31  ;;  %v1495_v37 = vmul.f32 %v2966_v32, %v1491_v36 }
 0x89f   : > { %971 = vst.msk [vmem:[#allocation3 + $0x20] sm:$0xff] %vm458_vm1, %v967_v29  ;;  %v1661_v59 = vld [vmem:[#allocation3 + $0x28] sm:$0xff]  ;;  %v699_v29 = vld [vmem:[#allocation4] sm:$0xff] }
 0x8a0   : > { %1268 = vperm.xlu1 %2223, %v2317_v47   ;;  %v966_v43 = vpop.xlane.xlu1 %965  ;;  %2324 = vrcp.f32 %v1661_v59  ;;  %v1496_v47 = vmul.f32 %v2323_v22, %v1492_v35 }
 0x8a1   : > { %v970_v55 = vadd.f32 %v966_v43, %v954_v20 }
 0x8a3   : > { %974 = vst.msk [vmem:[#allocation3 + $0x38] sm:$0xff] %vm458_vm1, %v970_v55  ;;  %v1662_v4 = vld [vmem:[#allocation3 + $0x30] sm:$0xff] }
 0x8a4   : > { %1524 = vperm.xlu1 %2223, %v2319_v42   ;;  %v1228_v17 = vpop.xlane.xlu1 %1227 }
 0x8a5   : > { %v1238_v8 = vadd.f32 %v1228_v17, %v1222_v24  ;;  %v702_v24 = vld [vmem:[#allocation4 + $0x18] sm:$0xff]  ;;  %v700_v17 = vld [vmem:[#allocation4 + $0x8] sm:$0xff] }
 0x8a6   : > { %v1660_v45 = vld [vmem:[#allocation3 + $0x20] sm:$0xff] }
 0x8a7   : > { %1242 = vst.msk [vmem:[#allocation3 + $0x40] sm:$0xff] %vm458_vm1, %v1238_v8  ;;  %2326 = vrcp.f32 %v1660_v45 }
 0x8a8   : > { %1529 = vperm.xlu1 %2223, %v2321_v56   ;;  %v1231_v40 = vpop.xlane.xlu1 %1230  ;;  %2328 = vrcp.f32 %v1662_v4  ;;  %v701_v4 = vld [vmem:[#allocation4 + $0x10] sm:$0xff] }
 0x8a9   : > { %v1239_v6 = vadd.f32 %v1231_v40, %v1223_v60  ;;  %v976_v60 = vld [vmem:[#allocation4 + $0x20] sm:$0xff] }
 0x8aa   : > { %v1663_v25 = vld [vmem:[#allocation3 + $0x38] sm:$0xff]  ;;  %v2325_v27 = vpop.eup %2324 }
 0x8ab   : > { %2330 = vrcp.f32 %v1663_v25  ;;  %1243 = vst.msk [vmem:[#allocation3 + $0x48] sm:$0xff] %vm458_vm1, %v1239_v6  ;;  %v1624_v25 = vld [vmem:[#allocation3] sm:$0xff] }
 0x8ac   : > { %1539 = vperm.xlu1 %2223, %v2323_v22   ;;  %v1234_v26 = vpop.xlane.xlu1 %1233 }
 0x8ad   : > { %v1240_v30 = vadd.f32 %v1234_v26, %v1224_v0 }
 0x8ae   : > { %v1696_v28 = vld [vmem:[#allocation3 + $0x40] sm:$0xff] }
 0x8af   : > { %1244 = vst.msk [vmem:[#allocation3 + $0x50] sm:$0xff] %vm458_vm1, %v1240_v30  ;;  %2332 = vrcp.f32 %v1696_v28  ;;  %v1247_v30 = vld [vmem:[#allocation4 + $0x40] sm:$0xff]  ;;  %v977_v28 = vld [vmem:[#allocation4 + $0x28] sm:$0xff] }
 0x8b0   : > { %1679 = vperm.xlu1 %2223, %v2325_v27   ;;  %v1237_v10 = vpop.xlane.xlu1 %1236 }
 0x8b1   : > { %v2327_v7 = vpop.eup %2326  ;;  %v1241_v3 = vadd.f32 %v1237_v10, %v1225_v58  ;;  %v1625_v58 = vld [vmem:[#allocation3 + $0x8] sm:$0xff] }
 0x8b2   : > { %v1697_v12 = vld [vmem:[#allocation3 + $0x48] sm:$0xff]  ;;  %1674 = vperm.xlu0 %2222, %v2327_v7   ;;  %v2329_v57 = vpop.eup %2328 }
 0x8b3   : > { %2334 = vrcp.f32 %v1697_v12  ;;  %1245 = vst.msk [vmem:[#allocation3 + $0x58] sm:$0xff] %vm458_vm1, %v1241_v3  ;;  %v1626_v3 = vld [vmem:[#allocation3 + $0x10] sm:$0xff] }
 0x8b5   : > { %v2331_v23 = vpop.eup %2330 }
 0x8b6   : > { %1684 = vperm.xlu0 %2222, %v2329_v57   ;;  %1689 = vperm.xlu1 %2223, %v2331_v23   ;;  %v1698_v19 = vld [vmem:[#allocation3 + $0x50] sm:$0xff] }
 0x8b7   : > { %2336 = vrcp.f32 %v1698_v19  ;;  %v978_v19 = vld [vmem:[#allocation4 + $0x30] sm:$0xff] }
 0x8b9   : > { %v2333_v50 = vpop.eup %2332 }
 0x8ba   : > { %v1699_v51 = vld [vmem:[#allocation3 + $0x58] sm:$0xff]  ;;  %1710 = vperm.xlu0 %2222, %v2333_v50  }
 0x8bb   : > { %2338 = vrcp.f32 %v1699_v51 }
 0x8bd   : > { %v2335_v34 = vpop.eup %2334 }
 0x8be   : > { %1715 = vperm.xlu1 %2223, %v2335_v34  }
 0x8c1   : > { %v2337_v38 = vpop.eup %2336 }
 0x8c2   : > { %1720 = vperm.xlu0 %2222, %v2337_v38  }
 0x8c5   : > { %v2339_v41 = vpop.eup %2338 }
 0x8c6   : > { %1725 = vperm.xlu1 %2223, %v2339_v41   ;;  %v979_v41 = vld [vmem:[#allocation4 + $0x38] sm:$0xff] }
 0x8f6   : > { %v1499_v15 = vpop.xlane.xlu1 %1498 }
 0x8f7   : > { %v1509_v13 = vadd.f32 %v1499_v15, %v1493_v44 }
 0x8f8   : > { %v1502_v33 = vpop.xlane.xlu0 %1501 }
 0x8f9   : > { %1513 = vst.msk [vmem:[#allocation3 + $0x60] sm:$0xff] %vm458_vm1, %v1509_v13  ;;  %v1510_v31 = vadd.f32 %v1502_v33, %v1494_v49 }
 0x8fb   : > { %1514 = vst.msk [vmem:[#allocation3 + $0x68] sm:$0xff] %vm458_vm1, %v1510_v31 }
 0x8fc   : > { %v1505_v2 = vpop.xlane.xlu1 %1504 }
 0x8fd   : > { %v1511_v52 = vadd.f32 %v1505_v2, %v1495_v37 }
 0x8ff   : > { %1515 = vst.msk [vmem:[#allocation3 + $0x70] sm:$0xff] %vm458_vm1, %v1511_v52 }
 0x900   : > { %v706_v20 = vpop.permute.xlu0 %705  ;;  %v1508_v43 = vpop.xlane.xlu1 %1507  ;;  %v1732_v54 = vld [vmem:[#allocation3 + $0x60] sm:$0xff] }
 0x901   : > { %v723_v55 = vmul.f32 %v706_v20, %v699_v29  ;;  %v1512_v59 = vadd.f32 %v1508_v43, %v1496_v47  ;;  %2340 = vrcp.f32 %v1732_v54  ;;  %v1250_v29 = vld [vmem:[#allocation4 + $0x58] sm:$0xff]  ;;  %v3088_v47 = vld [vmem:[#allocation8_spill] sm:$0xff]  ;;  %v3089_v54 = vld [vmem:[#allocation9_spill] sm:$0xff] }
 0x902   : > { %v1733_v42 = vld [vmem:[#allocation3 + $0x68] sm:$0xff] }
 0x903   : > { %2342 = vrcp.f32 %v1733_v42  ;;  %v796_v48 = vadd.f32 %v2659_v14, %v723_v55  ;;  %1516 = vst.msk [vmem:[#allocation3 + $0x78] sm:$0xff] %vm458_vm1, %v1512_v59 }
 0x904   : > { %v721_v32 = vpop.permute.xlu0 %720  ;;  %v711_v8 = vpop.permute.xlu1 %710 }
 0x905   : > { %800 = vst.msk [vmem:[#allocation4] sm:$0xff] %vm491_vm0, %v796_v48  ;;  %v726_v45 = vmul.f32 %v721_v32, %v702_v24  ;;  %v724_v56 = vmul.f32 %v711_v8, %v700_v17 }
 0x906   : > { %v1734_v40 = vld [vmem:[#allocation3 + $0x70] sm:$0xff] }
 0x907   : > { %v799_v5 = vadd.f32 %v2661_v16, %v726_v45  ;;  %v797_v6 = vadd.f32 %v2663_v18, %v724_v56  ;;  %2344 = vrcp.f32 %v1734_v40 }
 0x908   : > { %v983_v22 = vpop.permute.xlu0 %982  ;;  %v716_v0 = vpop.permute.xlu1 %715  ;;  %2346 = vrcp.f32 %v1624_v25 }
 0x909   : > { %803 = vst.msk [vmem:[#allocation4 + $0x18] sm:$0xff] %vm491_vm0, %v799_v5  ;;  %801 = vst.msk [vmem:[#allocation4 + $0x8] sm:$0xff] %vm491_vm0, %v797_v6  ;;  %v1000_v14 = vmul.f32 %v983_v22, %v976_v60  ;;  %v725_v26 = vmul.f32 %v716_v0, %v701_v4 }
 0x90a   : > { %v1735_v9 = vld [vmem:[#allocation3 + $0x78] sm:$0xff] }
 0x90b   : > { %v2341_v27 = vpop.eup %2340  ;;  %2348 = vrcp.f32 %v1735_v9  ;;  %v1067_v16 = vadd.f32 %v2743_v62, %v1000_v14  ;;  %v798_v18 = vadd.f32 %v2657_v11, %v725_v26  ;;  %v1627_v11 = vld [vmem:[#allocation3 + $0x18] sm:$0xff] }
 0x90c   : > { %v1254_v10 = vpop.permute.xlu0 %1253  ;;  %1746 = vperm.xlu0 %2222, %v2341_v27   ;;  %v988_v7 = vpop.permute.xlu1 %987  ;;  %2350 = vrcp.f32 %v1625_v58  ;;  %v1520_v58 = vld [vmem:[#allocation4 + $0x70] sm:$0xff] }
 0x90d   : > { %v2343_v12 = vpop.eup %2342  ;;  %1071 = vst.msk [vmem:[#allocation4 + $0x20] sm:$0xff] %vm491_vm0, %v1067_v16  ;;  %802 = vst.msk [vmem:[#allocation4 + $0x10] sm:$0xff] %vm491_vm0, %v798_v18  ;;  %v1271_v57 = vmul.f32 %v1254_v10, %v1247_v30  ;;  %v1001_v23 = vmul.f32 %v988_v7, %v977_v28  ;;  %2352 = vrcp.f32 %v1626_v3  ;;  %v1518_v16 = vld [vmem:[#allocation4 + $0x60] sm:$0xff]  ;;  %v1521_v10 = vld [vmem:[#allocation4 + $0x78] sm:$0xff] }
 0x90e   : > { %1751 = vperm.xlu1 %2223, %v2343_v12   ;;  %2354 = vrcp.f32 %v1627_v11  ;;  %v1519_v3 = vld [vmem:[#allocation4 + $0x68] sm:$0xff] }
 0x90f   : > { %v1338_v50 = vadd.f32 %v2827_v53, %v1271_v57  ;;  %v1068_v62 = vadd.f32 %v2747_v1, %v1001_v23  ;;  %v1248_v53 = vld [vmem:[#allocation4 + $0x48] sm:$0xff] }
 0x910   : > { %v993_v51 = vpop.permute.xlu1 %992  ;;  %v1535_v24 = vpop.permute.xlu0 %1534 }
 0x911   : > { %v2345_v34 = vpop.eup %2344  ;;  %1342 = vst.msk [vmem:[#allocation4 + $0x40] sm:$0xff] %vm491_vm0, %v1338_v50  ;;  %1072 = vst.msk [vmem:[#allocation4 + $0x28] sm:$0xff] %vm491_vm0, %v1068_v62  ;;  %v1002_v38 = vmul.f32 %v993_v51, %v978_v19  ;;  %v1544_v7 = vmul.f32 %v1535_v24, %v1520_v58 }
 0x912   : > { %1756 = vperm.xlu0 %2222, %v2345_v34   ;;  %v2347_v39 = vpop.eup %2346 }
 0x913   : > { %v1069_v46 = vadd.f32 %v2741_v61, %v1002_v38  ;;  %v1249_v61 = vld [vmem:[#allocation4 + $0x50] sm:$0xff] }
 0x914   : > { %v998_v44 = vpop.permute.xlu1 %997  ;;  %v1668_v8 = vld [vmem:[#allocation4 + $0x20] sm:$0xff] }
 0x915   : > { %v2349_v15 = vpop.eup %2348  ;;  %1073 = vst.msk [vmem:[#allocation4 + $0x30] sm:$0xff] %vm491_vm0, %v1069_v46  ;;  %v1003_v1 = vmul.f32 %v998_v44, %v979_v41 }
 0x916   : > { %1638 = vperm.xlu0 %2222, %v2347_v39   ;;  %1761 = vperm.xlu1 %2223, %v2349_v15   ;;  %v2351_v49 = vpop.eup %2350 }
 0x917   : > { %v1070_v13 = vadd.f32 %v2745_v63, %v1003_v1  ;;  %v2353_v36 = vpop.eup %2352 }
 0x918   : > { %v1259_v33 = vpop.permute.xlu1 %1258  ;;  %v2355_v35 = vpop.eup %2354  ;;  %v1669_v17 = vld [vmem:[#allocation4 + $0x28] sm:$0xff]  ;;  %v1704_v26 = vld [vmem:[#allocation4 + $0x40] sm:$0xff] }
 0x919   : > { %1074 = vst.msk [vmem:[#allocation4 + $0x38] sm:$0xff] %vm491_vm0, %v1070_v13  ;;  %v1272_v31 = vmul.f32 %v1259_v33, %v1248_v53 }
 0x91a   : > { %1648 = vperm.xlu0 %2222, %v2353_v36   ;;  %1643 = vperm.xlu1 %2223, %v2351_v49  }
 0x91b   : > { %v1339_v37 = vadd.f32 %v2831_v21, %v1272_v31 }
 0x91c   : > { %v1264_v2 = vpop.permute.xlu1 %1263  ;;  %v1670_v40 = vld [vmem:[#allocation4 + $0x30] sm:$0xff] }
 0x91d   : > { %1343 = vst.msk [vmem:[#allocation4 + $0x48] sm:$0xff] %vm491_vm0, %v1339_v37  ;;  %v1273_v52 = vmul.f32 %v1264_v2, %v1249_v61 }
 0x91e   : > { %1653 = vperm.xlu1 %2223, %v2355_v35  }
 0x91f   : > { %v1340_v63 = vadd.f32 %v3088_v47, %v1273_v52 }
 0x920   : > { %v1269_v20 = vpop.permute.xlu1 %1268  ;;  %v1671_v5 = vld [vmem:[#allocation4 + $0x38] sm:$0xff] }
 0x921   : > { %1344 = vst.msk [vmem:[#allocation4 + $0x50] sm:$0xff] %vm491_vm0, %v1340_v63  ;;  %v1274_v43 = vmul.f32 %v1269_v20, %v1250_v29 }
 0x923   : > { %v1341_v55 = vadd.f32 %v3089_v54, %v1274_v43 }
 0x924   : > { %v1525_v59 = vpop.permute.xlu1 %1524  ;;  %v1705_v9 = vld [vmem:[#allocation4 + $0x48] sm:$0xff] }
 0x925   : > { %1345 = vst.msk [vmem:[#allocation4 + $0x58] sm:$0xff] %vm491_vm0, %v1341_v55  ;;  %v1542_v12 = vmul.f32 %v1525_v59, %v1518_v16 }
 0x928   : > { %v1530_v42 = vpop.permute.xlu1 %1529  ;;  %v1706_v51 = vld [vmem:[#allocation4 + $0x50] sm:$0xff] }
 0x929   : > { %v1543_v11 = vmul.f32 %v1530_v42, %v1519_v3 }
 0x92c   : > { %v1540_v21 = vpop.permute.xlu1 %1539  ;;  %v1707_v41 = vld [vmem:[#allocation4 + $0x58] sm:$0xff] }
 0x92d   : > { %v1545_v19 = vmul.f32 %v1540_v21, %v1521_v10  ;;  %v1635_v10 = vld [vmem:[#allocation4 + $0x18] sm:$0xff] }
 0x930   : > { %v1680_v48 = vpop.permute.xlu1 %1679 }
 0x931   : > { %v1693_v32 = vmul.f32 %v1680_v48, %v1669_v17  ;;  %v1675_v45 = vpop.permute.xlu0 %1674 }
 0x932   : > { %v1692_v56 = vmul.f32 %v1675_v45, %v1668_v8  ;;  %v1633_v8 = vld [vmem:[#allocation4 + $0x8] sm:$0xff] }
 0x934   : > { %v2224_v60 = vpack.i.bf16 %v1693_v32, %v1692_v56  ;;  %v1632_v32 = vld [vmem:[#allocation4] sm:$0xff] }
 0x935   : > { %v1685_v4 = vpop.permute.xlu0 %1684  ;;  %v1690_v6 = vpop.permute.xlu1 %1689 }
 0x936   : > { %v1694_v25 = vmul.f32 %v1685_v4, %v1670_v40  ;;  %v1695_v22 = vmul.f32 %v1690_v6, %v1671_v5  ;;  %2225 = vrot.lane.b32.xlu0 %v2224_v60, %s2401_s29 }
 0x938   : > { %v2229_v0 = vpack.i.bf16 %v1695_v22, %v1694_v25 }
 0x939   : > { %v1711_v14 = vpop.permute.xlu0 %1710 }
 0x93a   : > { %2230 = vrot.lane.b32.xlu1 %v2229_v0, %s2401_s29  ;;  %v1728_v28 = vmul.f32 %v1711_v14, %v1704_v26 }
 0x93d   : > { %v1716_v30 = vpop.permute.xlu1 %1715 }
 0x93e   : > { %v1729_v27 = vmul.f32 %v1716_v30, %v1705_v9 }
 0x940   : > { %v2234_v18 = vpack.i.bf16 %v1729_v27, %v1728_v28 }
 0x941   : > { %v1721_v57 = vpop.permute.xlu0 %1720 }
 0x942   : > { %2235 = vrot.lane.b32.xlu0 %v2234_v18, %s2400_s28  ;;  %v1730_v39 = vmul.f32 %v1721_v57, %v1706_v51  ;;  %v1634_v18 = vld [vmem:[#allocation4 + $0x10] sm:$0xff] }
 0x943   : > { %v2165_v23 = vpop.f32.mrb[12].mxu0 }
 0x944   : > { %v1611_v50 = vadd.f32 %v2165_v23, %v1544_v7  ;;  %v1594_v62 = vpop.f32.mrb[13].mxu0 }
 0x945   : > { %v1609_v34 = vadd.f32 %v1594_v62, %v1542_v12  ;;  %v2166_v38 = vpop.f32.mrb[14].mxu0  ;;  %v1726_v46 = vpop.permute.xlu1 %1725 }
 0x946   : > { %1615 = vst.msk [vmem:[#allocation4 + $0x70] sm:$0xff] %vm491_vm0, %v1611_v50  ;;  %v1612_v44 = vadd.f32 %v2166_v38, %v1545_v19  ;;  %v1731_v15 = vmul.f32 %v1726_v46, %v1707_v41  ;;  %v1597_v1 = vpop.f32.mrb[15].mxu0 }
 0x947   : > { %1613 = vst.msk [vmem:[#allocation4 + $0x60] sm:$0xff] %vm491_vm0, %v1609_v34  ;;  %v1610_v53 = vadd.f32 %v1597_v1, %v1543_v11 }
 0x948   : > { %1616 = vst.msk [vmem:[#allocation4 + $0x78] sm:$0xff] %vm491_vm0, %v1612_v44  ;;  %v2239_v13 = vpack.i.bf16 %v1731_v15, %v1730_v39 }
 0x949   : > { %1614 = vst.msk [vmem:[#allocation4 + $0x68] sm:$0xff] %vm491_vm0, %v1610_v53 }
 0x94a   : > { %2240 = vrot.lane.b32.xlu1 %v2239_v13, %s2400_s28 }
 0x94d   : > { %v1742_v52 = vld [vmem:[#allocation4 + $0x70] sm:$0xff] }
 0x94e   : > { %v1740_v33 = vld [vmem:[#allocation4 + $0x60] sm:$0xff] }
 0x94f   : > { %v1743_v29 = vld [vmem:[#allocation4 + $0x78] sm:$0xff] }
 0x950   : > { %v1741_v36 = vld [vmem:[#allocation4 + $0x68] sm:$0xff] }
 0x98b   : > { %v1747_v49 = vpop.permute.xlu0 %1746 }
 0x98c   : > { %v1764_v61 = vmul.f32 %v1747_v49, %v1740_v33 }
 0x98d   : > { %v1752_v31 = vpop.permute.xlu1 %1751 }
 0x98e   : > { %v1765_v37 = vmul.f32 %v1752_v31, %v1741_v36 }
 0x990   : > { %v2244_v2 = vpack.i.bf16 %v1765_v37, %v1764_v61 }
 0x991   : > { %v1757_v35 = vpop.permute.xlu0 %1756 }
 0x992   : > { %2245 = vrot.lane.b32.xlu0 %v2244_v2, %s2399_s27  ;;  %v1766_v63 = vmul.f32 %v1757_v35, %v1742_v52 }
 0x995   : > { %v1762_v47 = vpop.permute.xlu1 %1761  ;;  %v1639_v54 = vpop.permute.xlu0 %1638 }
 0x996   : > { %v1767_v20 = vmul.f32 %v1762_v47, %v1743_v29  ;;  %v1656_v60 = vmul.f32 %v1639_v54, %v1632_v32 }
 0x998   : > { %v2249_v43 = vpack.i.bf16 %v1767_v20, %v1766_v63 }
 0x999   : > { %v1649_v55 = vpop.permute.xlu0 %1648  ;;  %v1644_v59 = vpop.permute.xlu1 %1643 }
 0x99a   : > { %2250 = vrot.lane.b32.xlu1 %v2249_v43, %s2399_s27  ;;  %v1657_v4 = vmul.f32 %v1644_v59, %v1633_v8  ;;  %v1658_v12 = vmul.f32 %v1649_v55, %v1634_v18 }
 0x99d   : > { %v1654_v21 = vpop.permute.xlu1 %1653 }
 0x99e   : > { %v1659_v57 = vmul.f32 %v1654_v21, %v1635_v10 }
 0x9a8   : > { %v2226_v42 = vpop.permute.xlu0 %2225 }
 0x9a9   : > { %v2228_v17 = vunpack.i.h.bf16 %v2226_v42  ;;  %v2227_v48 = vunpack.i.l.bf16 %v2226_v42 }
 0x9ab   : > { %v1816_v6 = vsel %vm491_vm0, %v1656_v60, %v2227_v48  ;;  %v1817_v25 = vsel %vm491_vm0, %v1657_v4, %v2228_v17 }
 0x9ac   : > { %v2231_v40 = vpop.permute.xlu1 %2230 }
 0x9ad   : > { %v2233_v58 = vunpack.i.h.bf16 %v2231_v40  ;;  %v2232_v16 = vunpack.i.l.bf16 %v2231_v40 }
 0x9af   : > { %v1819_v19 = vsel %vm491_vm0, %v1659_v57, %v2233_v58  ;;  %v1818_v50 = vsel %vm491_vm0, %v1658_v12, %v2232_v16 }
 0x9b4   : > { %v2236_v24 = vpop.permute.xlu0 %2235 }
 0x9b5   : > { %v2238_v45 = vunpack.i.h.bf16 %v2236_v24  ;;  %v2237_v56 = vunpack.i.l.bf16 %v2236_v24 }
 0x9b7   : > { %v1821_v14 = vsel %vm1820_vm2, %v1816_v6, %v2237_v56  ;;  %v1822_v26 = vsel %vm1820_vm2, %v1817_v25, %v2238_v45 }
 0x9bc   : > { %v2241_v9 = vpop.permute.xlu1 %2240 }
 0x9bd   : > { %v2243_v7 = vunpack.i.h.bf16 %v2241_v9  ;;  %v2242_v3 = vunpack.i.l.bf16 %v2241_v9 }
 0x9bf   : > { %v1823_v51 = vsel %vm1820_vm2, %v1818_v50, %v2242_v3  ;;  %v1824_v34 = vsel %vm1820_vm2, %v1819_v19, %v2243_v7 }
 0xa04   : > { %v2246_v5 = vpop.permute.xlu0 %2245 }
 0xa05   : > { %v2248_v22 = vunpack.i.h.bf16 %v2246_v5  ;;  %v2247_v0 = vunpack.i.l.bf16 %v2246_v5 }
 0xa07   : > { %v1826_v30 = vsel %vm1825_vm3, %v1821_v14, %v2247_v0  ;;  %v1827_v28 = vsel %vm1825_vm3, %v1822_v26, %v2248_v22 }
 0xa08   : > { %v2063_v27 = vpack.c.bf16 %v1827_v28, %v1826_v30 }
 0xa0a   : > { %2064 = vst [vmem:[%s451_s6] sm:$0xff] %v2063_v27  }
 0xa0c   : > { %v2251_v23 = vpop.permute.xlu1 %2250 }
 0xa0d   : > { %v2253_v62 = vunpack.i.h.bf16 %v2251_v23  ;;  %v2252_v11 = vunpack.i.l.bf16 %v2251_v23 }
 0xa0f   : > { %v1828_v38 = vsel %vm1825_vm3, %v1823_v51, %v2252_v11  ;;  %v1829_v41 = vsel %vm1825_vm3, %v1824_v34, %v2253_v62 }
 0xa10   : > { %v2068_v46 = vpack.c.bf16 %v1829_v41, %v1828_v38 }
 0xa12   : > { %2070 = vst [vmem:[%s451_s6 + $0x8] sm:$0xff] %v2068_v46  }
 0xa13 PF: > { %s13_s16 = sadd.s32 1, %s2394_s16   ;;  %s3090_s12 = smov %s2382_s13 }
 0xa14   : > { %p10_p10 = scmp.ge.s32.totalorder %s13_s16, 4   ;;  %s3091_s13 = smov %s2461_s21 }
 0xa15   : > { %s3092_s14 = smov %s2390_s15  ;;  %s3093_s15 = smov %s3095_s17 }
 0xa16   :  { %12 = sbr.rel (!%p10_p10) target bundleno = 3 (0x3), region = 223 }

// kernel: eomt_forward.23
= control target key start
LH: loop header
LB: loop body
LE: loop exit
PB: predicated region body
PF: predicated region fallthrough
CT: control target
= control target key end

     0   :  { %s369_s0 = inlined_call_operand.vmem [shape: f32[64,128], index: 0, kind: input, shape index: {}]   ;;  %s370_s1 = inlined_call_operand.vmem [shape: f32[1,128], index: 1, kind: input, shape index: {}]   ;;  %s371_s2 = inlined_call_operand.vmem [shape: f32[1,128], index: 2, kind: input, shape index: {}]   ;;  %s372_s3 = inlined_call_operand.hbm [shape: f32[64,128], index: 3, kind: output, shape index: {}]  }
   0x1   :  { %v252_v0 = vld [vmem:[%s369_s0 + $0x10] sm:$0xff]  ;;  %v257_v1 = vld [vmem:[%s369_s0] sm:$0xff]  ;;  %v264_v2 = vld [vmem:[%s369_s0 + $0x18] sm:$0xff] }
   0x2   :  { %27 = vadd.xlane.f32.xlu1 %v252_v0  ;;  %23 = vadd.xlane.f32.xlu0 %v257_v1  ;;  %v269_v3 = vld [vmem:[%s369_s0 + $0x8] sm:$0xff] }
   0x3   :  { %8 = vsyncpa [#allocation3], 0  ;;  %v276_v4 = vld [vmem:[%s369_s0 + $0x28] sm:$0xff]  ;;  %v281_v5 = vld [vmem:[%s369_s0 + $0x20] sm:$0xff]  ;;  %v48_v8 = vmul.f32 %v269_v3, %v269_v3  ;;  %v47_v9 = vmul.f32 %v257_v1, %v257_v1  ;;  %v50_v10 = vmul.f32 %v264_v2, %v264_v2  ;;  %v49_v11 = vmul.f32 %v252_v0, %v252_v0 }
   0x4   :  { %v288_v6 = vld [vmem:[%s369_s0 + $0x38] sm:$0xff]  ;;  %v293_v7 = vld [vmem:[%s369_s0 + $0x30] sm:$0xff]  ;;  %v52_v12 = vmul.f32 %v276_v4, %v276_v4  ;;  %v51_v13 = vmul.f32 %v281_v5, %v281_v5 }
   0x5   :  { %v54_v14 = vmul.f32 %v288_v6, %v288_v6  ;;  %v53_v15 = vmul.f32 %v293_v7, %v293_v7 }
   0x6   :  { %29 = vadd.xlane.f32.xlu1 %v264_v2  ;;  %25 = vadd.xlane.f32.xlu0 %v269_v3 }
   0xa   :  { %33 = vadd.xlane.f32.xlu1 %v276_v4  ;;  %31 = vadd.xlane.f32.xlu0 %v281_v5 }
   0xe   :  { %37 = vadd.xlane.f32.xlu1 %v288_v6  ;;  %35 = vadd.xlane.f32.xlu0 %v293_v7 }
  0x12   :  { %57 = vadd.xlane.f32.xlu1 %v48_v8  ;;  %55 = vadd.xlane.f32.xlu0 %v47_v9 }
  0x16   :  { %61 = vadd.xlane.f32.xlu1 %v50_v10  ;;  %59 = vadd.xlane.f32.xlu0 %v49_v11 }
  0x1a   :  { %65 = vadd.xlane.f32.xlu1 %v52_v12  ;;  %63 = vadd.xlane.f32.xlu0 %v51_v13 }
  0x1e   :  { %69 = vadd.xlane.f32.xlu1 %v54_v14  ;;  %67 = vadd.xlane.f32.xlu0 %v53_v15 }
  0x8f   :  { %v28_v16 = vpop.xlane.xlu1 %27  ;;  %v24_v17 = vpop.xlane.xlu0 %23 }
  0x90   :  { %v39_v24 = vmul.f32 0.0078125, %v24_v17  ;;  %v313_v26 = vmul.f32 0.0078125, %v28_v16  ;;  %v181_v17 = vld [vmem:[%s370_s1] ss:$0 sm:$0xff]  ;;  %s226_s1 = smov [#allocation2]  }
  0x92   :  { %v79_v30 = vmul.f32 %v39_v24, %v39_v24  ;;  %v81_v37 = vmul.f32 %v313_v26, %v313_v26  ;;  %v111_v16 = vsub.f32 %v257_v1, %v39_v24  ;;  %v113_v24 = vsub.f32 %v252_v0, %v313_v26 }
  0x93   :  { %v30_v18 = vpop.xlane.xlu1 %29  ;;  %v26_v19 = vpop.xlane.xlu0 %25 }
  0x94   :  { %v40_v25 = vmul.f32 0.0078125, %v26_v19  ;;  %v315_v27 = vmul.f32 0.0078125, %v30_v18 }
  0x96   :  { %v80_v31 = vmul.f32 %v40_v25, %v40_v25  ;;  %v82_v38 = vmul.f32 %v315_v27, %v315_v27  ;;  %v112_v14 = vsub.f32 %v269_v3, %v40_v25  ;;  %v114_v3 = vsub.f32 %v264_v2, %v315_v27 }
  0x97   :  { %v34_v20 = vpop.xlane.xlu1 %33  ;;  %v32_v21 = vpop.xlane.xlu0 %31 }
  0x98   :  { %v317_v34 = vmul.f32 0.0078125, %v34_v20  ;;  %v323_v39 = vmul.f32 0.0078125, %v32_v21 }
  0x9a   :  { %v84_v46 = vmul.f32 %v317_v34, %v317_v34  ;;  %v83_v49 = vmul.f32 %v323_v39, %v323_v39  ;;  %v115_v2 = vsub.f32 %v281_v5, %v323_v39 }
  0x9b   :  { %v38_v22 = vpop.xlane.xlu1 %37  ;;  %v36_v23 = vpop.xlane.xlu0 %35 }
  0x9c   :  { %v329_v50 = vmul.f32 0.0078125, %v38_v22  ;;  %v331_v51 = vmul.f32 0.0078125, %v36_v23  ;;  %v182_v22 = vld [vmem:[%s371_s2] ss:$0 sm:$0xff]  ;;  %s170_s2 = sshll.u32 %s226_s1, 4  ;;  %s171_s2 = int_to_ptr.vmem [resolvable:$true] %s170_s2 }
  0x9d   :  { %s202_s4 = scalar_lea.vmem %s171_s2, 1024  ;;  %p207_p1 = scmp.lt.s32.totalorder %s171_s2, %s171_s2 }
  0x9e   :  { %v86_v60 = vmul.f32 %v329_v50, %v329_v50  ;;  %v85_v61 = vmul.f32 %v331_v51, %v331_v51  ;;  %p203_p0 = scmp.ne.s32.totalorder %s171_s2, %s202_s4  ;;  %p208_p2 = scmp.lt.s32.totalorder %s202_s4, %s202_s4 }
  0x9f   :  { %v58_v28 = vpop.xlane.xlu1 %57  ;;  %v56_v29 = vpop.xlane.xlu0 %55 }
  0xa0   :  { %v72_v32 = vmul.f32 0.0078125, %v58_v28  ;;  %v71_v33 = vmul.f32 0.0078125, %v56_v29  ;;  %p209_p3 = por %p208_p2, %p207_p1 }
  0xa2   :  { %v88_v35 = vsub.f32 %v72_v32, %v80_v31  ;;  %v87_v36 = vsub.f32 %v71_v33, %v79_v30  ;;  %p210_p4 = pnand %p209_p3, %p203_p0 }
  0xa3   :  { %v62_v40 = vpop.xlane.xlu1 %61  ;;  %v60_v41 = vpop.xlane.xlu0 %59 }
  0xa4   :  { %v96_v42 = vadd.f32 1e-06, %v88_v35  ;;  %v95_v43 = vadd.f32 1e-06, %v87_v36  ;;  %v74_v44 = vmul.f32 0.0078125, %v62_v40  ;;  %v73_v45 = vmul.f32 0.0078125, %v60_v41 }
  0xa5   :  { %v116_v35 = vsub.f32 %v276_v4, %v317_v34  ;;  %v117_v4 = vsub.f32 %v293_v7, %v331_v51 }
  0xa6   :  { %186 = vrsqrt.f32 %v96_v42  ;;  %v90_v47 = vsub.f32 %v74_v44, %v82_v38  ;;  %v89_v48 = vsub.f32 %v73_v45, %v81_v37  ;;  %v118_v42 = vsub.f32 %v288_v6, %v329_v50 }
  0xa7   :  { %188 = vrsqrt.f32 %v95_v43  ;;  %v66_v52 = vpop.xlane.xlu1 %65  ;;  %v64_v53 = vpop.xlane.xlu0 %63 }
  0xa8   :  { %v98_v54 = vadd.f32 1e-06, %v90_v47  ;;  %v97_v55 = vadd.f32 1e-06, %v89_v48  ;;  %v76_v56 = vmul.f32 0.0078125, %v66_v52  ;;  %v75_v57 = vmul.f32 0.0078125, %v64_v53 }
  0xaa   :  { %190 = vrsqrt.f32 %v98_v54  ;;  %v92_v58 = vsub.f32 %v76_v56, %v84_v46  ;;  %v91_v59 = vsub.f32 %v75_v57, %v83_v49 }
  0xab   :  { %192 = vrsqrt.f32 %v97_v55  ;;  %v70_v62 = vpop.xlane.xlu1 %69  ;;  %v68_v63 = vpop.xlane.xlu0 %67 }
  0xac   :  { %v100_v8 = vadd.f32 1e-06, %v92_v58  ;;  %v99_v9 = vadd.f32 1e-06, %v91_v59  ;;  %v78_v10 = vmul.f32 0.0078125, %v70_v62  ;;  %v77_v11 = vmul.f32 0.0078125, %v68_v63 }
  0xae   :  { %194 = vrsqrt.f32 %v100_v8  ;;  %v94_v12 = vsub.f32 %v78_v10, %v86_v60  ;;  %v93_v13 = vsub.f32 %v77_v11, %v85_v61 }
  0xaf   :  { %196 = vrsqrt.f32 %v99_v9 }
  0xb0   :  { %v187_v15 = vpop.eup %186  ;;  %v102_v18 = vadd.f32 1e-06, %v94_v12  ;;  %v101_v19 = vadd.f32 1e-06, %v93_v13 }
  0xb1   :  { %v189_v20 = vpop.eup %188  ;;  %v120_v21 = vmul.f32 %v187_v15, %v112_v14 }
  0xb2   :  { %v119_v23 = vmul.f32 %v189_v20, %v111_v16  ;;  %198 = vrsqrt.f32 %v102_v18 }
  0xb3   :  { %v135_v25 = vmul.f32 %v181_v17, %v120_v21  ;;  %200 = vrsqrt.f32 %v101_v19 }
  0xb4   :  { %v191_v1 = vpop.eup %190  ;;  %v134_v28 = vmul.f32 %v181_v17, %v119_v23 }
  0xb5   :  { %v193_v29 = vpop.eup %192  ;;  %v150_v30 = vadd.f32 %v182_v22, %v135_v25  ;;  %v122_v31 = vmul.f32 %v191_v1, %v114_v3 }
  0xb6   :  { %v149_v32 = vadd.f32 %v182_v22, %v134_v28  ;;  %v121_v33 = vmul.f32 %v193_v29, %v113_v24 }
  0xb7   :  { %158 = vst [vmem:[#allocation2 + $0x8] sm:$0xff] %v150_v30  ;;  %v137_v36 = vmul.f32 %v181_v17, %v122_v31 }
  0xb8   :  { %v195_v37 = vpop.eup %194  ;;  %157 = vst [vmem:[#allocation2] sm:$0xff] %v149_v32  ;;  %v136_v27 = vmul.f32 %v181_v17, %v121_v33 }
  0xb9   :  { %v197_v38 = vpop.eup %196  ;;  %v152_v40 = vadd.f32 %v182_v22, %v137_v36  ;;  %v124_v0 = vmul.f32 %v195_v37, %v116_v35 }
  0xba   :  { %v151_v26 = vadd.f32 %v182_v22, %v136_v27  ;;  %v123_v41 = vmul.f32 %v197_v38, %v115_v2 }
  0xbb   :  { %160 = vst [vmem:[#allocation2 + $0x18] sm:$0xff] %v152_v40  ;;  %v139_v43 = vmul.f32 %v181_v17, %v124_v0 }
  0xbc   :  { %v199_v44 = vpop.eup %198  ;;  %159 = vst [vmem:[#allocation2 + $0x10] sm:$0xff] %v151_v26  ;;  %v138_v34 = vmul.f32 %v181_v17, %v123_v41 }
  0xbd   :  { %v201_v45 = vpop.eup %200  ;;  %v154_v5 = vadd.f32 %v182_v22, %v139_v43  ;;  %v126_v39 = vmul.f32 %v199_v44, %v118_v42 }
  0xbe   :  { %v153_v46 = vadd.f32 %v182_v22, %v138_v34  ;;  %v125_v47 = vmul.f32 %v201_v45, %v117_v4 }
  0xbf   :  { %162 = vst [vmem:[#allocation2 + $0x28] sm:$0xff] %v154_v5  ;;  %v141_v48 = vmul.f32 %v181_v17, %v126_v39 }
  0xc0   :  { %161 = vst [vmem:[#allocation2 + $0x20] sm:$0xff] %v153_v46  ;;  %v140_v49 = vmul.f32 %v181_v17, %v125_v47 }
  0xc1   :  { %v156_v6 = vadd.f32 %v182_v22, %v141_v48 }
  0xc2   :  { %v155_v50 = vadd.f32 %v182_v22, %v140_v49 }
  0xc3   :  { %164 = vst [vmem:[#allocation2 + $0x38] sm:$0xff] %v156_v6 }
  0xc4   :  { %163 = vst [vmem:[#allocation2 + $0x30] sm:$0xff] %v155_v50 }
  0xc5   :  { %213 = shalt.err (!%p210_p4)
}
  0xc6   :  { %s214_s7 = scalar_lea.hbm %s372_s3, 1024 }
  0xc7   :  { %p215_p5 = scmp.ne.s32.totalorder %s372_s3, %s214_s7  ;;  %p218_p6 = scmp.lt.u32.totalorder %s214_s7, %s372_s3 }
  0xc9   :  { %p220_p7 = pnand %p218_p6, %p215_p5 }
  0xcb   :  { %223 = shalt.err (!%p220_p7)
}
  0xcc   :  { %s227_s12 = smov 128   ;;  %s228_s13 = smov 8  }
  0xcd   :  { %176 = dma.vmem_to_hbm [thread:$0]  %s171_s2, 1024, %s372_s3, [#allocation3], %s227_s12, %s227_s12, %s228_s13  }
  0xce   :  { %224 = dma.done.wait [#allocation3], 1024  }
  0xcf   :  { %225 = vsyncadd [#allocation3], 4294966272 }
  0xd0   :  { %180 = vsyncpa [#allocation3], 1 }

// kernel: eomt_forward.17
= control target key start
LH: loop header
LB: loop body
LE: loop exit
PB: predicated region body
PF: predicated region fallthrough
CT: control target
= control target key end

     0   :  { %s613_s1 = inlined_call_operand.vmem [shape: bf16[256,128], index: 1, kind: input, shape index: {}]   ;;  %s614_s0 = inlined_call_operand.vmem [shape: bf16[64,256], index: 0, kind: input, shape index: {}]   ;;  %s615_s2 = inlined_call_operand.vmem [shape: f32[1,128], index: 2, kind: input, shape index: {}]   ;;  %s616_s3 = inlined_call_operand.vmem [shape: f32[64,128], index: 3, kind: input, shape index: {}]   ;;  %s617_s4 = inlined_call_operand.vmem [shape: f32[64,128], index: 4, kind: output, shape index: {}]  }
   0x1   :  { %v437_v0 = vld [vmem:[%s613_s1 + $0x40] sm:$0xff]   ;;  %v439_v2 = vld [vmem:[%s613_s1 + $0x48] sm:$0xff]   ;;  %v441_v4 = vld [vmem:[%s613_s1 + $0x50] sm:$0xff]  }
   0x2   :  { %v438_v1 = vld [vmem:[%s613_s1] sm:$0xff]   ;;  %381 = vmatprep.subr.bf16.mxu0 %v437_v0  ;;  %421 = vmatprep.subr.bf16.mxu1 %v437_v0  ;;  %v440_v3 = vld [vmem:[%s613_s1 + $0x8] sm:$0xff]   ;;  %v442_v5 = vld [vmem:[%s613_s1 + $0x10] sm:$0xff]  }
   0x3   :  { %382 = vmatpush3.bf16.msra.mxu0 %v438_v1  ;;  %429 = vmatpush3.bf16.msra.mxu1 %v438_v1  ;;  %v443_v6 = vld [vmem:[%s613_s1 + $0x58] sm:$0xff]   ;;  %v445_v8 = vld [vmem:[%s613_s1 + $0x60] sm:$0xff]   ;;  %v447_v10 = vld [vmem:[%s613_s1 + $0x68] sm:$0xff]  }
   0x4   :  { %383 = vmatprep.subr.bf16.mxu0 %v439_v2  ;;  %422 = vmatprep.subr.bf16.mxu1 %v439_v2  ;;  %v444_v7 = vld [vmem:[%s613_s1 + $0x18] sm:$0xff]   ;;  %v446_v9 = vld [vmem:[%s613_s1 + $0x20] sm:$0xff]   ;;  %v448_v13 = vld [vmem:[%s613_s1 + $0x28] sm:$0xff]  }
   0x5   :  { %v455_v11 = vld [vmem:[%s614_s0 + $0x4] ss:$8 sps:$4 sm:$0xff]   ;;  %v449_v14 = vld [vmem:[%s613_s1 + $0x70] sm:$0xff]   ;;  %v451_v16 = vld [vmem:[%s613_s1 + $0x78] sm:$0xff]  }
   0x6   :  { %v458_v12 = vld [vmem:[%s614_s0 + $0x24] ss:$8 sps:$4 sm:$0xff]   ;;  %251 = vmatprep.mubr.bf16.mxu0 %v455_v11  ;;  %v450_v15 = vld [vmem:[%s613_s1 + $0x30] sm:$0xff]   ;;  %v452_v17 = vld [vmem:[%s613_s1 + $0x38] sm:$0xff]  }
   0x7   :  { %384 = vmatpush3.bf16.msra.mxu0 %v440_v3  ;;  %430 = vmatpush3.bf16.msra.mxu1 %v440_v3  ;;  %v453_v18 = vld [vmem:[%s614_s0] ss:$8 sps:$4 sm:$0xff]   ;;  %v459_v20 = vld [vmem:[%s614_s0 + $0x14] ss:$8 sps:$4 sm:$0xff]   ;;  %v463_v22 = vld [vmem:[%s614_s0 + $0x10] ss:$8 sps:$4 sm:$0xff]  }
   0x8   :  { %385 = vmatprep.subr.bf16.mxu0 %v441_v4  ;;  %423 = vmatprep.subr.bf16.mxu1 %v441_v4  ;;  %v456_v19 = vld [vmem:[%s614_s0 + $0x20] ss:$8 sps:$4 sm:$0xff]   ;;  %v461_v21 = vld [vmem:[%s614_s0 + $0x34] ss:$8 sps:$4 sm:$0xff]   ;;  %v464_v23 = vld [vmem:[%s614_s0 + $0x30] ss:$8 sps:$4 sm:$0xff]  }
   0x9   :  { %267 = vmatprep.mubr.bf16.mxu1 %v458_v12  ;;  %v380_v27 = vld [vmem:[%s615_s2] ss:$0 sm:$0xff]  ;;  %v327_v41 = vld [vmem:[%s616_s3 + $0x8] sm:$0xff]  ;;  %v328_v57 = vld [vmem:[%s616_s3 + $0x10] sm:$0xff] }
   0xa   :  { %v326_v33 = vld [vmem:[%s616_s3] sm:$0xff]  ;;  %v331_v42 = vld [vmem:[%s616_s3 + $0x28] sm:$0xff]  ;;  %v332_v58 = vld [vmem:[%s616_s3 + $0x30] sm:$0xff] }
   0xb   :  { %386 = vmatpush3.bf16.msra.mxu0 %v442_v5  ;;  %431 = vmatpush3.bf16.msra.mxu1 %v442_v5  ;;  %v330_v34 = vld [vmem:[%s616_s3 + $0x20] sm:$0xff]  ;;  %v329_v1 = vld [vmem:[%s616_s3 + $0x18] sm:$0xff] }
   0xc   :  { %387 = vmatprep.subr.bf16.mxu0 %v443_v6  ;;  %424 = vmatprep.subr.bf16.mxu1 %v443_v6  ;;  %v333_v2 = vld [vmem:[%s616_s3 + $0x38] sm:$0xff] }
   0xf   :  { %388 = vmatpush3.bf16.msra.mxu0 %v444_v7  ;;  %432 = vmatpush3.bf16.msra.mxu1 %v444_v7 }
  0x10   :  { %389 = vmatprep.subr.bf16.mxu0 %v445_v8  ;;  %425 = vmatprep.subr.bf16.mxu1 %v445_v8 }
  0x13   :  { %390 = vmatpush3.bf16.msra.mxu0 %v446_v9  ;;  %433 = vmatpush3.bf16.msra.mxu1 %v446_v9 }
  0x14   :  { %391 = vmatprep.subr.bf16.mxu0 %v447_v10  ;;  %426 = vmatprep.subr.bf16.mxu1 %v447_v10 }
  0x17   :  { %392 = vmatpush3.bf16.msra.mxu0 %v448_v13  ;;  %434 = vmatpush3.bf16.msra.mxu1 %v448_v13 }
  0x18   :  { %393 = vmatprep.subr.bf16.mxu0 %v449_v14  ;;  %427 = vmatprep.subr.bf16.mxu1 %v449_v14 }
  0x1b   :  { %394 = vmatpush3.bf16.msra.mxu0 %v450_v15  ;;  %435 = vmatpush3.bf16.msra.mxu1 %v450_v15 }
  0x1c   :  { %395 = vmatprep.subr.bf16.mxu0 %v451_v16  ;;  %428 = vmatprep.subr.bf16.mxu1 %v451_v16 }
  0x1f   :  { %396 = vmatpush3.bf16.msra.mxu0 %v452_v17  ;;  %436 = vmatpush3.bf16.msra.mxu1 %v452_v17 }
  0x22   :  { %252 = vmatmul.mubr.bf16.vlgmr.msra.gmra.mrb[0].mxu0 %v453_v18  ;;  %268 = vmatmul.mubr.bf16.vlgmr.msra.gmra.mrb[0].mxu1 %v456_v19 }
  0x23   :  { %259 = vmatprep.mubr.bf16.mxu0 %v459_v20  ;;  %275 = vmatprep.mubr.bf16.mxu1 %v461_v21 }
  0x2a   :  { %260 = vmatmul.mubr.bf16.gmra.mrb[4].mxu0 %v463_v22  ;;  %276 = vmatmul.mubr.bf16.gmra.mrb[4].mxu1 %v464_v23 }
  0xf5   :  { %v397_v24 = vpop.f32.mrb[0].mxu0  ;;  %v409_v25 = vpop.f32.mrb[0].mxu1 }
  0xf6   :  { %v398_v26 = vpop.f32.mrb[1].mxu0  ;;  %v410_v28 = vpop.f32.mrb[1].mxu1 }
  0xf7   :  { %v399_v29 = vadd.f32 %v398_v26, %v397_v24  ;;  %v411_v30 = vadd.f32 %v410_v28, %v409_v25  ;;  %v400_v31 = vpop.f32.mrb[2].mxu0  ;;  %v412_v32 = vpop.f32.mrb[2].mxu1 }
  0xf8   :  { %v401_v35 = vpop.f32.mrb[3].mxu0  ;;  %v413_v36 = vpop.f32.mrb[3].mxu1 }
  0xf9   :  { %v318_v37 = vadd.f32 %v399_v29, %v380_v27  ;;  %v322_v38 = vadd.f32 %v411_v30, %v380_v27  ;;  %v402_v39 = vadd.f32 %v401_v35, %v400_v31  ;;  %v414_v40 = vadd.f32 %v413_v36, %v412_v32 }
  0xfb   :  { %v334_v43 = vadd.f32 %v326_v33, %v318_v37  ;;  %v338_v44 = vadd.f32 %v330_v34, %v322_v38  ;;  %v319_v45 = vadd.f32 %v402_v39, %v380_v27  ;;  %v323_v46 = vadd.f32 %v414_v40, %v380_v27 }
  0xfd   :  { %342 = vst [vmem:[%s617_s4] sm:$0xff] %v334_v43  ;;  %346 = vst [vmem:[%s617_s4 + $0x20] sm:$0xff] %v338_v44  ;;  %v335_v47 = vadd.f32 %v327_v41, %v319_v45  ;;  %v339_v48 = vadd.f32 %v331_v42, %v323_v46  ;;  %v403_v49 = vpop.f32.mrb[4].mxu0  ;;  %v415_v50 = vpop.f32.mrb[4].mxu1 }
  0xfe   :  { %v404_v51 = vpop.f32.mrb[5].mxu0  ;;  %v416_v52 = vpop.f32.mrb[5].mxu1 }
  0xff   :  { %343 = vst [vmem:[%s617_s4 + $0x8] sm:$0xff] %v335_v47  ;;  %347 = vst [vmem:[%s617_s4 + $0x28] sm:$0xff] %v339_v48  ;;  %v405_v53 = vadd.f32 %v404_v51, %v403_v49  ;;  %v417_v54 = vadd.f32 %v416_v52, %v415_v50  ;;  %v406_v55 = vpop.f32.mrb[6].mxu0  ;;  %v418_v56 = vpop.f32.mrb[6].mxu1 }
 0x100   :  { %v407_v59 = vpop.f32.mrb[7].mxu0  ;;  %v419_v60 = vpop.f32.mrb[7].mxu1 }
 0x101   :  { %v320_v61 = vadd.f32 %v405_v53, %v380_v27  ;;  %v324_v62 = vadd.f32 %v417_v54, %v380_v27  ;;  %v408_v63 = vadd.f32 %v407_v59, %v406_v55  ;;  %v420_v0 = vadd.f32 %v419_v60, %v418_v56 }
 0x103   :  { %v336_v3 = vadd.f32 %v328_v57, %v320_v61  ;;  %v340_v4 = vadd.f32 %v332_v58, %v324_v62  ;;  %v321_v5 = vadd.f32 %v408_v63, %v380_v27  ;;  %v325_v6 = vadd.f32 %v420_v0, %v380_v27 }
 0x105   :  { %344 = vst [vmem:[%s617_s4 + $0x10] sm:$0xff] %v336_v3  ;;  %348 = vst [vmem:[%s617_s4 + $0x30] sm:$0xff] %v340_v4  ;;  %v337_v7 = vadd.f32 %v329_v1, %v321_v5  ;;  %v341_v8 = vadd.f32 %v333_v2, %v325_v6 }
 0x107   :  { %345 = vst [vmem:[%s617_s4 + $0x18] sm:$0xff] %v337_v7  ;;  %349 = vst [vmem:[%s617_s4 + $0x38] sm:$0xff] %v341_v8 }

// kernel: eomt_forward.16
= control target key start
LH: loop header
LB: loop body
LE: loop exit
PB: predicated region body
PF: predicated region fallthrough
CT: control target
= control target key end

     0   :  { %v798_v32 = vmov 0   ;;  %s1148_s0 = inlined_call_operand.vmem [shape: f32[64,128], index: 0, kind: input, shape index: {}]   ;;  %s1149_s3 = inlined_call_operand.vmem [shape: bf16[128,256], index: 3, kind: input, shape index: {}]   ;;  %s1150_s1 = inlined_call_operand.vmem [shape: f32[1,128], index: 1, kind: input, shape index: {}]   ;;  %s1151_s2 = inlined_call_operand.vmem [shape: f32[1,128], index: 2, kind: input, shape index: {}]   ;;  %s1152_s4 = inlined_call_operand.vmem [shape: f32[1,256], index: 4, kind: input, shape index: {}]   ;;  %s1153_s5 = inlined_call_operand.vmem [shape: bf16[64,256], index: 5, kind: output, shape index: {}]  }
   0x1   :  { %v832_v0 = vld [vmem:[%s1148_s0 + $0x20] sm:$0xff]  ;;  %v844_v2 = vld [vmem:[%s1148_s0 + $0x28] sm:$0xff]  ;;  %v864_v8 = vld [vmem:[%s1148_s0 + $0x18] sm:$0xff]  ;;  %349 = vmatprep.mubr.bf16.mxu0 %v798_v32  ;;  %369 = vmatprep.mubr.bf16.mxu1 %v798_v32 }
   0x2   :  { %v837_v1 = vld [vmem:[%s1148_s0] sm:$0xff]  ;;  %62 = vadd.xlane.f32.xlu1 %v832_v0  ;;  %v849_v3 = vld [vmem:[%s1148_s0 + $0x8] sm:$0xff]  ;;  %v83_v6 = vmul.f32 %v844_v2, %v844_v2  ;;  %v82_v7 = vmul.f32 %v832_v0, %v832_v0  ;;  %v869_v9 = vld [vmem:[%s1148_s0 + $0x10] sm:$0xff]  ;;  %v81_v16 = vmul.f32 %v864_v8, %v864_v8 }
   0x3   :  { %54 = vadd.xlane.f32.xlu0 %v837_v1  ;;  %v79_v4 = vmul.f32 %v849_v3, %v849_v3  ;;  %v78_v5 = vmul.f32 %v837_v1, %v837_v1  ;;  %v726_v10 = vld [vmem:[%s1149_s3 + $0x4] ss:$8 sps:$4 sm:$0xff]   ;;  %v728_v11 = vld [vmem:[%s1149_s3] ss:$8 sps:$4 sm:$0xff]   ;;  %v880_v12 = vld [vmem:[%s1148_s0 + $0x38] sm:$0xff]  ;;  %v80_v17 = vmul.f32 %v869_v9, %v869_v9 }
   0x4   :  { %v885_v13 = vld [vmem:[%s1148_s0 + $0x30] sm:$0xff]  ;;  %317 = vmatprep.subr.bf16.mxu0 %v726_v10  ;;  %709 = vmatprep.subr.bf16.mxu1 %v726_v10  ;;  %v732_v18 = vld [vmem:[%s1149_s3 + $0x24] ss:$8 sps:$4 sm:$0xff]   ;;  %v734_v19 = vld [vmem:[%s1149_s3 + $0x20] ss:$8 sps:$4 sm:$0xff]   ;;  %v85_v20 = vmul.f32 %v880_v12, %v880_v12 }
   0x5   :  { %318 = vmatpush1.bf16.msra.mxu0 %v728_v11  ;;  %v729_v14 = vld [vmem:[%s1149_s3 + $0x14] ss:$8 sps:$4 sm:$0xff]   ;;  %717 = vmatpush1.bf16.msra.mxu1 %v728_v11  ;;  %v731_v15 = vld [vmem:[%s1149_s3 + $0x10] ss:$8 sps:$4 sm:$0xff]   ;;  %v84_v21 = vmul.f32 %v885_v13, %v885_v13  ;;  %v738_v24 = vld [vmem:[%s1149_s3 + $0x44] ss:$8 sps:$4 sm:$0xff]  }
   0x6   :  { %64 = vadd.xlane.f32.xlu1 %v844_v2  ;;  %319 = vmatprep.subr.bf16.mxu0 %v729_v14  ;;  %v735_v22 = vld [vmem:[%s1149_s3 + $0x34] ss:$8 sps:$4 sm:$0xff]   ;;  %v737_v23 = vld [vmem:[%s1149_s3 + $0x30] ss:$8 sps:$4 sm:$0xff]   ;;  %v740_v25 = vld [vmem:[%s1149_s3 + $0x40] ss:$8 sps:$4 sm:$0xff]  }
   0x7   :  { %56 = vadd.xlane.f32.xlu0 %v849_v3  ;;  %710 = vmatprep.subr.bf16.mxu1 %v729_v14  ;;  %v741_v26 = vld [vmem:[%s1149_s3 + $0x54] ss:$8 sps:$4 sm:$0xff]   ;;  %v743_v27 = vld [vmem:[%s1149_s3 + $0x50] ss:$8 sps:$4 sm:$0xff]   ;;  %v744_v28 = vld [vmem:[%s1149_s3 + $0x64] ss:$8 sps:$4 sm:$0xff]  }
   0x8   :  { %v746_v29 = vld [vmem:[%s1149_s3 + $0x60] ss:$8 sps:$4 sm:$0xff]   ;;  %v747_v30 = vld [vmem:[%s1149_s3 + $0x74] ss:$8 sps:$4 sm:$0xff]   ;;  %v749_v31 = vld [vmem:[%s1149_s3 + $0x70] ss:$8 sps:$4 sm:$0xff]  }
   0x9   :  { %320 = vmatpush1.bf16.msra.mxu0 %v731_v15  ;;  %718 = vmatpush1.bf16.msra.mxu1 %v731_v15 }
   0xa   :  { %88 = vadd.xlane.f32.xlu1 %v79_v4  ;;  %321 = vmatprep.subr.bf16.mxu0 %v732_v18 }
   0xb   :  { %86 = vadd.xlane.f32.xlu0 %v78_v5  ;;  %711 = vmatprep.subr.bf16.mxu1 %v732_v18 }
   0xd   :  { %322 = vmatpush1.bf16.msra.mxu0 %v734_v19  ;;  %719 = vmatpush1.bf16.msra.mxu1 %v734_v19 }
   0xe   :  { %96 = vadd.xlane.f32.xlu1 %v83_v6  ;;  %323 = vmatprep.subr.bf16.mxu0 %v735_v22 }
   0xf   :  { %94 = vadd.xlane.f32.xlu0 %v82_v7  ;;  %712 = vmatprep.subr.bf16.mxu1 %v735_v22 }
  0x11   :  { %324 = vmatpush1.bf16.msra.mxu0 %v737_v23  ;;  %720 = vmatpush1.bf16.msra.mxu1 %v737_v23 }
  0x12   :  { %60 = vadd.xlane.f32.xlu1 %v864_v8  ;;  %325 = vmatprep.subr.bf16.mxu0 %v738_v24 }
  0x13   :  { %58 = vadd.xlane.f32.xlu0 %v869_v9  ;;  %713 = vmatprep.subr.bf16.mxu1 %v738_v24 }
  0x15   :  { %326 = vmatpush1.bf16.msra.mxu0 %v740_v25  ;;  %721 = vmatpush1.bf16.msra.mxu1 %v740_v25 }
  0x16   :  { %68 = vadd.xlane.f32.xlu1 %v880_v12  ;;  %327 = vmatprep.subr.bf16.mxu0 %v741_v26 }
  0x17   :  { %66 = vadd.xlane.f32.xlu0 %v885_v13  ;;  %714 = vmatprep.subr.bf16.mxu1 %v741_v26 }
  0x19   :  { %328 = vmatpush1.bf16.msra.mxu0 %v743_v27  ;;  %722 = vmatpush1.bf16.msra.mxu1 %v743_v27  ;;  %v676_v27 = vld [vmem:[%s1151_s2] ss:$0 sm:$0xff] }
  0x1a   :  { %92 = vadd.xlane.f32.xlu1 %v81_v16  ;;  %329 = vmatprep.subr.bf16.mxu0 %v744_v28 }
  0x1b   :  { %90 = vadd.xlane.f32.xlu0 %v80_v17  ;;  %715 = vmatprep.subr.bf16.mxu1 %v744_v28 }
  0x1d   :  { %330 = vmatpush1.bf16.msra.mxu0 %v746_v29  ;;  %723 = vmatpush1.bf16.msra.mxu1 %v746_v29 }
  0x1e   :  { %100 = vadd.xlane.f32.xlu1 %v85_v20  ;;  %331 = vmatprep.subr.bf16.mxu0 %v747_v30 }
  0x1f   :  { %98 = vadd.xlane.f32.xlu0 %v84_v21  ;;  %716 = vmatprep.subr.bf16.mxu1 %v747_v30 }
  0x21   :  { %332 = vmatpush1.bf16.msra.mxu0 %v749_v31  ;;  %724 = vmatpush1.bf16.msra.mxu1 %v749_v31 }
  0x8f   :  { %v63_v33 = vpop.xlane.xlu1 %62 }
  0x90   :  { %v55_v34 = vpop.xlane.xlu0 %54  ;;  %v943_v39 = vmul.f32 0.0078125, %v63_v33 }
  0x91   :  { %v70_v37 = vmul.f32 0.0078125, %v55_v34 }
  0x92   :  { %v114_v49 = vmul.f32 %v943_v39, %v943_v39  ;;  %v146_v23 = vsub.f32 %v832_v0, %v943_v39 }
  0x93   :  { %v65_v35 = vpop.xlane.xlu1 %64  ;;  %v110_v43 = vmul.f32 %v70_v37, %v70_v37  ;;  %v142_v7 = vsub.f32 %v837_v1, %v70_v37  ;;  %v675_v1 = vld [vmem:[%s1150_s1] ss:$0 sm:$0xff] }
  0x94   :  { %v57_v36 = vpop.xlane.xlu0 %56  ;;  %v945_v40 = vmul.f32 0.0078125, %v65_v35 }
  0x95   :  { %v71_v38 = vmul.f32 0.0078125, %v57_v36 }
  0x96   :  { %v115_v50 = vmul.f32 %v945_v40, %v945_v40  ;;  %v147_v28 = vsub.f32 %v844_v2, %v945_v40 }
  0x97   :  { %v89_v41 = vpop.xlane.xlu1 %88  ;;  %v111_v44 = vmul.f32 %v71_v38, %v71_v38  ;;  %v143_v10 = vsub.f32 %v849_v3, %v71_v38 }
  0x98   :  { %v87_v42 = vpop.xlane.xlu0 %86  ;;  %v103_v45 = vmul.f32 0.0078125, %v89_v41 }
  0x99   :  { %v102_v46 = vmul.f32 0.0078125, %v87_v42 }
  0x9a   :  { %v119_v47 = vsub.f32 %v103_v45, %v111_v44 }
  0x9b   :  { %v118_v48 = vsub.f32 %v102_v46, %v110_v43  ;;  %v97_v51 = vpop.xlane.xlu1 %96 }
  0x9c   :  { %v95_v52 = vpop.xlane.xlu0 %94  ;;  %v127_v53 = vadd.f32 1e-06, %v119_v47  ;;  %v107_v55 = vmul.f32 0.0078125, %v97_v51 }
  0x9d   :  { %v126_v54 = vadd.f32 1e-06, %v118_v48  ;;  %v106_v56 = vmul.f32 0.0078125, %v95_v52 }
  0x9e   :  { %750 = vrsqrt.f32 %v127_v53  ;;  %v123_v57 = vsub.f32 %v107_v55, %v115_v50 }
  0x9f   :  { %v122_v58 = vsub.f32 %v106_v56, %v114_v49  ;;  %752 = vrsqrt.f32 %v126_v54  ;;  %v61_v59 = vpop.xlane.xlu1 %60 }
  0xa0   :  { %v59_v60 = vpop.xlane.xlu0 %58  ;;  %v131_v61 = vadd.f32 1e-06, %v123_v57  ;;  %v951_v5 = vmul.f32 0.0078125, %v61_v59 }
  0xa1   :  { %v130_v62 = vadd.f32 1e-06, %v122_v58  ;;  %v953_v6 = vmul.f32 0.0078125, %v59_v60 }
  0xa2   :  { %754 = vrsqrt.f32 %v131_v61  ;;  %v113_v18 = vmul.f32 %v951_v5, %v951_v5  ;;  %v145_v54 = vsub.f32 %v864_v8, %v951_v5 }
  0xa3   :  { %756 = vrsqrt.f32 %v130_v62  ;;  %v69_v63 = vpop.xlane.xlu1 %68  ;;  %v112_v19 = vmul.f32 %v953_v6, %v953_v6  ;;  %v144_v56 = vsub.f32 %v869_v9, %v953_v6 }
  0xa4   :  { %v67_v4 = vpop.xlane.xlu0 %66  ;;  %v957_v11 = vmul.f32 0.0078125, %v69_v63 }
  0xa5   :  { %v959_v14 = vmul.f32 0.0078125, %v67_v4 }
  0xa6   :  { %v117_v29 = vmul.f32 %v957_v11, %v957_v11  ;;  %v149_v60 = vsub.f32 %v880_v12, %v957_v11  ;;  %v443_v12 = vlaneseq }
  0xa7   :  { %v93_v15 = vpop.xlane.xlu1 %92  ;;  %v116_v30 = vmul.f32 %v959_v14, %v959_v14  ;;  %v148_v63 = vsub.f32 %v885_v13, %v959_v14  ;;  %v441_v13 = vld [vmem:[%s1152_s4] sm:$0x3] }
  0xa8   :  { %v91_v16 = vpop.xlane.xlu0 %90  ;;  %v751_v17 = vpop.eup %750  ;;  %v105_v20 = vmul.f32 0.0078125, %v93_v15  ;;  %v444_v11 = vshrl.u32 %v443_v12, 7 }
  0xa9   :  { %v104_v21 = vmul.f32 0.0078125, %v91_v16  ;;  %v753_v3 = vpop.eup %752  ;;  %v151_v22 = vmul.f32 %v751_v17, %v143_v10 }
  0xaa   :  { %v121_v24 = vsub.f32 %v105_v20, %v113_v18  ;;  %v150_v26 = vmul.f32 %v753_v3, %v142_v7  ;;  %v449_v14 = vsub.s32 1, %v444_v11 }
  0xab   :  { %v120_v25 = vsub.f32 %v104_v21, %v112_v19  ;;  %v101_v31 = vpop.xlane.xlu1 %100  ;;  %v166_v34 = vmul.f32 %v675_v1, %v151_v22  ;;  %v445_v19 = vsub.s32 0, %v444_v11 }
  0xac   :  { %v99_v33 = vpop.xlane.xlu0 %98  ;;  %v755_v0 = vpop.eup %754  ;;  %v129_v35 = vadd.f32 1e-06, %v121_v24  ;;  %v109_v37 = vmul.f32 0.0078125, %v101_v31  ;;  %v165_v41 = vmul.f32 %v675_v1, %v150_v26  ;;  %v994_v21 = vrot.slane %v441_v13, %v449_v14 }
  0xad   :  { %v128_v36 = vadd.f32 1e-06, %v120_v25  ;;  %v108_v38 = vmul.f32 0.0078125, %v99_v33  ;;  %v757_v39 = vpop.eup %756  ;;  %v181_v42 = vadd.f32 %v676_v27, %v166_v34  ;;  %v155_v43 = vmul.f32 %v755_v0, %v147_v28 }
  0xae   :  { %758 = vrsqrt.f32 %v129_v35  ;;  %v125_v2 = vsub.f32 %v109_v37, %v117_v29  ;;  %v154_v44 = vmul.f32 %v757_v39, %v146_v23  ;;  %v180_v45 = vadd.f32 %v676_v27, %v165_v41 }
  0xaf   :  { %v124_v40 = vsub.f32 %v108_v38, %v116_v30  ;;  %760 = vrsqrt.f32 %v128_v36  ;;  %v170_v46 = vmul.f32 %v675_v1, %v155_v43  ;;  %v992_v20 = vrot.slane %v441_v13, %v445_v19 }
  0xb0   :  { %v133_v47 = vadd.f32 1e-06, %v125_v2  ;;  %v169_v49 = vmul.f32 %v675_v1, %v154_v44  ;;  %v188_v50 = vpack.c.bf16 %v181_v42, %v180_v45 }
  0xb1   :  { %v132_v48 = vadd.f32 1e-06, %v124_v40  ;;  %v185_v51 = vadd.f32 %v676_v27, %v170_v46 }
  0xb2   :  { %762 = vrsqrt.f32 %v133_v47  ;;  %v184_v52 = vadd.f32 %v676_v27, %v169_v49  ;;  %350 = vmatmul.mubr.bf16.vlgmr.msra.gmra.mrb[0].mxu0 %v188_v50 }
  0xb3   :  { %764 = vrsqrt.f32 %v132_v48  ;;  %359 = vmatprep.mubr.bf16.mxu0 %v798_v32 }
  0xb4   :  { %v190_v53 = vpack.c.bf16 %v185_v51, %v184_v52 }
  0xb6   :  { %370 = vmatmul.mubr.bf16.vlgmr.msra.gmra.mrb[0].mxu1 %v190_v53 }
  0xb7   :  { %379 = vmatprep.mubr.bf16.mxu1 %v798_v32 }
  0xb8   :  { %v759_v55 = vpop.eup %758 }
  0xb9   :  { %v761_v57 = vpop.eup %760  ;;  %v153_v58 = vmul.f32 %v759_v55, %v145_v54 }
  0xba   :  { %v152_v59 = vmul.f32 %v761_v57, %v144_v56 }
  0xbb   :  { %v168_v61 = vmul.f32 %v675_v1, %v153_v58 }
  0xbc   :  { %v763_v62 = vpop.eup %762  ;;  %v167_v4 = vmul.f32 %v675_v1, %v152_v59 }
  0xbd   :  { %v765_v7 = vpop.eup %764  ;;  %v183_v8 = vadd.f32 %v676_v27, %v168_v61  ;;  %v157_v5 = vmul.f32 %v763_v62, %v149_v60 }
  0xbe   :  { %v182_v32 = vadd.f32 %v676_v27, %v167_v4  ;;  %v156_v10 = vmul.f32 %v765_v7, %v148_v63 }
  0xbf   :  { %v172_v15 = vmul.f32 %v675_v1, %v157_v5 }
  0xc0   :  { %v189_v16 = vpack.c.bf16 %v183_v8, %v182_v32  ;;  %v171_v9 = vmul.f32 %v675_v1, %v156_v10 }
  0xc1   :  { %v187_v6 = vadd.f32 %v676_v27, %v172_v15 }
  0xc2   :  { %360 = vmatmul.mubr.bf16.gmra.mrb[4].mxu0 %v189_v16  ;;  %v186_v17 = vadd.f32 %v676_v27, %v171_v9 }
  0xc4   :  { %v191_v18 = vpack.c.bf16 %v187_v6, %v186_v17 }
  0xc6   :  { %380 = vmatmul.mubr.bf16.gmra.mrb[4].mxu1 %v191_v18 }
 0x185   :  { %v351_v3 = vpop.f32.mrb[0].mxu0 }
 0x186   :  { %v997_v1 = vadd.f32 %v992_v20, %v351_v3  ;;  %v353_v22 = vpop.f32.mrb[1].mxu0 }
 0x187   :  { %v1000_v23 = vadd.f32 %v994_v21, %v353_v22  ;;  %v355_v24 = vpop.f32.mrb[2].mxu0 }
 0x188   :  { %v469_v25 = vmul.f32 %v997_v1, %v997_v1  ;;  %v1005_v26 = vadd.f32 %v992_v20, %v355_v24  ;;  %v357_v27 = vpop.f32.mrb[3].mxu0 }
 0x189   :  { %v371_v28 = vpop.f32.mrb[0].mxu1  ;;  %v470_v29 = vmul.f32 %v1000_v23, %v1000_v23  ;;  %v1010_v30 = vadd.f32 %v994_v21, %v357_v27 }
 0x18a   :  { %v1013_v31 = vadd.f32 %v992_v20, %v371_v28  ;;  %v373_v33 = vpop.f32.mrb[1].mxu1  ;;  %v485_v34 = vmul.f32 %v469_v25, %v997_v1  ;;  %v471_v0 = vmul.f32 %v1005_v26, %v1005_v26 }
 0x18b   :  { %v1019_v35 = vadd.f32 %v994_v21, %v373_v33  ;;  %v375_v36 = vpop.f32.mrb[2].mxu1  ;;  %v486_v37 = vmul.f32 %v470_v29, %v1000_v23  ;;  %v472_v38 = vmul.f32 %v1010_v30, %v1010_v30 }
 0x18c   :  { %v477_v39 = vmul.f32 %v1013_v31, %v1013_v31  ;;  %v1027_v41 = vadd.f32 %v992_v20, %v375_v36  ;;  %v377_v42 = vpop.f32.mrb[3].mxu1  ;;  %v501_v43 = vmul.f32 0.044715, %v485_v34  ;;  %v487_v2 = vmul.f32 %v471_v0, %v1005_v26 }
 0x18d   :  { %v478_v40 = vmul.f32 %v1019_v35, %v1019_v35  ;;  %v1033_v44 = vadd.f32 %v994_v21, %v377_v42  ;;  %v502_v45 = vmul.f32 0.044715, %v486_v37  ;;  %v488_v46 = vmul.f32 %v472_v38, %v1010_v30 }
 0x18e   :  { %v493_v47 = vmul.f32 %v477_v39, %v1013_v31  ;;  %v479_v48 = vmul.f32 %v1027_v41, %v1027_v41  ;;  %v517_v49 = vadd.f32 %v501_v43, %v997_v1  ;;  %v503_v50 = vmul.f32 0.044715, %v487_v2 }
 0x18f   :  { %v494_v51 = vmul.f32 %v478_v40, %v1019_v35  ;;  %v480_v52 = vmul.f32 %v1033_v44, %v1033_v44  ;;  %v518_v53 = vadd.f32 %v502_v45, %v1000_v23  ;;  %v504_v54 = vmul.f32 0.044715, %v488_v46 }
 0x190   :  { %v509_v55 = vmul.f32 0.044715, %v493_v47  ;;  %v495_v56 = vmul.f32 %v479_v48, %v1027_v41  ;;  %v533_v57 = vmul.f32 0.7978846, %v517_v49  ;;  %v519_v58 = vadd.f32 %v503_v50, %v1005_v26 }
 0x191   :  { %v510_v59 = vmul.f32 0.044715, %v494_v51  ;;  %v496_v60 = vmul.f32 %v480_v52, %v1033_v44  ;;  %v534_v61 = vmul.f32 0.7978846, %v518_v53  ;;  %v520_v62 = vadd.f32 %v504_v54, %v1010_v30 }
 0x192   :  { %v525_v63 = vadd.f32 %v509_v55, %v1013_v31  ;;  %v511_v4 = vmul.f32 0.044715, %v495_v56  ;;  %766 = vtanh.f32 %v533_v57  ;;  %v535_v7 = vmul.f32 0.7978846, %v519_v58 }
 0x193   :  { %v526_v8 = vadd.f32 %v510_v59, %v1019_v35  ;;  %v512_v5 = vmul.f32 0.044715, %v496_v60  ;;  %768 = vtanh.f32 %v534_v61  ;;  %v536_v32 = vmul.f32 0.7978846, %v520_v62 }
 0x194   :  { %v541_v10 = vmul.f32 0.7978846, %v525_v63  ;;  %v527_v15 = vadd.f32 %v511_v4, %v1027_v41  ;;  %770 = vtanh.f32 %v535_v7 }
 0x195   :  { %v542_v16 = vmul.f32 0.7978846, %v526_v8  ;;  %v528_v9 = vadd.f32 %v512_v5, %v1033_v44  ;;  %v361_v6 = vpop.f32.mrb[4].mxu0  ;;  %772 = vtanh.f32 %v536_v32 }
 0x196   :  { %v543_v17 = vmul.f32 0.7978846, %v527_v15  ;;  %v1053_v18 = vadd.f32 %v992_v20, %v361_v6  ;;  %v363_v12 = vpop.f32.mrb[5].mxu0  ;;  %774 = vtanh.f32 %v541_v10 }
 0x197   :  { %v544_v11 = vmul.f32 0.7978846, %v528_v9  ;;  %v1056_v19 = vadd.f32 %v994_v21, %v363_v12  ;;  %v365_v13 = vpop.f32.mrb[6].mxu0  ;;  %776 = vtanh.f32 %v542_v16 }
 0x198   :  { %v473_v14 = vmul.f32 %v1053_v18, %v1053_v18  ;;  %v1061_v3 = vadd.f32 %v992_v20, %v365_v13  ;;  %v367_v22 = vpop.f32.mrb[7].mxu0  ;;  %778 = vtanh.f32 %v543_v17 }
 0x199   :  { %v474_v24 = vmul.f32 %v1056_v19, %v1056_v19  ;;  %v1066_v25 = vadd.f32 %v994_v21, %v367_v22  ;;  %v381_v27 = vpop.f32.mrb[4].mxu1  ;;  %780 = vtanh.f32 %v544_v11 }
 0x19a   :  { %v489_v28 = vmul.f32 %v473_v14, %v1053_v18  ;;  %v475_v29 = vmul.f32 %v1061_v3, %v1061_v3  ;;  %v1072_v33 = vadd.f32 %v992_v20, %v381_v27  ;;  %v383_v34 = vpop.f32.mrb[5].mxu1 }
 0x19b   :  { %v490_v0 = vmul.f32 %v474_v24, %v1056_v19  ;;  %v476_v36 = vmul.f32 %v1066_v25, %v1066_v25  ;;  %v1078_v37 = vadd.f32 %v994_v21, %v383_v34  ;;  %v385_v38 = vpop.f32.mrb[6].mxu1 }
 0x19c   :  { %v505_v39 = vmul.f32 0.044715, %v489_v28  ;;  %v491_v42 = vmul.f32 %v475_v29, %v1061_v3  ;;  %v481_v43 = vmul.f32 %v1072_v33, %v1072_v33  ;;  %v1084_v2 = vadd.f32 %v992_v20, %v385_v38  ;;  %v387_v40 = vpop.f32.mrb[7].mxu1  ;;  %v767_v45 = vpop.eup %766 }
 0x19d   :  { %v506_v46 = vmul.f32 0.044715, %v490_v0  ;;  %v492_v47 = vmul.f32 %v476_v36, %v1066_v25  ;;  %v482_v48 = vmul.f32 %v1078_v37, %v1078_v37  ;;  %v1090_v49 = vadd.f32 %v994_v21, %v387_v40  ;;  %v769_v50 = vpop.eup %768 }
 0x19e   :  { %v565_v51 = vadd.f32 1.0, %v767_v45  ;;  %v521_v52 = vadd.f32 %v505_v39, %v1053_v18  ;;  %v507_v53 = vmul.f32 0.044715, %v491_v42  ;;  %v497_v54 = vmul.f32 %v481_v43, %v1072_v33  ;;  %v771_v20 = vpop.eup %770 }
 0x19f   :  { %v566_v55 = vadd.f32 1.0, %v769_v50  ;;  %v522_v56 = vadd.f32 %v506_v46, %v1056_v19  ;;  %v508_v57 = vmul.f32 0.044715, %v492_v47  ;;  %v498_v58 = vmul.f32 %v482_v48, %v1078_v37  ;;  %v773_v59 = vpop.eup %772 }
 0x1a0   :  { %v581_v60 = vmul.f32 0.5, %v565_v51  ;;  %v567_v61 = vadd.f32 1.0, %v771_v20  ;;  %v537_v62 = vmul.f32 0.7978846, %v521_v52  ;;  %v523_v21 = vadd.f32 %v507_v53, %v1061_v3  ;;  %v775_v63 = vpop.eup %774 }
 0x1a1   :  { %v582_v4 = vmul.f32 0.5, %v566_v55  ;;  %v568_v7 = vadd.f32 1.0, %v773_v59  ;;  %v538_v8 = vmul.f32 0.7978846, %v522_v56  ;;  %v524_v5 = vadd.f32 %v508_v57, %v1066_v25  ;;  %v777_v32 = vpop.eup %776 }
 0x1a2   :  { %v597_v10 = vmul.f32 %v581_v60, %v997_v1  ;;  %v583_v15 = vmul.f32 0.5, %v567_v61  ;;  %v573_v16 = vadd.f32 1.0, %v775_v63  ;;  %782 = vtanh.f32 %v537_v62  ;;  %v779_v9 = vpop.eup %778 }
 0x1a3   :  { %v598_v6 = vmul.f32 %v582_v4, %v1000_v23  ;;  %v584_v17 = vmul.f32 0.5, %v568_v7  ;;  %v574_v12 = vadd.f32 1.0, %v777_v32  ;;  %784 = vtanh.f32 %v538_v8  ;;  %v781_v11 = vpop.eup %780 }
 0x1a4   :  { %v599_v13 = vmul.f32 %v583_v15, %v1005_v26  ;;  %v589_v14 = vmul.f32 0.5, %v573_v16  ;;  %v575_v22 = vadd.f32 1.0, %v779_v9  ;;  %v539_v24 = vmul.f32 0.7978846, %v523_v21 }
 0x1a5   :  { %v701_v27 = vpack.c.bf16 %v598_v6, %v597_v10  ;;  %v600_v28 = vmul.f32 %v584_v17, %v1010_v30  ;;  %v590_v29 = vmul.f32 0.5, %v574_v12  ;;  %v576_v1 = vadd.f32 1.0, %v781_v11 }
 0x1a6   :  { %v605_v34 = vmul.f32 %v589_v14, %v1013_v31  ;;  %v591_v0 = vmul.f32 0.5, %v575_v22  ;;  %786 = vtanh.f32 %v539_v24  ;;  %v540_v36 = vmul.f32 0.7978846, %v524_v5 }
 0x1a7   :  { %661 = vst [vmem:[%s1153_s5] sm:$0xff] %v701_v27  ;;  %v702_v23 = vpack.c.bf16 %v600_v28, %v599_v13  ;;  %v606_v26 = vmul.f32 %v590_v29, %v1019_v35  ;;  %v592_v38 = vmul.f32 0.5, %v576_v1  ;;  %v513_v39 = vmul.f32 0.044715, %v497_v54 }
 0x1a8   :  { %v607_v42 = vmul.f32 %v591_v0, %v1027_v41  ;;  %788 = vtanh.f32 %v540_v36  ;;  %v514_v30 = vmul.f32 0.044715, %v498_v58  ;;  %v483_v43 = vmul.f32 %v1084_v2, %v1084_v2 }
 0x1a9   :  { %662 = vst [vmem:[%s1153_s5 + $0x8] sm:$0xff] %v702_v23  ;;  %v705_v31 = vpack.c.bf16 %v606_v26, %v605_v34  ;;  %v608_v40 = vmul.f32 %v592_v38, %v1033_v44  ;;  %v529_v45 = vadd.f32 %v513_v39, %v1072_v33  ;;  %v484_v35 = vmul.f32 %v1090_v49, %v1090_v49 }
 0x1aa   :  { %v530_v46 = vadd.f32 %v514_v30, %v1078_v37  ;;  %v499_v41 = vmul.f32 %v483_v43, %v1084_v2 }
 0x1ab   :  { %665 = vst [vmem:[%s1153_s5 + $0x20] sm:$0xff] %v705_v31  ;;  %v706_v47 = vpack.c.bf16 %v608_v40, %v607_v42  ;;  %v545_v48 = vmul.f32 0.7978846, %v529_v45  ;;  %v500_v50 = vmul.f32 %v484_v35, %v1090_v49 }
 0x1ac   :  { %v783_v51 = vpop.eup %782  ;;  %v546_v52 = vmul.f32 0.7978846, %v530_v46  ;;  %v515_v44 = vmul.f32 0.044715, %v499_v41 }
 0x1ad   :  { %v785_v53 = vpop.eup %784  ;;  %666 = vst [vmem:[%s1153_s5 + $0x28] sm:$0xff] %v706_v47  ;;  %v569_v54 = vadd.f32 1.0, %v783_v51  ;;  %790 = vtanh.f32 %v545_v48  ;;  %v516_v20 = vmul.f32 0.044715, %v500_v50 }
 0x1ae   :  { %v570_v55 = vadd.f32 1.0, %v785_v53  ;;  %792 = vtanh.f32 %v546_v52  ;;  %v531_v56 = vadd.f32 %v515_v44, %v1084_v2 }
 0x1af   :  { %v585_v57 = vmul.f32 0.5, %v569_v54  ;;  %v532_v58 = vadd.f32 %v516_v20, %v1090_v49 }
 0x1b0   :  { %v787_v59 = vpop.eup %786  ;;  %v586_v60 = vmul.f32 0.5, %v570_v55  ;;  %v547_v61 = vmul.f32 0.7978846, %v531_v56 }
 0x1b1   :  { %v601_v62 = vmul.f32 %v585_v57, %v1053_v18  ;;  %v571_v21 = vadd.f32 1.0, %v787_v59  ;;  %v548_v63 = vmul.f32 0.7978846, %v532_v58 }
 0x1b2   :  { %v789_v4 = vpop.eup %788  ;;  %v602_v7 = vmul.f32 %v586_v60, %v1056_v19  ;;  %794 = vtanh.f32 %v547_v61 }
 0x1b3   :  { %v587_v8 = vmul.f32 0.5, %v571_v21  ;;  %v572_v5 = vadd.f32 1.0, %v789_v4  ;;  %796 = vtanh.f32 %v548_v63 }
 0x1b4   :  { %v703_v32 = vpack.c.bf16 %v602_v7, %v601_v62 }
 0x1b5   :  { %v603_v10 = vmul.f32 %v587_v8, %v1061_v3  ;;  %v588_v15 = vmul.f32 0.5, %v572_v5 }
 0x1b6   :  { %663 = vst [vmem:[%s1153_s5 + $0x10] sm:$0xff] %v703_v32 }
 0x1b7   :  { %v791_v16 = vpop.eup %790  ;;  %v604_v18 = vmul.f32 %v588_v15, %v1066_v25 }
 0x1b8   :  { %v793_v9 = vpop.eup %792  ;;  %v577_v6 = vadd.f32 1.0, %v791_v16 }
 0x1b9   :  { %v704_v17 = vpack.c.bf16 %v604_v18, %v603_v10  ;;  %v578_v12 = vadd.f32 1.0, %v793_v9 }
 0x1ba   :  { %v593_v19 = vmul.f32 0.5, %v577_v6 }
 0x1bb   :  { %664 = vst [vmem:[%s1153_s5 + $0x18] sm:$0xff] %v704_v17  ;;  %v594_v11 = vmul.f32 0.5, %v578_v12 }
 0x1bc   :  { %v795_v13 = vpop.eup %794  ;;  %v609_v3 = vmul.f32 %v593_v19, %v1072_v33 }
 0x1bd   :  { %v797_v14 = vpop.eup %796  ;;  %v610_v22 = vmul.f32 %v594_v11, %v1078_v37  ;;  %v579_v24 = vadd.f32 1.0, %v795_v13 }
 0x1be   :  { %v580_v27 = vadd.f32 1.0, %v797_v14 }
 0x1bf   :  { %v707_v28 = vpack.c.bf16 %v610_v22, %v609_v3  ;;  %v595_v25 = vmul.f32 0.5, %v579_v24 }
 0x1c0   :  { %v596_v29 = vmul.f32 0.5, %v580_v27 }
 0x1c1   :  { %667 = vst [vmem:[%s1153_s5 + $0x30] sm:$0xff] %v707_v28  ;;  %v611_v1 = vmul.f32 %v595_v25, %v1084_v2 }
 0x1c2   :  { %v612_v34 = vmul.f32 %v596_v29, %v1090_v49 }
 0x1c4   :  { %v708_v0 = vpack.c.bf16 %v612_v34, %v611_v1 }
 0x1c6   :  { %668 = vst [vmem:[%s1153_s5 + $0x38] sm:$0xff] %v708_v0 }

</bundles_post_ra>
